<compile_context>
chip_gen: v5e
topology: v5e:2x2
jax: 0.10.0
libtpu: 0.0.40
codegen_flags: <defaults>
</compile_context>

<pallas_src>
import functools

import jax
import jax.numpy as jnp
from jax.experimental import pallas as pl
from jax.experimental.pallas import tpu as pltpu


def _round_up(x: int, m: int) -> int:
    return ((x + m - 1) // m) * m


# -----------------------------------------------------------------------------
# Kernel: one grid step = one batch tile. All operands are dense, lane-aligned
# 2-D tiles; every store is a full-tile, lane-dense store (no in-kernel concat,
# no SMEM scalar reads).
# -----------------------------------------------------------------------------
def _initial_task_embedding_kernel(u_ref, bu_ref, w1_ref, w_bu_ref, w_td_ref,
                                   b_top_ref, td_ref, out_ref):
    """
    u_ref    : [TB, K]  rows = [flag_task | arg one-hot | 1]  (bias via ones col)
    bu_ref   : [TB, F]  BU1 output (flattened), matmul dtype (f32 or bf16)
    w1_ref   : [K,  F]  packed stage-1 weights + bias row, f32
    w_bu_ref : [F,  F]  top Linear, bu_out part (transposed), matmul dtype
    w_td_ref : [F,  F]  top Linear, top_td part (transposed), matmul dtype
    b_top_ref: [1,  F]  top Linear bias, f32
    td_ref   : [TB, F]  out: top_td_embed
    out_ref  : [TB, F]  out: top_td (== x)
    """
    # Stage 1: top_td_embed =
    #   ReLU([per-task Linear(1,F/2)(flag_task) | Linear(nargs,F/2)(arg)])
    # W1 is block-zero off the two diagonal blocks, so a single ReLU over the
    # packed [TB, F] result equals the reference's two separate ReLUs.
    # (Invariant — do not break when changing the packing.)
    td = jnp.maximum(
        jnp.dot(u_ref[...], w1_ref[...], preferred_element_type=jnp.float32), 0.0)
    td_ref[...] = td.astype(td_ref.dtype)

    # Stage 2: top_td = ReLU(Linear(2F, F)([bu_out | top_td_embed])).
    # The concat along the contraction axis is replaced by a split weight:
    # bu @ W_bu + td @ W_td. Accumulate in f32; bias + ReLU in f32 (VPU).
    z = (jnp.dot(bu_ref[...], w_bu_ref[...], preferred_element_type=jnp.float32)
         + jnp.dot(td.astype(w_td_ref.dtype), w_td_ref[...],
                   preferred_element_type=jnp.float32)
         + b_top_ref[...])
    out_ref[...] = jnp.maximum(z, 0.0).astype(out_ref.dtype)


# -----------------------------------------------------------------------------
# One-time parameter packing (hoisted out of the per-call path).
# -----------------------------------------------------------------------------
def pack_params(params, use_bf16_matmul: bool = False):
    """
    params:
        task_w [ntasks, F/2], task_b [ntasks, F/2]   (per-task nn.Linear(1, F/2))
        arg_w  [F/2, nargs],  arg_b  [F/2]           (nn.Linear(nargs, F/2))
        top_w  [F, 2F],       top_b  [F]             (nn.Linear(2F, F))
    Returns a dict of packed / transposed weights. All O(F^2) reshuffles happen
    here exactly once.
    """
    Fh, nargs = params["arg_w"].shape
    F = params["top_w"].shape[0]
    assert F == 2 * Fh
    K = 1 + nargs + 1  # [flag_task | arg | ones(bias)]

    mm_dtype = jnp.bfloat16 if use_bf16_matmul else jnp.float32

    # Task-independent part of the packed stage-1 weight (task row + task bias
    # half-row are filled per call — they are the only task-dependent pieces).
    W1_base = jnp.zeros((K, F), jnp.float32)
    W1_base = W1_base.at[1:1 + nargs, Fh:].set(params["arg_w"].T.astype(jnp.float32))
    W1_base = W1_base.at[K - 1, Fh:].set(params["arg_b"].astype(jnp.float32))

    W_top = params["top_w"]
    w_bu = W_top[:, :F].T.astype(mm_dtype)          # [F, F]
    w_td = W_top[:, F:].T.astype(mm_dtype)          # [F, F]
    b_top = params["top_b"][None, :].astype(jnp.float32)

    return dict(
        W1_base=W1_base,
        task_w=params["task_w"].astype(jnp.float32),
        task_b=params["task_b"].astype(jnp.float32),
        w_bu=w_bu, w_td=w_td, b_top=b_top,
    )


# -----------------------------------------------------------------------------
# Forward. Wrap in jax.jit (with ntasks bound statically) for the per-call
# prep (task-row update of W1, flag slicing) to fuse / constant-fold.
# -----------------------------------------------------------------------------
def initial_task_embedding_forward(bu_out, flag, packed, ntasks,
                                   *, min_pallas_elems: int = 64 * 1024):
    """
    bu_out : [B, F, 1, 1]            (F = top_filters)
    flag   : [B, ntasks + nargs]     (one-hot task | one-hot argument)
    packed : output of pack_params()
    returns (x, top_td_embed, top_td), each [B, F, 1, 1]; x is top_td.
    """
    B, F = bu_out.shape[0], bu_out.shape[1]
    Fh = F // 2
    nargs = flag.shape[1] - ntasks
    K = 1 + nargs + 1

    # flag_to_task: task id shared across the batch (taken from row 0).
    task_id = jnp.argmax(flag[0, :ntasks])
    flag_task = jnp.take(flag, task_id, axis=1)[:, None].astype(jnp.float32)  # [B, 1]
    arg = flag[:, ntasks:].astype(jnp.float32)                                # [B, nargs]
    ones = jnp.ones((B, 1), jnp.float32)
    u = jnp.concatenate([flag_task, arg, ones], axis=1)                       # [B, K]

    # Only task-dependent packing: two tiny row updates of W1 (O(K*F) copy).
    w_task = jnp.take(packed["task_w"], task_id, axis=0)                      # [F/2]
    b_task = jnp.take(packed["task_b"], task_id, axis=0)                      # [F/2]
    W1 = packed["W1_base"].at[0, :Fh].set(w_task).at[K - 1, :Fh].set(b_task)

    w_bu, w_td, b_top = packed["w_bu"], packed["w_td"], packed["b_top"]
    mm_dtype = w_bu.dtype
    bu = bu_out.reshape(B, F).astype(mm_dtype)

    # Size / alignment gate: tiny problems (fixed per-step cost + DMA setup
    # dominate) or F not a multiple of 128 (masked vst, idle MXU lanes) are
    # faster in plain XLA.
    use_pallas = (B * F >= min_pallas_elems) and (F % 128 == 0) and (B >= 8)

    if not use_pallas:
        td = jnp.maximum(jnp.dot(u, W1), 0.0)
        z = (jnp.dot(bu_out.reshape(B, F).astype(jnp.float32), w_bu.astype(jnp.float32))
             + jnp.dot(td, w_td.astype(jnp.float32))
             + b_top)
        out = jnp.maximum(z, 0.0).astype(bu_out.dtype)
        td = td.astype(bu_out.dtype)
    else:
        # Batch tiling: multiple of 8 sublanes, >= 2 grid points when possible
        # so the "parallel" axis can shard across v7x's two TensorCores.
        TB = min(256, max(8, _round_up(pl.cdiv(B, 2), 8)))
        grid_b = pl.cdiv(B, TB)  # ragged last block is masked by Pallas

        # Explicit scoped-VMEM budget (worst case: everything double-buffered).
        mm_bytes = jnp.dtype(mm_dtype).itemsize
        out_bytes = jnp.dtype(bu_out.dtype).itemsize
        need = (2 * TB * K * 4                      # u
                + 2 * TB * F * mm_bytes             # bu
                + 2 * (K * F + F) * 4               # W1 + b_top
                + 2 * 2 * F * F * mm_bytes          # w_bu + w_td
                + 2 * 2 * TB * F * out_bytes)       # two outputs
        vmem_limit = int(min(max(need + (4 << 20), 32 << 20), 64 << 20))

        def _const_spec(shape):
            idx_map = lambda i: (0,) * len(shape)
            # Grid-invariant operands: single-buffer large weights to halve
            # weight VMEM (matters for F >= ~1024, esp. on v7x's 64 MiB VMEM).
            if F >= 1024:
                try:
                    return pl.BlockSpec(shape, idx_map,
                                        pipeline_mode=pl.Buffered(1))
                except (TypeError, AttributeError):
                    pass
            return pl.BlockSpec(shape, idx_map)

        td, out = pl.pallas_call(
            _initial_task_embedding_kernel,
            out_shape=(
                jax.ShapeDtypeStruct((B, F), bu_out.dtype),   # top_td_embed
                jax.ShapeDtypeStruct((B, F), bu_out.dtype),   # top_td (== x)
            ),
            grid_spec=pltpu.PrefetchScalarGridSpec(
                num_scalar_prefetch=0,
                grid=(grid_b,),
                in_specs=[
                    pl.BlockSpec((TB, K), lambda i: (i, 0)),   # u
                    pl.BlockSpec((TB, F), lambda i: (i, 0)),   # bu_out (flat)
                    _const_spec((K, F)),                       # W1 (packed, +bias row)
                    _const_spec((F, F)),                       # W_top bu part
                    _const_spec((F, F)),                       # W_top td part
                    _const_spec((1, F)),                       # b_top
                ],
                out_specs=(
                    pl.BlockSpec((TB, F), lambda i: (i, 0)),
                    pl.BlockSpec((TB, F), lambda i: (i, 0)),
                ),
            ),
            compiler_params=pltpu.CompilerParams(
                dimension_semantics=("parallel",),
                vmem_limit_bytes=vmem_limit),
        )(u, bu, W1, w_bu, w_td, b_top)

    x = out.reshape(B, F, 1, 1)
    return x, td.reshape(B, F, 1, 1), x


# -----------------------------------------------------------------------------
# Pure-JAX reference mirroring the PyTorch forward (SF branch, norm=identity,
# activation=ReLU).
# -----------------------------------------------------------------------------
def reference_forward(bu_out, flag, params, ntasks):
    B, F = bu_out.shape[0], bu_out.shape[1]
    task_id = jnp.argmax(flag[0, :ntasks])
    flag_task = jnp.take(flag, task_id, axis=1)[:, None]                     # [B, 1]
    arg = flag[:, ntasks:]
    w_task = jnp.take(params["task_w"], task_id, axis=0)
    b_task = jnp.take(params["task_b"], task_id, axis=0)
    t = jax.nn.relu(flag_task * w_task[None, :] + b_task[None, :])           # [B, F/2]
    a = jax.nn.relu(arg @ params["arg_w"].T + params["arg_b"][None, :])      # [B, F/2]
    td = jnp.concatenate([t, a], axis=1)                                     # [B, F]
    z = jnp.concatenate([bu_out.reshape(B, F), td], axis=1)                  # [B, 2F]
    out = jax.nn.relu(z @ params["top_w"].T + params["top_b"][None, :])      # [B, F]
    x = out.reshape(B, F, 1, 1)
    return x, td.reshape(B, F, 1, 1), x


if __name__ == "__main__":
    def make_inputs(key, B, ntasks, nargs, F, task=2, argument=3):
        Fh = F // 2
        ks = jax.random.split(key, 7)
        bu_out = jax.random.normal(ks[0], (B, F, 1, 1), dtype=jnp.float32)
        params = dict(
            task_w=0.1 * jax.random.normal(ks[1], (ntasks, Fh), jnp.float32),
            task_b=0.1 * jax.random.normal(ks[2], (ntasks, Fh), jnp.float32),
            arg_w=0.1 * jax.random.normal(ks[3], (Fh, nargs), jnp.float32),
            arg_b=0.1 * jax.random.normal(ks[4], (Fh,), jnp.float32),
            top_w=0.1 * jax.random.normal(ks[5], (F, 2 * F), jnp.float32),
            top_b=0.1 * jax.random.normal(ks[6], (F,), jnp.float32),
        )
        flag = jnp.zeros((B, ntasks + nargs), jnp.float32)
        flag = flag.at[:, task].set(1.0).at[:, ntasks + argument].set(1.0)
        return bu_out, flag, params

    key = jax.random.PRNGKey(0)
    k1, k2 = jax.random.split(key)
    ntasks, nargs = 4, 8

    # --- Case 1: Pallas path, f32 matmuls. B % TB != 0 exercises the ragged
    #     last batch block (no explicit pad/slice any more). ---
    B, F = 136, 512
    bu_out, flag, params = make_inputs(k1, B, ntasks, nargs, F)
    packed = pack_params(params)                    # one-time O(F^2) packing
    fwd = jax.jit(functools.partial(initial_task_embedding_forward, ntasks=ntasks))
    x, td_embed, top_td = fwd(bu_out, flag, packed)
    jax.block_until_ready(x)

    x_r, td_r, top_r = reference_forward(bu_out, flag, params, ntasks)
    assert x.shape == (B, F, 1, 1) and td_embed.shape == (B, F, 1, 1)
    assert jnp.allclose(x, x_r, atol=5e-2, rtol=1e-2), "case1: x mismatch"
    assert jnp.allclose(td_embed, td_r, atol=5e-2, rtol=1e-2), "case1: embed mismatch"
    assert jnp.allclose(top_td, top_r, atol=5e-2, rtol=1e-2), "case1: top_td mismatch"

    # --- Case 2: Pallas path with bf16 matmul inputs (v6e/v7x MXU opt), f32 accum. ---
    packed_bf16 = pack_params(params, use_bf16_matmul=True)
    x2, td2, top2 = fwd(bu_out, flag, packed_bf16)
    jax.block_until_ready(x2)
    assert jnp.allclose(x2, x_r, atol=2e-1, rtol=5e-2), "case2 (bf16): x mismatch"
    assert jnp.allclose(td2, td_r, atol=2e-1, rtol=5e-2), "case2 (bf16): embed mismatch"

    # --- Case 3: tiny, non-lane-aligned problem -> size gate falls back to XLA. ---
    Bs, Fs = 2, 32
    bu_s, flag_s, params_s = make_inputs(k2, Bs, ntasks, nargs, Fs)
    packed_s = pack_params(params_s)
    xs, tds, tops = initial_task_embedding_forward(bu_s, flag_s, packed_s, ntasks)
    jax.block_until_ready(xs)
    xs_r, tds_r, _ = reference_forward(bu_s, flag_s, params_s, ntasks)
    assert xs.shape == (Bs, Fs, 1, 1)
    assert jnp.allclose(xs, xs_r, atol=1e-4, rtol=1e-4), "case3: x mismatch"
    assert jnp.allclose(tds, tds_r, atol=1e-4, rtol=1e-4), "case3: embed mismatch"

    print("KERNEL_OK")
</pallas_src>

<mosaic_0001>
module attributes {stable_mosaic.version = 11 : i64} {
  func.func @_initial_task_embedding_kernel(%arg0: i32, %arg1: memref<72x10xf32, #tpu.memory_space<vmem>>, %arg2: memref<72x512xf32, #tpu.memory_space<vmem>>, %arg3: memref<10x512xf32, #tpu.memory_space<vmem>>, %arg4: memref<512x512xf32, #tpu.memory_space<vmem>>, %arg5: memref<512x512xf32, #tpu.memory_space<vmem>>, %arg6: memref<1x512xf32, #tpu.memory_space<vmem>>, %arg7: memref<72x512xf32, #tpu.memory_space<vmem>>, %arg8: memref<72x512xf32, #tpu.memory_space<vmem>>) attributes {dimension_semantics = [#tpu.dimension_semantics<parallel>], iteration_bounds = array<i64: 2>, scalar_prefetch = 0 : i64, scratch_operands = 0 : i64, tpu.core_type = #tpu.core_type<tc>, window_params = [{transform_indices = @transform_0, window_bounds = array<i64: 72, 10>}, {transform_indices = @transform_1, window_bounds = array<i64: 72, 512>}, {pipeline_mode = #tpu.pipeline_mode<synchronous>, transform_indices = @transform_2, window_bounds = array<i64: 10, 512>}, {pipeline_mode = #tpu.pipeline_mode<synchronous>, transform_indices = @transform_3, window_bounds = array<i64: 512, 512>}, {pipeline_mode = #tpu.pipeline_mode<synchronous>, transform_indices = @transform_4, window_bounds = array<i64: 512, 512>}, {pipeline_mode = #tpu.pipeline_mode<synchronous>, transform_indices = @transform_5, window_bounds = array<i64: 1, 512>}, {transform_indices = @transform_6, window_bounds = array<i64: 72, 512>}, {transform_indices = @transform_7, window_bounds = array<i64: 72, 512>}]} {
    %c0 = arith.constant 0 : index
    %c0_0 = arith.constant 0 : index
    %0 = vector.load %arg1[%c0, %c0_0] : memref<72x10xf32, #tpu.memory_space<vmem>>, vector<72x10xf32>
    %c0_1 = arith.constant 0 : index
    %c0_2 = arith.constant 0 : index
    %1 = vector.load %arg3[%c0_1, %c0_2] : memref<10x512xf32, #tpu.memory_space<vmem>>, vector<10x512xf32>
    %cst = arith.constant dense<0.000000e+00> : vector<72x512xf32>
    %2 = tpu.matmul %0, %1, %cst {dimension_numbers = #tpu.dot_dimension_numbers<[1], [0], [0], [1], [0, 0, 1, 1], [], []>} : vector<72x10xf32>, vector<10x512xf32>, vector<72x512xf32> -> vector<72x512xf32>
    %cst_3 = arith.constant 0.000000e+00 : f32
    %3 = vector.broadcast %cst_3 : f32 to vector<72x512xf32>
    %4 = arith.maximumf %2, %3 : vector<72x512xf32>
    %c0_4 = arith.constant 0 : index
    %c0_5 = arith.constant 0 : index
    %5 = vector.load %arg7[%c0_4, %c0_5] : memref<72x512xf32, #tpu.memory_space<vmem>>, vector<72x512xf32>
    tpu.vector_store %arg7[%c0_4, %c0_5], %4 {strides = array<i32>} : memref<72x512xf32, #tpu.memory_space<vmem>>, vector<72x512xf32>,
    %c0_6 = arith.constant 0 : index
    %c0_7 = arith.constant 0 : index
    %6 = vector.load %arg2[%c0_6, %c0_7] : memref<72x512xf32, #tpu.memory_space<vmem>>, vector<72x512xf32>
    %c0_8 = arith.constant 0 : index
    %c0_9 = arith.constant 0 : index
    %7 = vector.load %arg4[%c0_8, %c0_9] : memref<512x512xf32, #tpu.memory_space<vmem>>, vector<512x512xf32>
    %cst_10 = arith.constant dense<0.000000e+00> : vector<72x512xf32>
    %8 = tpu.matmul %6, %7, %cst_10 {dimension_numbers = #tpu.dot_dimension_numbers<[1], [0], [0], [1], [0, 0, 1, 1], [], []>} : vector<72x512xf32>, vector<512x512xf32>, vector<72x512xf32> -> vector<72x512xf32>
    %c0_11 = arith.constant 0 : index
    %c0_12 = arith.constant 0 : index
    %9 = vector.load %arg5[%c0_11, %c0_12] : memref<512x512xf32, #tpu.memory_space<vmem>>, vector<512x512xf32>
    %cst_13 = arith.constant dense<0.000000e+00> : vector<72x512xf32>
    %10 = tpu.matmul %4, %9, %cst_13 {dimension_numbers = #tpu.dot_dimension_numbers<[1], [0], [0], [1], [0, 0, 1, 1], [], []>} : vector<72x512xf32>, vector<512x512xf32>, vector<72x512xf32> -> vector<72x512xf32>
    %11 = arith.addf %8, %10 : vector<72x512xf32>
    %c0_14 = arith.constant 0 : index
    %c0_15 = arith.constant 0 : index
    %12 = vector.load %arg6[%c0_14, %c0_15] : memref<1x512xf32, #tpu.memory_space<vmem>>, vector<1x512xf32>
    %13 = vector.broadcast %12 : vector<1x512xf32> to vector<72x512xf32>
    %14 = arith.addf %11, %13 : vector<72x512xf32>
    %cst_16 = arith.constant 0.000000e+00 : f32
    %15 = vector.broadcast %cst_16 : f32 to vector<72x512xf32>
    %16 = arith.maximumf %14, %15 : vector<72x512xf32>
    %c0_17 = arith.constant 0 : index
    %c0_18 = arith.constant 0 : index
    %17 = vector.load %arg8[%c0_17, %c0_18] : memref<72x512xf32, #tpu.memory_space<vmem>>, vector<72x512xf32>
    tpu.vector_store %arg8[%c0_17, %c0_18], %16 {strides = array<i32>} : memref<72x512xf32, #tpu.memory_space<vmem>>, vector<72x512xf32>,
    return
  }
  func.func @transform_0(%arg0: i32) -> (i32, i32) {
    %c0_i32 = arith.constant 0 : i32
    %c0_i32_0 = arith.constant 0 : i32
    return %arg0, %c0_i32 : i32, i32
  }
  func.func @transform_1(%arg0: i32) -> (i32, i32) {
    %c0_i32 = arith.constant 0 : i32
    %c0_i32_0 = arith.constant 0 : i32
    return %arg0, %c0_i32 : i32, i32
  }
  func.func @transform_2(%arg0: i32) -> (i32, i32) {
    %c0_i32 = arith.constant 0 : i32
    %c0_i32_0 = arith.constant 0 : i32
    %c0_i32_1 = arith.constant 0 : i32
    return %c0_i32, %c0_i32_0 : i32, i32
  }
  func.func @transform_3(%arg0: i32) -> (i32, i32) {
    %c0_i32 = arith.constant 0 : i32
    %c0_i32_0 = arith.constant 0 : i32
    %c0_i32_1 = arith.constant 0 : i32
    return %c0_i32, %c0_i32_0 : i32, i32
  }
  func.func @transform_4(%arg0: i32) -> (i32, i32) {
    %c0_i32 = arith.constant 0 : i32
    %c0_i32_0 = arith.constant 0 : i32
    %c0_i32_1 = arith.constant 0 : i32
    return %c0_i32, %c0_i32_0 : i32, i32
  }
  func.func @transform_5(%arg0: i32) -> (i32, i32) {
    %c0_i32 = arith.constant 0 : i32
    %c0_i32_0 = arith.constant 0 : i32
    %c0_i32_1 = arith.constant 0 : i32
    return %c0_i32, %c0_i32_0 : i32, i32
  }
  func.func @transform_6(%arg0: i32) -> (i32, i32) {
    %c0_i32 = arith.constant 0 : i32
    %c0_i32_0 = arith.constant 0 : i32
    return %arg0, %c0_i32 : i32, i32
  }
  func.func @transform_7(%arg0: i32) -> (i32, i32) {
    %c0_i32 = arith.constant 0 : i32
    %c0_i32_0 = arith.constant 0 : i32
    return %arg0, %c0_i32 : i32, i32
  }
}

</mosaic_0001>

<bundles_post_ra>
// kernel: initial_task_embedding_forward.1
= control target key start
LH: loop header
LB: loop body
LE: loop exit
PB: predicated region body
PF: predicated region fallthrough
CT: control target
= control target key end

     0   :  { %13 = vsyncpa [#allocation3], 0  ;;  %s5043_s0 = inlined_call_operand.vmem [shape: f32[136,10], index: 0, kind: input, shape index: {}]   ;;  %s5044_s1 = inlined_call_operand.vmem [shape: f32[136,512], index: 1, kind: input, shape index: {}]   ;;  %s5045_s2 = inlined_call_operand.vmem [shape: f32[10,512], index: 2, kind: input, shape index: {}]   ;;  %s5046_s3 = inlined_call_operand.hbm [shape: f32[512,512], index: 3, kind: input, shape index: {}]   ;;  %s5047_s4 = inlined_call_operand.hbm [shape: f32[512,512], index: 4, kind: input, shape index: {}]   ;;  %s5048_s5 = inlined_call_operand.vmem [shape: f32[1,512], index: 5, kind: input, shape index: {}]   ;;  %s5049_s6 = inlined_call_operand.vmem [shape: f32[136,512], index: 6, kind: output, shape index: {0}]   ;;  %s5050_s7 = inlined_call_operand.vmem [shape: f32[136,512], index: 7, kind: output, shape index: {1}]  }
   0x1   :  { %14 = vsyncpa [#allocation5], 0  ;;  %s3845_s24 = smov 0   ;;  %s3847_s25 = smov 0  }
   0x2   :  { %s3849_s26 = smov 0  }
   0x3 LB: > { %s3858_s27 = sadd.s32 4294967295, %s3735_s26   ;;  %s3860_s28 = sadd.s32 1, %s3735_s26   ;;  %s3735_s26 = sphi %s3849_s26, %s5123_s26   ;;  %s3731_s25 = sphi %s3847_s25, %s5122_s25   ;;  %s3727_s24 = sphi %s3845_s24, %s5121_s24  }
   0x4   : > { %s160_s29 = ssub.s32 %s3735_s26, %s3860_s28  ;;  %s163_s30 = sadd.s32 1, %s3731_s25 }
   0x5   : > { %p161_p0 = scmp.eq.s32.totalorder %s160_s29, 0  ;;  %p173_p1 = scmp.ne.s32.totalorder %s3731_s25, %s3727_s24 }
   0x6   : > { %p174_p2 = scmp.eq.s32.totalorder %s3858_s27, 1  ;;  %p3238_p3 = scmp.ge.s32.totalorder %s3735_s26, 1 }
   0x7   : > { %s3868_s8 = scalar_select %p161_p0, %s3731_s25, %s163_s30  }
   0x8   : > { %p3870_p4 = por %p174_p2, %p173_p1  ;;  %p213_p5 = scmp.lt.s32.totalorder %s3735_s26, 3 }
   0x9   : > { %p3349_p6 = scmp.eq.s32.totalorder %s3858_s27, 0  ;;  %s227_s13 = sshll.u32 %s5046_s3, 4  ;;  %s228_s13 = int_to_ptr.hbm [resolvable:$true] %s227_s13 }
   0xa   : > { %p3875_p7 = pnand %p3238_p3, %p213_p5  ;;  %s3801_s14 = smov [#allocation2]  }
   0xb   : > { %s229_s15 = sshll.u32 %s3801_s14, 4  ;;  %s241_s18 = sshll.u32 %s5047_s4, 4  ;;  %s230_s15 = int_to_ptr.vmem [resolvable:$true] %s229_s15  ;;  %s242_s18 = int_to_ptr.hbm [resolvable:$true] %s241_s18 }
   0xc   : > { %p3342_p8 = pneg %p3875_p7  ;;  %s3802_s19 = smov 512  }
   0xd   : > { %s3803_s20 = smov 32   ;;  %s3804_s21 = smov [#allocation4]  }
   0xe   : > { %p3343_p9 = pnand %p3349_p6, %p3342_p8  ;;  %s243_s22 = sshll.u32 %s3804_s21, 4  ;;  %s244_s22 = int_to_ptr.vmem [resolvable:$true] %s243_s22 }
   0xf   : > { %299 = sbr.rel (%p3875_p7) target bundleno = 1009 (0x3f1), region = 44 }
  0x10   : > { %3345 = dma.hbm_to_vmem [thread:$0]  (!%p3343_p9), %s228_s13, 32768, %s230_s15, [#allocation3], %s3802_s19, %s3802_s19, %s3803_s20  }
  0x11   : > { %3348 = dma.hbm_to_vmem [thread:$0]  (!%p3343_p9), %s242_s18, 32768, %s244_s22, [#allocation5], %s3802_s19, %s3802_s19, %s3803_s20  }
  0x14   : > { %3718 = dma.done.wait (%p3349_p6), [#allocation3], 32768  }
  0x15   : > { %3720 = vsyncadd (%p3349_p6), [#allocation3], 4294934528 }
  0x16   : > { %3722 = dma.done.wait (%p3349_p6), [#allocation5], 32768  }
  0x17   : > { %3724 = vsyncadd (%p3349_p6), [#allocation5], 4294934528  ;;  %s3900_s23 = smul.u32 9, %s3858_s27  ;;  %vm443_vm0 = vcmask 1041408   ;;  %v411_v0 = vld [vmem:[%s5045_s2 + $0x20] sm:$0x3] }
  0x18   : > { %v412_v1 = vld [vmem:[%s5045_s2 + $0x28] sm:$0x3]  ;;  %v413_v2 = vld [vmem:[%s5045_s2 + $0x30] sm:$0x3]  ;;  %3248 = vmatpush.msk.msra.mxu0 %vm443_vm0, %v411_v0  ;;  %v414_v3 = vld [vmem:[%s5045_s2 + $0x38] sm:$0x3] }
  0x19   : > { %p360_p10 = scmp.lt.s32.totalorder %s3900_s23, 16  ;;  %3258 = vmatpush.msk.msra.mxu1 %vm443_vm0, %v412_v1  ;;  %v407_v4 = vld [vmem:[%s5045_s2] sm:$0xff]  ;;  %v408_v5 = vld [vmem:[%s5045_s2 + $0x8] sm:$0xff]  ;;  %3268 = vmatpush.msk.msra.mxu2 %vm443_vm0, %v413_v2  ;;  %v409_v6 = vld [vmem:[%s5045_s2 + $0x10] sm:$0xff]  ;;  %vm415_vm1 = vcmask 80896   ;;  %s346_s13 = sand.u32 1, %s3727_s24  }
  0x1a   : > { %3278 = vmatpush.msk.msra.mxu3 %vm443_vm0, %v414_v3  ;;  %v410_v7 = vld [vmem:[%s5045_s2 + $0x18] sm:$0xff]  ;;  %471 = vmatpush.msra.mxu0 %v407_v4  ;;  %v1184_v12 = vld [vmem:[#allocation4 + $0x5e0] sm:$0xff]  ;;  %s3982_s14 = smul.u32 288, %s346_s13  ;;  %s2790_s21 = ssub.s32 (%p3870_p4), 17, %s3900_s23 }
  0x1b   : > { %s3904_s26 = scalar_select %p360_p10, %s3900_s23, 16  ;;  %515 = vmatpush.msra.mxu1 %v408_v5  ;;  %559 = vmatpush.msra.mxu2 %v409_v6  ;;  %v1056_v14 = vld [vmem:[#allocation4 + $0x1e0] sm:$0xff] }
  0x1c   : > { %603 = vmatpush.msra.mxu3 %v410_v7  ;;  %v1248_v15 = vld [vmem:[#allocation4 + $0x7e0] sm:$0xff]  ;;  %1252 = vmatpush.msrb.mxu0 %v1056_v14  ;;  %s3989_s24 = scalar_lea.vmem [#allocation6], %s3982_s14   ;;  %s4547_s20 = scalar_lea.vmem [#allocation7], %s3982_s14  }
  0x1d   : > { %s3245_s29 = sshll.u32 %s3904_s26, 3  ;;  %1340 = vmatpush.msrb.mxu2 %v1184_v12  ;;  %v1120_v16 = vld [vmem:[#allocation4 + $0x3e0] sm:$0xff]  ;;  %s3320_s15 = sshll.u32 %s3904_s26, 5 }
  0x1e   : > { %s3919_s17 = scalar_lea.vmem %s5043_s0, %s3245_s29  ;;  %1384 = vmatpush.msrb.mxu3 %v1248_v15  ;;  %v1180_v17 = vld [vmem:[#allocation4 + $0x5c0] sm:$0xff]  ;;  %1296 = vmatpush.msrb.mxu1 %v1120_v16  ;;  %s4313_s26 = scalar_lea.vmem %s5044_s1, %s3320_s15 }
  0x1f   : > { %v398_v8 = vld [vmem:[%s3919_s17] sm:$0xff]  ;;  %v399_v9 = vld [vmem:[%s3919_s17 + $0x8] sm:$0xff]  ;;  %v400_v10 = vld [vmem:[%s3919_s17 + $0x10] sm:$0xff]  ;;  %1341 = vmatpush.msrb.mxu2 %v1180_v17  ;;  %s3331_s22 = smul.u32 (%p3870_p4), 288, %s3858_s27  ;;  %p2791_p11 = scmp.lt.s32.totalorder (%p3870_p4), %s2790_s21, 9 }
  0x20   : > { %3249 = vmatmul.msk.f32.vlgmr.msra.gmra.mxu0 %vm415_vm1, %v398_v8  ;;  %3259 = vmatmul.msk.f32.vlgmr.msra.gmra.mxu1 %vm415_vm1, %v398_v8  ;;  %v401_v11 = vld [vmem:[%s3919_s17 + $0x18] sm:$0xff]  ;;  %v402_v13 = vld [vmem:[%s3919_s17 + $0x20] sm:$0xff]  ;;  %v403_v26 = vld [vmem:[%s3919_s17 + $0x28] sm:$0xff] }
  0x21   : > { %3269 = vmatmul.msk.f32.vlgmr.msra.gmra.mxu2 %vm415_vm1, %v398_v8  ;;  %3279 = vmatmul.msk.f32.vlgmr.msra.gmra.mxu3 %vm415_vm1, %v398_v8  ;;  %v1052_v18 = vld [vmem:[#allocation4 + $0x1c0] sm:$0xff]  ;;  %v404_v39 = vld [vmem:[%s3919_s17 + $0x30] sm:$0xff]  ;;  %v405_v52 = vld [vmem:[%s3919_s17 + $0x38] sm:$0xff]  ;;  %s4740_s10 = scalar_lea.vmem (%p3870_p4), %s5049_s6, %s3331_s22  }
  0x22   : > { %v1244_v19 = vld [vmem:[#allocation4 + $0x7c0] sm:$0xff]  ;;  %1253 = vmatpush.msrb.mxu0 %v1052_v18  ;;  %v1185_v17 = vld [vmem:[#allocation4 + $0x5e8] sm:$0xff] }
  0x23   : > { %v1116_v20 = vld [vmem:[#allocation4 + $0x3c0] sm:$0xff]  ;;  %1385 = vmatpush.msrb.mxu3 %v1244_v19  ;;  %v1057_v18 = vld [vmem:[#allocation4 + $0x1e8] sm:$0xff] }
  0x24   : > { %v1176_v21 = vld [vmem:[#allocation4 + $0x5a0] sm:$0xff]  ;;  %1297 = vmatpush.msrb.mxu1 %v1116_v20  ;;  %v1249_v19 = vld [vmem:[#allocation4 + $0x7e8] sm:$0xff] }
  0x25   : > { %v1048_v22 = vld [vmem:[#allocation4 + $0x1a0] sm:$0xff]  ;;  %1342 = vmatpush.msrb.mxu2 %v1176_v21  ;;  %v1121_v20 = vld [vmem:[#allocation4 + $0x3e8] sm:$0xff] }
  0x26   : > { %v1240_v23 = vld [vmem:[#allocation4 + $0x7a0] sm:$0xff]  ;;  %1254 = vmatpush.msrb.mxu0 %v1048_v22  ;;  %v1181_v21 = vld [vmem:[#allocation4 + $0x5c8] sm:$0xff] }
  0x27   : > { %v1112_v24 = vld [vmem:[#allocation4 + $0x3a0] sm:$0xff]  ;;  %1386 = vmatpush.msrb.mxu3 %v1240_v23  ;;  %v1053_v22 = vld [vmem:[#allocation4 + $0x1c8] sm:$0xff] }
  0x28   : > { %3250 = vmatmul.msk.f32.gmra.mxu0 %vm415_vm1, %v399_v9  ;;  %3260 = vmatmul.msk.f32.gmra.mxu1 %vm415_vm1, %v399_v9  ;;  %v1172_v25 = vld [vmem:[#allocation4 + $0x580] sm:$0xff]  ;;  %v1245_v23 = vld [vmem:[#allocation4 + $0x7c8] sm:$0xff] }
  0x29   : > { %3270 = vmatmul.msk.f32.gmra.mxu2 %vm415_vm1, %v399_v9  ;;  %3280 = vmatmul.msk.f32.gmra.mxu3 %vm415_vm1, %v399_v9  ;;  %v1044_v27 = vld [vmem:[#allocation4 + $0x180] sm:$0xff] }
  0x2a   : > { %1298 = vmatpush.msrb.mxu1 %v1112_v24  ;;  %1343 = vmatpush.msrb.mxu2 %v1172_v25  ;;  %v1236_v28 = vld [vmem:[#allocation4 + $0x780] sm:$0xff]  ;;  %v1117_v24 = vld [vmem:[#allocation4 + $0x3c8] sm:$0xff] }
  0x2b   : > { %v1108_v29 = vld [vmem:[#allocation4 + $0x380] sm:$0xff]  ;;  %1255 = vmatpush.msrb.mxu0 %v1044_v27  ;;  %1387 = vmatpush.msrb.mxu3 %v1236_v28  ;;  %v1177_v25 = vld [vmem:[#allocation4 + $0x5a8] sm:$0xff] }
  0x2c   : > { %v1168_v30 = vld [vmem:[#allocation4 + $0x560] sm:$0xff]  ;;  %1299 = vmatpush.msrb.mxu1 %v1108_v29  ;;  %v1241_v27 = vld [vmem:[#allocation4 + $0x7a8] sm:$0xff] }
  0x2d   : > { %v1040_v31 = vld [vmem:[#allocation4 + $0x160] sm:$0xff]  ;;  %1344 = vmatpush.msrb.mxu2 %v1168_v30  ;;  %v1113_v28 = vld [vmem:[#allocation4 + $0x3a8] sm:$0xff] }
  0x2e   : > { %v1232_v32 = vld [vmem:[#allocation4 + $0x760] sm:$0xff]  ;;  %1256 = vmatpush.msrb.mxu0 %v1040_v31  ;;  %v1173_v29 = vld [vmem:[#allocation4 + $0x588] sm:$0xff] }
  0x2f   : > { %v1104_v33 = vld [vmem:[#allocation4 + $0x360] sm:$0xff]  ;;  %1388 = vmatpush.msrb.mxu3 %v1232_v32  ;;  %v1045_v30 = vld [vmem:[#allocation4 + $0x188] sm:$0xff] }
  0x30   : > { %3251 = vmatmul.msk.f32.gmra.mxu0 %vm415_vm1, %v400_v10  ;;  %3261 = vmatmul.msk.f32.gmra.mxu1 %vm415_vm1, %v400_v10  ;;  %v1164_v34 = vld [vmem:[#allocation4 + $0x540] sm:$0xff]  ;;  %v1237_v31 = vld [vmem:[#allocation4 + $0x788] sm:$0xff] }
  0x31   : > { %3271 = vmatmul.msk.f32.gmra.mxu2 %vm415_vm1, %v400_v10  ;;  %3281 = vmatmul.msk.f32.gmra.mxu3 %vm415_vm1, %v400_v10  ;;  %v1036_v35 = vld [vmem:[#allocation4 + $0x140] sm:$0xff]  ;;  %v1109_v32 = vld [vmem:[#allocation4 + $0x388] sm:$0xff] }
  0x32   : > { %v1228_v36 = vld [vmem:[#allocation4 + $0x740] sm:$0xff]  ;;  %1300 = vmatpush.msrb.mxu1 %v1104_v33  ;;  %1345 = vmatpush.msrb.mxu2 %v1164_v34  ;;  %v1169_v33 = vld [vmem:[#allocation4 + $0x568] sm:$0xff] }
  0x33   : > { %v1100_v37 = vld [vmem:[#allocation4 + $0x340] sm:$0xff]  ;;  %1257 = vmatpush.msrb.mxu0 %v1036_v35  ;;  %1389 = vmatpush.msrb.mxu3 %v1228_v36  ;;  %v1041_v34 = vld [vmem:[#allocation4 + $0x168] sm:$0xff] }
  0x34   : > { %v1160_v38 = vld [vmem:[#allocation4 + $0x520] sm:$0xff]  ;;  %1301 = vmatpush.msrb.mxu1 %v1100_v37  ;;  %v1233_v35 = vld [vmem:[#allocation4 + $0x768] sm:$0xff] }
  0x35   : > { %1346 = vmatpush.msrb.mxu2 %v1160_v38  ;;  %v1032_v40 = vld [vmem:[#allocation4 + $0x120] sm:$0xff] }
  0x36   : > { %v1224_v41 = vld [vmem:[#allocation4 + $0x720] sm:$0xff]  ;;  %1258 = vmatpush.msrb.mxu0 %v1032_v40  ;;  %v1105_v40 = vld [vmem:[#allocation4 + $0x368] sm:$0xff] }
  0x37   : > { %v1096_v42 = vld [vmem:[#allocation4 + $0x320] sm:$0xff]  ;;  %1390 = vmatpush.msrb.mxu3 %v1224_v41  ;;  %v1165_v41 = vld [vmem:[#allocation4 + $0x548] sm:$0xff] }
  0x38   : > { %3252 = vmatmul.msk.f32.gmra.mxu0 %vm415_vm1, %v401_v11  ;;  %3262 = vmatmul.msk.f32.gmra.mxu1 %vm415_vm1, %v401_v11  ;;  %v1156_v43 = vld [vmem:[#allocation4 + $0x500] sm:$0xff] }
  0x39   : > { %3272 = vmatmul.msk.f32.gmra.mxu2 %vm415_vm1, %v401_v11  ;;  %3282 = vmatmul.msk.f32.gmra.mxu3 %vm415_vm1, %v401_v11  ;;  %v1028_v44 = vld [vmem:[#allocation4 + $0x100] sm:$0xff] }
  0x3a   : > { %v1220_v45 = vld [vmem:[#allocation4 + $0x700] sm:$0xff]  ;;  %1302 = vmatpush.msrb.mxu1 %v1096_v42  ;;  %1347 = vmatpush.msrb.mxu2 %v1156_v43  ;;  %v1037_v42 = vld [vmem:[#allocation4 + $0x148] sm:$0xff] }
  0x3b   : > { %v1092_v46 = vld [vmem:[#allocation4 + $0x300] sm:$0xff]  ;;  %1259 = vmatpush.msrb.mxu0 %v1028_v44  ;;  %1391 = vmatpush.msrb.mxu3 %v1220_v45  ;;  %v1229_v43 = vld [vmem:[#allocation4 + $0x748] sm:$0xff] }
  0x3c   : > { %v1152_v47 = vld [vmem:[#allocation4 + $0x4e0] sm:$0xff]  ;;  %1303 = vmatpush.msrb.mxu1 %v1092_v46  ;;  %v1101_v44 = vld [vmem:[#allocation4 + $0x348] sm:$0xff] }
  0x3d   : > { %v1024_v48 = vld [vmem:[#allocation4 + $0xe0] sm:$0xff]  ;;  %1348 = vmatpush.msrb.mxu2 %v1152_v47  ;;  %v1161_v45 = vld [vmem:[#allocation4 + $0x528] sm:$0xff] }
  0x3e   : > { %v1216_v49 = vld [vmem:[#allocation4 + $0x6e0] sm:$0xff]  ;;  %1260 = vmatpush.msrb.mxu0 %v1024_v48 }
  0x3f   : > { %v1088_v50 = vld [vmem:[#allocation4 + $0x2e0] sm:$0xff]  ;;  %1392 = vmatpush.msrb.mxu3 %v1216_v49 }
  0x40   : > { %3253 = vmatmul.msk.f32.gmra.mxu0 %vm415_vm1, %v402_v13  ;;  %3263 = vmatmul.msk.f32.gmra.mxu1 %vm415_vm1, %v402_v13  ;;  %v1148_v51 = vld [vmem:[#allocation4 + $0x4c0] sm:$0xff] }
  0x41   : > { %3273 = vmatmul.msk.f32.gmra.mxu2 %vm415_vm1, %v402_v13  ;;  %3283 = vmatmul.msk.f32.gmra.mxu3 %vm415_vm1, %v402_v13  ;;  %v1020_v53 = vld [vmem:[#allocation4 + $0xc0] sm:$0xff] }
  0x42   : > { %1304 = vmatpush.msrb.mxu1 %v1088_v50  ;;  %1349 = vmatpush.msrb.mxu2 %v1148_v51  ;;  %v1212_v54 = vld [vmem:[#allocation4 + $0x6c0] sm:$0xff] }
  0x43   : > { %v1084_v55 = vld [vmem:[#allocation4 + $0x2c0] sm:$0xff]  ;;  %1261 = vmatpush.msrb.mxu0 %v1020_v53  ;;  %1393 = vmatpush.msrb.mxu3 %v1212_v54  ;;  %v1033_v54 = vld [vmem:[#allocation4 + $0x128] sm:$0xff] }
  0x44   : > { %v1144_v56 = vld [vmem:[#allocation4 + $0x4a0] sm:$0xff]  ;;  %1305 = vmatpush.msrb.mxu1 %v1084_v55  ;;  %v1225_v55 = vld [vmem:[#allocation4 + $0x728] sm:$0xff] }
  0x45   : > { %v1016_v57 = vld [vmem:[#allocation4 + $0xa0] sm:$0xff]  ;;  %1350 = vmatpush.msrb.mxu2 %v1144_v56  ;;  %v1097_v56 = vld [vmem:[#allocation4 + $0x328] sm:$0xff] }
  0x46   : > { %v1208_v58 = vld [vmem:[#allocation4 + $0x6a0] sm:$0xff]  ;;  %1262 = vmatpush.msrb.mxu0 %v1016_v57  ;;  %v1157_v57 = vld [vmem:[#allocation4 + $0x508] sm:$0xff] }
  0x47   : > { %v1080_v59 = vld [vmem:[#allocation4 + $0x2a0] sm:$0xff]  ;;  %1394 = vmatpush.msrb.mxu3 %v1208_v58  ;;  %v1029_v58 = vld [vmem:[#allocation4 + $0x108] sm:$0xff] }
  0x48   : > { %3254 = vmatmul.msk.f32.gmra.mxu0 %vm415_vm1, %v403_v26  ;;  %3264 = vmatmul.msk.f32.gmra.mxu1 %vm415_vm1, %v403_v26  ;;  %v1140_v60 = vld [vmem:[#allocation4 + $0x480] sm:$0xff] }
  0x49   : > { %3274 = vmatmul.msk.f32.gmra.mxu2 %vm415_vm1, %v403_v26  ;;  %3284 = vmatmul.msk.f32.gmra.mxu3 %vm415_vm1, %v403_v26  ;;  %v1012_v61 = vld [vmem:[#allocation4 + $0x80] sm:$0xff]  ;;  %v1049_v26 = vld [vmem:[#allocation4 + $0x1a8] sm:$0xff] }
  0x4a   : > { %v1204_v62 = vld [vmem:[#allocation4 + $0x680] sm:$0xff]  ;;  %1306 = vmatpush.msrb.mxu1 %v1080_v59  ;;  %1351 = vmatpush.msrb.mxu2 %v1140_v60  ;;  %v1221_v59 = vld [vmem:[#allocation4 + $0x708] sm:$0xff] }
  0x4b   : > { %v1076_v63 = vld [vmem:[#allocation4 + $0x280] sm:$0xff]  ;;  %1263 = vmatpush.msrb.mxu0 %v1012_v61  ;;  %1395 = vmatpush.msrb.mxu3 %v1204_v62  ;;  %v1093_v60 = vld [vmem:[#allocation4 + $0x308] sm:$0xff] }
  0x4c   : > { %v1136_v0 = vld [vmem:[#allocation4 + $0x460] sm:$0xff]  ;;  %1307 = vmatpush.msrb.mxu1 %v1076_v63  ;;  %v1153_v61 = vld [vmem:[#allocation4 + $0x4e8] sm:$0xff] }
  0x4d   : > { %v406_v1 = vld [vmem:[%s3919_s17 + $0x40] sm:$0xff]  ;;  %1352 = vmatpush.msrb.mxu2 %v1136_v0 }
  0x4e   : > { %v1008_v2 = vld [vmem:[#allocation4 + $0x60] sm:$0xff] }
  0x4f   : > { %v1200_v3 = vld [vmem:[#allocation4 + $0x660] sm:$0xff]  ;;  %1264 = vmatpush.msrb.mxu0 %v1008_v2 }
  0x50   : > { %3255 = vmatmul.msk.f32.gmra.mxu0 %vm415_vm1, %v404_v39  ;;  %3265 = vmatmul.msk.f32.gmra.mxu1 %vm415_vm1, %v404_v39  ;;  %v1072_v4 = vld [vmem:[#allocation4 + $0x260] sm:$0xff] }
  0x51   : > { %3275 = vmatmul.msk.f32.gmra.mxu2 %vm415_vm1, %v404_v39  ;;  %3285 = vmatmul.msk.f32.gmra.mxu3 %vm415_vm1, %v404_v39  ;;  %v1132_v5 = vld [vmem:[#allocation4 + $0x440] sm:$0xff] }
  0x52   : > { %v1004_v6 = vld [vmem:[#allocation4 + $0x40] sm:$0xff]  ;;  %1396 = vmatpush.msrb.mxu3 %v1200_v3  ;;  %1308 = vmatpush.msrb.mxu1 %v1072_v4 }
  0x53   : > { %v1196_v7 = vld [vmem:[#allocation4 + $0x640] sm:$0xff]  ;;  %1353 = vmatpush.msrb.mxu2 %v1132_v5  ;;  %1265 = vmatpush.msrb.mxu0 %v1004_v6  ;;  %v1025_v6 = vld [vmem:[#allocation4 + $0xe8] sm:$0xff] }
  0x54   : > { %v1068_v8 = vld [vmem:[#allocation4 + $0x240] sm:$0xff]  ;;  %1397 = vmatpush.msrb.mxu3 %v1196_v7  ;;  %v1217_v7 = vld [vmem:[#allocation4 + $0x6e8] sm:$0xff] }
  0x55   : > { %1309 = vmatpush.msrb.mxu1 %v1068_v8  ;;  %v1000_v9 = vld [vmem:[#allocation4 + $0x20] sm:$0xff]  ;;  %v1089_v8 = vld [vmem:[#allocation4 + $0x2e8] sm:$0xff] }
  0x56   : > { %v1064_v10 = vld [vmem:[#allocation4 + $0x220] sm:$0xff]  ;;  %1266 = vmatpush.msrb.mxu0 %v1000_v9  ;;  %v1149_v9 = vld [vmem:[#allocation4 + $0x4c8] sm:$0xff] }
  0x57   : > { %1310 = vmatpush.msrb.mxu1 %v1064_v10  ;;  %v996_v11 = vld [vmem:[#allocation4] sm:$0xff]  ;;  %v1021_v10 = vld [vmem:[#allocation4 + $0xc8] sm:$0xff] }
  0x58   : > { %3256 = vmatmul.msk.f32.gmra.mxu0 %vm415_vm1, %v405_v52  ;;  %3266 = vmatmul.msk.f32.gmra.mxu1 %vm415_vm1, %v405_v52  ;;  %v1060_v12 = vld [vmem:[#allocation4 + $0x200] sm:$0xff] }
  0x59   : > { %3276 = vmatmul.msk.f32.gmra.mxu2 %vm415_vm1, %v405_v52  ;;  %3286 = vmatmul.msk.f32.gmra.mxu3 %vm415_vm1, %v405_v52  ;;  %v1128_v13 = vld [vmem:[#allocation4 + $0x420] sm:$0xff] }
  0x5a   : > { %1267 = vmatpush.msrb.mxu0 %v996_v11  ;;  %1311 = vmatpush.msrb.mxu1 %v1060_v12  ;;  %v1192_v14 = vld [vmem:[#allocation4 + $0x620] sm:$0xff]  ;;  %v1213_v11 = vld [vmem:[#allocation4 + $0x6c8] sm:$0xff] }
  0x5b   : > { %v1124_v15 = vld [vmem:[#allocation4 + $0x400] sm:$0xff]  ;;  %1354 = vmatpush.msrb.mxu2 %v1128_v13  ;;  %1398 = vmatpush.msrb.mxu3 %v1192_v14 }
  0x5c   : > { %v1188_v16 = vld [vmem:[#allocation4 + $0x600] sm:$0xff]  ;;  %1428 = vmatpush.msra.mxu0 %v1057_v18  ;;  %1472 = vmatpush.msra.mxu1 %v1121_v20  ;;  %v1085_v20 = vld [vmem:[#allocation4 + $0x2c8] sm:$0xff] }
  0x5d   : > { %1355 = vmatpush.msrb.mxu2 %v1124_v15  ;;  %1399 = vmatpush.msrb.mxu3 %v1188_v16 }
  0x5e   : > { %1429 = vmatpush.msra.mxu0 %v1053_v22  ;;  %1473 = vmatpush.msra.mxu1 %v1117_v24  ;;  %v1017_v22 = vld [vmem:[#allocation4 + $0xa8] sm:$0xff] }
  0x5f   : > { %1516 = vmatpush.msra.mxu2 %v1185_v17  ;;  %1560 = vmatpush.msra.mxu3 %v1249_v19  ;;  %v1081_v24 = vld [vmem:[#allocation4 + $0x2a8] sm:$0xff] }
  0x60   : > { %3257 = vmatmul.msk.f32.gmra.mxu0 %vm415_vm1, %v406_v1  ;;  %3267 = vmatmul.msk.f32.gmra.mxu1 %vm415_vm1, %v406_v1 }
  0x61   : > { %3277 = vmatmul.msk.f32.gmra.mxu2 %vm415_vm1, %v406_v1  ;;  %3287 = vmatmul.msk.f32.gmra.mxu3 %vm415_vm1, %v406_v1 }
  0x62   : > { %1517 = vmatpush.msra.mxu2 %v1181_v21  ;;  %1561 = vmatpush.msra.mxu3 %v1245_v23  ;;  %v1145_v21 = vld [vmem:[#allocation4 + $0x4a8] sm:$0xff] }
  0x63   : > { %1430 = vmatpush.msra.mxu0 %v1049_v26  ;;  %1474 = vmatpush.msra.mxu1 %v1113_v28  ;;  %v1209_v23 = vld [vmem:[#allocation4 + $0x6a8] sm:$0xff] }
  0x64   : > { %1518 = vmatpush.msra.mxu2 %v1177_v25  ;;  %1562 = vmatpush.msra.mxu3 %v1241_v27  ;;  %v1141_v25 = vld [vmem:[#allocation4 + $0x488] sm:$0xff] }
  0x65   : > { %1431 = vmatpush.msra.mxu0 %v1045_v30  ;;  %1475 = vmatpush.msra.mxu1 %v1109_v32  ;;  %v1013_v26 = vld [vmem:[#allocation4 + $0x88] sm:$0xff] }
  0x66   : > { %1519 = vmatpush.msra.mxu2 %v1173_v29  ;;  %1563 = vmatpush.msra.mxu3 %v1237_v31  ;;  %v1205_v27 = vld [vmem:[#allocation4 + $0x688] sm:$0xff] }
  0x67   : > { %1432 = vmatpush.msra.mxu0 %v1041_v34  ;;  %1476 = vmatpush.msra.mxu1 %v1105_v40  ;;  %v1009_v40 = vld [vmem:[#allocation4 + $0x68] sm:$0xff] }
  0x68   : > { %1520 = vmatpush.msra.mxu2 %v1169_v33  ;;  %1564 = vmatpush.msra.mxu3 %v1233_v35 }
  0x69   : > { %1433 = vmatpush.msra.mxu0 %v1037_v42  ;;  %1477 = vmatpush.msra.mxu1 %v1101_v44  ;;  %v1201_v42 = vld [vmem:[#allocation4 + $0x668] sm:$0xff] }
  0x6a   : > { %1521 = vmatpush.msra.mxu2 %v1165_v41  ;;  %1565 = vmatpush.msra.mxu3 %v1229_v43  ;;  %v1073_v41 = vld [vmem:[#allocation4 + $0x268] sm:$0xff] }
  0x6b   : > { %1434 = vmatpush.msra.mxu0 %v1033_v54  ;;  %1478 = vmatpush.msra.mxu1 %v1097_v56  ;;  %v1133_v43 = vld [vmem:[#allocation4 + $0x448] sm:$0xff] }
  0x6c   : > { %1522 = vmatpush.msra.mxu2 %v1161_v45  ;;  %1566 = vmatpush.msra.mxu3 %v1225_v55  ;;  %v1005_v44 = vld [vmem:[#allocation4 + $0x48] sm:$0xff] }
  0x6d   : > { %1435 = vmatpush.msra.mxu0 %v1029_v58  ;;  %1479 = vmatpush.msra.mxu1 %v1093_v60  ;;  %v1069_v45 = vld [vmem:[#allocation4 + $0x248] sm:$0xff] }
  0x6e   : > { %1523 = vmatpush.msra.mxu2 %v1157_v57  ;;  %1567 = vmatpush.msra.mxu3 %v1221_v59  ;;  %v1001_v56 = vld [vmem:[#allocation4 + $0x28] sm:$0xff] }
  0x6f   : > { %1436 = vmatpush.msra.mxu0 %v1025_v6  ;;  %1480 = vmatpush.msra.mxu1 %v1089_v8  ;;  %v1065_v59 = vld [vmem:[#allocation4 + $0x228] sm:$0xff] }
  0x70   : > { %1524 = vmatpush.msra.mxu2 %v1153_v61  ;;  %1568 = vmatpush.msra.mxu3 %v1217_v7  ;;  %v997_v60 = vld [vmem:[#allocation4 + $0x8] sm:$0xff] }
  0x71   : > { %1437 = vmatpush.msra.mxu0 %v1021_v10  ;;  %1481 = vmatpush.msra.mxu1 %v1085_v20  ;;  %v1061_v61 = vld [vmem:[#allocation4 + $0x208] sm:$0xff]  ;;  %v1058_v20 = vld [vmem:[#allocation4 + $0x1f0] sm:$0xff] }
  0x72   : > { %1525 = vmatpush.msra.mxu2 %v1149_v9  ;;  %1569 = vmatpush.msra.mxu3 %v1213_v11  ;;  %v1189_v6 = vld [vmem:[#allocation4 + $0x608] sm:$0xff] }
  0x73   : > { %1438 = vmatpush.msra.mxu0 %v1017_v22  ;;  %1482 = vmatpush.msra.mxu1 %v1081_v24  ;;  %v1122_v22 = vld [vmem:[#allocation4 + $0x3f0] sm:$0xff] }
  0x74   : > { %1526 = vmatpush.msra.mxu2 %v1145_v21  ;;  %1570 = vmatpush.msra.mxu3 %v1209_v23  ;;  %v1250_v21 = vld [vmem:[#allocation4 + $0x7f0] sm:$0xff] }
  0x75   : > { %1439 = vmatpush.msra.mxu0 %v1013_v26  ;;  %v1182_v23 = vld [vmem:[#allocation4 + $0x5d0] sm:$0xff] }
  0x76   : > { %1527 = vmatpush.msra.mxu2 %v1141_v25  ;;  %1571 = vmatpush.msra.mxu3 %v1205_v27  ;;  %v1054_v24 = vld [vmem:[#allocation4 + $0x1d0] sm:$0xff] }
  0x77   : > { %1440 = vmatpush.msra.mxu0 %v1009_v40  ;;  %v1246_v25 = vld [vmem:[#allocation4 + $0x7d0] sm:$0xff] }
  0x78   : > { %1572 = vmatpush.msra.mxu3 %v1201_v42  ;;  %v1118_v40 = vld [vmem:[#allocation4 + $0x3d0] sm:$0xff] }
  0x79   : > { %1441 = vmatpush.msra.mxu0 %v1005_v44  ;;  %v1050_v42 = vld [vmem:[#allocation4 + $0x1b0] sm:$0xff] }
  0x7a   : > { %v1114_v44 = vld [vmem:[#allocation4 + $0x3b0] sm:$0xff] }
  0x7b   : > { %1442 = vmatpush.msra.mxu0 %v1001_v56 }
  0x7d   : > { %1443 = vmatpush.msra.mxu0 %v997_v60 }
  0x9d   : > { %v473_v36 = vpop.f32.mrf.mxu0  ;;  %v517_v37 = vpop.f32.mrf.mxu1 }
  0x9e   : > { %v3984_v38 = vmax.f32 %v473_v36, 0.0  ;;  %v3986_v39 = vmax.f32 %v517_v37, 0.0  ;;  %v1077_v36 = vld [vmem:[#allocation4 + $0x288] sm:$0xff] }
  0x9f   : > { %v1137_v37 = vld [vmem:[#allocation4 + $0x468] sm:$0xff]  ;;  %1483 = vmatpush.msra.mxu1 %v1077_v36 }
  0xa0   : > { %668 = vst [vmem:[%s3989_s24] sm:$0xff] %v3984_v38  ;;  %1268 = vmatmul.f32.vlgmr.msrb.gmra.mxu0 %v3984_v38  ;;  %1312 = vmatmul.f32.vlgmr.msrb.gmra.mxu1 %v3986_v39 }
  0xa1   : > { %669 = vst [vmem:[%s3989_s24 + $0x8] sm:$0xff] %v3986_v39  ;;  %1528 = vmatpush.msra.mxu2 %v1137_v37  ;;  %1484 = vmatpush.msra.mxu1 %v1073_v41  ;;  %v1178_v41 = vld [vmem:[#allocation4 + $0x5b0] sm:$0xff] }
  0xa2   : > { %1604 = vmatpush.msrb.mxu0 %v1058_v20 }
  0xa3   : > { %1529 = vmatpush.msra.mxu2 %v1133_v43  ;;  %1485 = vmatpush.msra.mxu1 %v1069_v45  ;;  %v1242_v43 = vld [vmem:[#allocation4 + $0x7b0] sm:$0xff] }
  0xa4   : > { %v561_v46 = vpop.f32.mrf.mxu2  ;;  %v605_v47 = vpop.f32.mrf.mxu3  ;;  %1605 = vmatpush.msrb.mxu0 %v1054_v24  ;;  %v1174_v45 = vld [vmem:[#allocation4 + $0x590] sm:$0xff] }
  0xa5   : > { %v3997_v48 = vmax.f32 %v561_v46, 0.0  ;;  %v3999_v49 = vmax.f32 %v605_v47, 0.0  ;;  %v476_v50 = vpop.f32.mrf.mxu0  ;;  %v520_v51 = vpop.f32.mrf.mxu1  ;;  %1486 = vmatpush.msra.mxu1 %v1065_v59  ;;  %v1102_v24 = vld [vmem:[#allocation4 + $0x350] sm:$0xff] }
  0xa6   : > { %v4001_v52 = vmax.f32 %v476_v50, 0.0  ;;  %v4003_v53 = vmax.f32 %v520_v51, 0.0  ;;  %1606 = vmatpush.msrb.mxu0 %v1050_v42  ;;  %v1094_v42 = vld [vmem:[#allocation4 + $0x310] sm:$0xff] }
  0xa7   : > { %670 = vst [vmem:[%s3989_s24 + $0x10] sm:$0xff] %v3997_v48  ;;  %1356 = vmatmul.f32.vlgmr.msrb.gmra.mxu2 %v3997_v48  ;;  %1400 = vmatmul.f32.vlgmr.msrb.gmra.mxu3 %v3999_v49 }
  0xa8   : > { %671 = vst [vmem:[%s3989_s24 + $0x18] sm:$0xff] %v3999_v49  ;;  %1271 = vmatmul.f32.gmra.mxu0 %v4001_v52  ;;  %1315 = vmatmul.f32.gmra.mxu1 %v4003_v53 }
  0xa9   : > { %672 = vst [vmem:[%s3989_s24 + $0x20] sm:$0xff] %v4001_v52  ;;  %1487 = vmatpush.msra.mxu1 %v1061_v61 }
  0xaa   : > { %673 = vst [vmem:[%s3989_s24 + $0x28] sm:$0xff] %v4003_v53 }
  0xab   : > { %1648 = vmatpush.msrb.mxu1 %v1122_v22  ;;  %v1038_v22 = vld [vmem:[#allocation4 + $0x150] sm:$0xff] }
  0xac   : > { %v564_v62 = vpop.f32.mrf.mxu2  ;;  %v608_v63 = vpop.f32.mrf.mxu3 }
  0xad   : > { %v4017_v0 = vmax.f32 %v564_v62, 0.0  ;;  %v4019_v1 = vmax.f32 %v608_v63, 0.0  ;;  %v479_v2 = vpop.f32.mrf.mxu0  ;;  %v523_v3 = vpop.f32.mrf.mxu1  ;;  %v1197_v62 = vld [vmem:[#allocation4 + $0x648] sm:$0xff]  ;;  %1649 = vmatpush.msrb.mxu1 %v1118_v40  ;;  %v1030_v40 = vld [vmem:[#allocation4 + $0x110] sm:$0xff] }
  0xae   : > { %v4021_v4 = vmax.f32 %v479_v2, 0.0  ;;  %v4023_v5 = vmax.f32 %v523_v3, 0.0  ;;  %v1129_v63 = vld [vmem:[#allocation4 + $0x428] sm:$0xff]  ;;  %1573 = vmatpush.msra.mxu3 %v1197_v62  ;;  %v1046_v62 = vld [vmem:[#allocation4 + $0x190] sm:$0xff] }
  0xaf   : > { %674 = vst [vmem:[%s3989_s24 + $0x30] sm:$0xff] %v4017_v0  ;;  %1359 = vmatmul.f32.gmra.mxu2 %v4017_v0  ;;  %1403 = vmatmul.f32.gmra.mxu3 %v4019_v1  ;;  %v1193_v2 = vld [vmem:[#allocation4 + $0x628] sm:$0xff] }
  0xb0   : > { %675 = vst [vmem:[%s3989_s24 + $0x38] sm:$0xff] %v4019_v1  ;;  %1274 = vmatmul.f32.gmra.mxu0 %v4021_v4  ;;  %1318 = vmatmul.f32.gmra.mxu1 %v4023_v5  ;;  %v1125_v3 = vld [vmem:[#allocation4 + $0x408] sm:$0xff] }
  0xb1   : > { %676 = vst [vmem:[%s3989_s24 + $0x40] sm:$0xff] %v4021_v4  ;;  %1530 = vmatpush.msra.mxu2 %v1129_v63  ;;  %1574 = vmatpush.msra.mxu3 %v1193_v2  ;;  %v1238_v63 = vld [vmem:[#allocation4 + $0x790] sm:$0xff] }
  0xb2   : > { %677 = vst [vmem:[%s3989_s24 + $0x48] sm:$0xff] %v4023_v5  ;;  %1650 = vmatpush.msrb.mxu1 %v1114_v44  ;;  %v1110_v2 = vld [vmem:[#allocation4 + $0x390] sm:$0xff]  ;;  %1607 = vmatpush.msrb.mxu0 %v1046_v62 }
  0xb3   : > { %1531 = vmatpush.msra.mxu2 %v1125_v3  ;;  %1575 = vmatpush.msra.mxu3 %v1189_v6  ;;  %v1170_v3 = vld [vmem:[#allocation4 + $0x570] sm:$0xff] }
  0xb4   : > { %v567_v12 = vpop.f32.mrf.mxu2  ;;  %v611_v13 = vpop.f32.mrf.mxu3  ;;  %v1042_v6 = vld [vmem:[#allocation4 + $0x170] sm:$0xff]  ;;  %1651 = vmatpush.msrb.mxu1 %v1110_v2 }
  0xb5   : > { %v4037_v14 = vmax.f32 %v567_v12, 0.0  ;;  %v4039_v15 = vmax.f32 %v611_v13, 0.0  ;;  %v482_v16 = vpop.f32.mrf.mxu0  ;;  %v526_v17 = vpop.f32.mrf.mxu1  ;;  %1736 = vmatpush.msrb.mxu3 %v1250_v21  ;;  %1608 = vmatpush.msrb.mxu0 %v1042_v6  ;;  %v1026_v44 = vld [vmem:[#allocation4 + $0xf0] sm:$0xff] }
  0xb6   : > { %v4041_v18 = vmax.f32 %v482_v16, 0.0  ;;  %v4043_v19 = vmax.f32 %v526_v17, 0.0  ;;  %v1186_v17 = vld [vmem:[#allocation4 + $0x5f0] sm:$0xff] }
  0xb7   : > { %678 = vst [vmem:[%s3989_s24 + $0x50] sm:$0xff] %v4037_v14  ;;  %1362 = vmatmul.f32.gmra.mxu2 %v4037_v14  ;;  %1406 = vmatmul.f32.gmra.mxu3 %v4039_v15  ;;  %v1086_v62 = vld [vmem:[#allocation4 + $0x2d0] sm:$0xff] }
  0xb8   : > { %679 = vst [vmem:[%s3989_s24 + $0x58] sm:$0xff] %v4039_v15  ;;  %1277 = vmatmul.f32.gmra.mxu0 %v4041_v18  ;;  %1321 = vmatmul.f32.gmra.mxu1 %v4043_v19  ;;  %v1018_v2 = vld [vmem:[#allocation4 + $0xb0] sm:$0xff] }
  0xb9   : > { %680 = vst [vmem:[%s3989_s24 + $0x60] sm:$0xff] %v4041_v18  ;;  %1692 = vmatpush.msrb.mxu2 %v1186_v17  ;;  %1737 = vmatpush.msrb.mxu3 %v1246_v25  ;;  %v1162_v25 = vld [vmem:[#allocation4 + $0x530] sm:$0xff] }
  0xba   : > { %681 = vst [vmem:[%s3989_s24 + $0x68] sm:$0xff] %v4043_v19  ;;  %1609 = vmatpush.msrb.mxu0 %v1038_v22  ;;  %v1082_v6 = vld [vmem:[#allocation4 + $0x2b0] sm:$0xff] }
  0xbb   : > { %1693 = vmatpush.msrb.mxu2 %v1182_v23  ;;  %1738 = vmatpush.msrb.mxu3 %v1242_v43  ;;  %v1230_v23 = vld [vmem:[#allocation4 + $0x750] sm:$0xff] }
  0xbc   : > { %v570_v28 = vpop.f32.mrf.mxu2  ;;  %v614_v29 = vpop.f32.mrf.mxu3  ;;  %v1154_v43 = vld [vmem:[#allocation4 + $0x4f0] sm:$0xff] }
  0xbd   : > { %v4057_v30 = vmax.f32 %v570_v28, 0.0  ;;  %v4059_v31 = vmax.f32 %v614_v29, 0.0  ;;  %v485_v32 = vpop.f32.mrf.mxu0  ;;  %v529_v33 = vpop.f32.mrf.mxu1  ;;  %1694 = vmatpush.msrb.mxu2 %v1178_v41  ;;  %1739 = vmatpush.msrb.mxu3 %v1238_v63  ;;  %v1222_v41 = vld [vmem:[#allocation4 + $0x710] sm:$0xff] }
  0xbe   : > { %v4061_v34 = vmax.f32 %v485_v32, 0.0  ;;  %v4063_v35 = vmax.f32 %v529_v33, 0.0  ;;  %v1146_v63 = vld [vmem:[#allocation4 + $0x4b0] sm:$0xff] }
  0xbf   : > { %682 = vst [vmem:[%s3989_s24 + $0x70] sm:$0xff] %v4057_v30  ;;  %1365 = vmatmul.f32.gmra.mxu2 %v4057_v30  ;;  %1409 = vmatmul.f32.gmra.mxu3 %v4059_v31  ;;  %v1010_v22 = vld [vmem:[#allocation4 + $0x70] sm:$0xff] }
  0xc0   : > { %683 = vst [vmem:[%s3989_s24 + $0x78] sm:$0xff] %v4059_v31  ;;  %1280 = vmatmul.f32.gmra.mxu0 %v4061_v34  ;;  %1324 = vmatmul.f32.gmra.mxu1 %v4063_v35 }
  0xc1   : > { %684 = vst [vmem:[%s3989_s24 + $0x80] sm:$0xff] %v4061_v34  ;;  %1695 = vmatpush.msrb.mxu2 %v1174_v45  ;;  %v1218_v45 = vld [vmem:[#allocation4 + $0x6f0] sm:$0xff] }
  0xc2   : > { %685 = vst [vmem:[%s3989_s24 + $0x88] sm:$0xff] %v4063_v35 }
  0xc3   : > { %1696 = vmatpush.msrb.mxu2 %v1170_v3  ;;  %v1210_v3 = vld [vmem:[#allocation4 + $0x6b0] sm:$0xff] }
  0xc4   : > { %v573_v46 = vpop.f32.mrf.mxu2  ;;  %v617_v47 = vpop.f32.mrf.mxu3 }
  0xc5   : > { %v4077_v50 = vmax.f32 %v573_v46, 0.0  ;;  %v4079_v51 = vmax.f32 %v617_v47, 0.0  ;;  %v488_v54 = vpop.f32.mrf.mxu0  ;;  %v532_v55 = vpop.f32.mrf.mxu1 }
  0xc6   : > { %v4081_v57 = vmax.f32 %v488_v54, 0.0  ;;  %v4083_v58 = vmax.f32 %v532_v55, 0.0 }
  0xc7   : > { %686 = vst [vmem:[%s3989_s24 + $0x90] sm:$0xff] %v4077_v50  ;;  %1368 = vmatmul.f32.gmra.mxu2 %v4077_v50  ;;  %1412 = vmatmul.f32.gmra.mxu3 %v4079_v51 }
  0xc8   : > { %687 = vst [vmem:[%s3989_s24 + $0x98] sm:$0xff] %v4079_v51  ;;  %1283 = vmatmul.f32.gmra.mxu0 %v4081_v57  ;;  %1327 = vmatmul.f32.gmra.mxu1 %v4083_v58 }
  0xc9   : > { %688 = vst [vmem:[%s3989_s24 + $0xa0] sm:$0xff] %v4081_v57 }
  0xca   : > { %689 = vst [vmem:[%s3989_s24 + $0xa8] sm:$0xff] %v4083_v58 }
  0xcc   : > { %v576_v7 = vpop.f32.mrf.mxu2  ;;  %v620_v8 = vpop.f32.mrf.mxu3 }
  0xcd   : > { %v4097_v9 = vmax.f32 %v576_v7, 0.0  ;;  %v4099_v10 = vmax.f32 %v620_v8, 0.0  ;;  %v491_v11 = vpop.f32.mrf.mxu0  ;;  %v535_v12 = vpop.f32.mrf.mxu1  ;;  %v1234_v7 = vld [vmem:[#allocation4 + $0x770] sm:$0xff] }
  0xce   : > { %v4101_v13 = vmax.f32 %v491_v11, 0.0  ;;  %v4103_v16 = vmax.f32 %v535_v12, 0.0  ;;  %v1106_v8 = vld [vmem:[#allocation4 + $0x370] sm:$0xff]  ;;  %1740 = vmatpush.msrb.mxu3 %v1234_v7 }
  0xcf   : > { %690 = vst [vmem:[%s3989_s24 + $0xb0] sm:$0xff] %v4097_v9  ;;  %1371 = vmatmul.f32.gmra.mxu2 %v4097_v9  ;;  %1415 = vmatmul.f32.gmra.mxu3 %v4099_v10  ;;  %v1166_v11 = vld [vmem:[#allocation4 + $0x550] sm:$0xff] }
  0xd0   : > { %691 = vst [vmem:[%s3989_s24 + $0xb8] sm:$0xff] %v4099_v10  ;;  %1286 = vmatmul.f32.gmra.mxu0 %v4101_v13  ;;  %1330 = vmatmul.f32.gmra.mxu1 %v4103_v16  ;;  %v1142_v7 = vld [vmem:[#allocation4 + $0x490] sm:$0xff] }
  0xd1   : > { %692 = vst [vmem:[%s3989_s24 + $0xc0] sm:$0xff] %v4101_v13  ;;  %1652 = vmatpush.msrb.mxu1 %v1106_v8  ;;  %1697 = vmatpush.msrb.mxu2 %v1166_v11  ;;  %v1014_v8 = vld [vmem:[#allocation4 + $0x90] sm:$0xff] }
  0xd2   : > { %693 = vst [vmem:[%s3989_s24 + $0xc8] sm:$0xff] %v4103_v16  ;;  %1741 = vmatpush.msrb.mxu3 %v1230_v23  ;;  %v1206_v11 = vld [vmem:[#allocation4 + $0x690] sm:$0xff] }
  0xd3   : > { %1653 = vmatpush.msrb.mxu1 %v1102_v24  ;;  %1698 = vmatpush.msrb.mxu2 %v1162_v25  ;;  %v1202_v23 = vld [vmem:[#allocation4 + $0x670] sm:$0xff] }
  0xd4   : > { %v579_v26 = vpop.f32.mrf.mxu2  ;;  %v623_v27 = vpop.f32.mrf.mxu3  ;;  %v1074_v24 = vld [vmem:[#allocation4 + $0x270] sm:$0xff] }
  0xd5   : > { %v4117_v28 = vmax.f32 %v579_v26, 0.0  ;;  %v4119_v29 = vmax.f32 %v623_v27, 0.0  ;;  %v494_v32 = vpop.f32.mrf.mxu0  ;;  %v538_v33 = vpop.f32.mrf.mxu1  ;;  %v1034_v26 = vld [vmem:[#allocation4 + $0x130] sm:$0xff] }
  0xd6   : > { %v4121_v36 = vmax.f32 %v494_v32, 0.0  ;;  %v4123_v37 = vmax.f32 %v538_v33, 0.0  ;;  %v1226_v27 = vld [vmem:[#allocation4 + $0x730] sm:$0xff]  ;;  %1610 = vmatpush.msrb.mxu0 %v1034_v26 }
  0xd7   : > { %694 = vst [vmem:[%s3989_s24 + $0xd0] sm:$0xff] %v4117_v28  ;;  %1374 = vmatmul.f32.gmra.mxu2 %v4117_v28  ;;  %1418 = vmatmul.f32.gmra.mxu3 %v4119_v29  ;;  %v1098_v32 = vld [vmem:[#allocation4 + $0x330] sm:$0xff] }
  0xd8   : > { %695 = vst [vmem:[%s3989_s24 + $0xd8] sm:$0xff] %v4119_v29  ;;  %1289 = vmatmul.f32.gmra.mxu0 %v4121_v36  ;;  %1333 = vmatmul.f32.gmra.mxu1 %v4123_v37  ;;  %v1158_v33 = vld [vmem:[#allocation4 + $0x510] sm:$0xff] }
  0xd9   : > { %696 = vst [vmem:[%s3989_s24 + $0xe0] sm:$0xff] %v4121_v36  ;;  %1742 = vmatpush.msrb.mxu3 %v1226_v27  ;;  %1654 = vmatpush.msrb.mxu1 %v1098_v32  ;;  %v1006_v25 = vld [vmem:[#allocation4 + $0x50] sm:$0xff] }
  0xda   : > { %697 = vst [vmem:[%s3989_s24 + $0xe8] sm:$0xff] %v4123_v37  ;;  %1699 = vmatpush.msrb.mxu2 %v1158_v33  ;;  %1611 = vmatpush.msrb.mxu0 %v1030_v40  ;;  %v1070_v26 = vld [vmem:[#allocation4 + $0x250] sm:$0xff] }
  0xdb   : > { %1743 = vmatpush.msrb.mxu3 %v1222_v41  ;;  %1655 = vmatpush.msrb.mxu1 %v1094_v42  ;;  %v1134_v27 = vld [vmem:[#allocation4 + $0x450] sm:$0xff] }
  0xdc   : > { %v582_v46 = vpop.f32.mrf.mxu2  ;;  %v626_v47 = vpop.f32.mrf.mxu3  ;;  %1700 = vmatpush.msrb.mxu2 %v1154_v43  ;;  %1612 = vmatpush.msrb.mxu0 %v1026_v44  ;;  %v1198_v32 = vld [vmem:[#allocation4 + $0x650] sm:$0xff] }
  0xdd   : > { %v4137_v54 = vmax.f32 %v582_v46, 0.0  ;;  %v4139_v55 = vmax.f32 %v626_v47, 0.0  ;;  %v497_v56 = vpop.f32.mrf.mxu0  ;;  %v541_v59 = vpop.f32.mrf.mxu1  ;;  %1744 = vmatpush.msrb.mxu3 %v1218_v45  ;;  %v1090_v46 = vld [vmem:[#allocation4 + $0x2f0] sm:$0xff] }
  0xde   : > { %v4141_v60 = vmax.f32 %v497_v56, 0.0  ;;  %v4143_v61 = vmax.f32 %v541_v59, 0.0  ;;  %v1150_v47 = vld [vmem:[#allocation4 + $0x4d0] sm:$0xff]  ;;  %1656 = vmatpush.msrb.mxu1 %v1090_v46 }
  0xdf   : > { %698 = vst [vmem:[%s3989_s24 + $0xf0] sm:$0xff] %v4137_v54  ;;  %1377 = vmatmul.f32.gmra.mxu2 %v4137_v54  ;;  %1421 = vmatmul.f32.gmra.mxu3 %v4139_v55  ;;  %v1022_v56 = vld [vmem:[#allocation4 + $0xd0] sm:$0xff] }
  0xe0   : > { %699 = vst [vmem:[%s3989_s24 + $0xf8] sm:$0xff] %v4139_v55  ;;  %1292 = vmatmul.f32.gmra.mxu0 %v4141_v60  ;;  %1336 = vmatmul.f32.gmra.mxu1 %v4143_v61  ;;  %v1214_v59 = vld [vmem:[#allocation4 + $0x6d0] sm:$0xff] }
  0xe1   : > { %700 = vst [vmem:[%s3989_s24 + $0x100] sm:$0xff] %v4141_v60  ;;  %1701 = vmatpush.msrb.mxu2 %v1150_v47  ;;  %1613 = vmatpush.msrb.mxu0 %v1022_v56  ;;  %v1002_v33 = vld [vmem:[#allocation4 + $0x30] sm:$0xff]  ;;  %v1187_v47 = vld [vmem:[#allocation4 + $0x5f8] sm:$0xff] }
  0xe2   : > { %701 = vst [vmem:[%s3989_s24 + $0x108] sm:$0xff] %v4143_v61  ;;  %1745 = vmatpush.msrb.mxu3 %v1214_v59  ;;  %1657 = vmatpush.msrb.mxu1 %v1086_v62  ;;  %v1066_v40 = vld [vmem:[#allocation4 + $0x230] sm:$0xff]  ;;  %v1059_v56 = vld [vmem:[#allocation4 + $0x1f8] sm:$0xff] }
  0xe3   : > { %1702 = vmatpush.msrb.mxu2 %v1146_v63  ;;  %1614 = vmatpush.msrb.mxu0 %v1018_v2  ;;  %v1130_v41 = vld [vmem:[#allocation4 + $0x430] sm:$0xff]  ;;  %v1251_v59 = vld [vmem:[#allocation4 + $0x7f8] sm:$0xff] }
  0xe4   : > { %v585_v12 = vpop.f32.mrf.mxu2  ;;  %v629_v17 = vpop.f32.mrf.mxu3  ;;  %1746 = vmatpush.msrb.mxu3 %v1210_v3  ;;  %1658 = vmatpush.msrb.mxu1 %v1082_v6  ;;  %v1194_v42 = vld [vmem:[#allocation4 + $0x630] sm:$0xff]  ;;  %v1123_v2 = vld [vmem:[#allocation4 + $0x3f8] sm:$0xff] }
  0xe5   : > { %v4157_v20 = vmax.f32 %v585_v12, 0.0  ;;  %v4159_v21 = vmax.f32 %v629_v17, 0.0  ;;  %v1078_v12 = vld [vmem:[#allocation4 + $0x290] sm:$0xff]  ;;  %1703 = vmatpush.msrb.mxu2 %v1142_v7  ;;  %1615 = vmatpush.msrb.mxu0 %v1014_v8  ;;  %v1183_v3 = vld [vmem:[#allocation4 + $0x5d8] sm:$0xff] }
  0xe6   : > { %v1138_v17 = vld [vmem:[#allocation4 + $0x470] sm:$0xff]  ;;  %1747 = vmatpush.msrb.mxu3 %v1206_v11  ;;  %1659 = vmatpush.msrb.mxu1 %v1078_v12  ;;  %v1055_v6 = vld [vmem:[#allocation4 + $0x1d8] sm:$0xff] }
  0xe7   : > { %702 = vst [vmem:[%s3989_s24 + $0x110] sm:$0xff] %v4157_v20  ;;  %1380 = vmatmul.f32.gmra.mxu2 %v4157_v20  ;;  %1424 = vmatmul.f32.gmra.mxu3 %v4159_v21  ;;  %v998_v43 = vld [vmem:[#allocation4 + $0x10] sm:$0xff]  ;;  %v1247_v7 = vld [vmem:[#allocation4 + $0x7d8] sm:$0xff] }
  0xe8   : > { %703 = vst [vmem:[%s3989_s24 + $0x118] sm:$0xff] %v4159_v21  ;;  %1444 = vmatmul.f32.vlgmr.msra.gmra.mxu0 %v3984_v38  ;;  %1488 = vmatmul.f32.vlgmr.msra.gmra.mxu1 %v3986_v39  ;;  %v1062_v44 = vld [vmem:[#allocation4 + $0x210] sm:$0xff]  ;;  %v1119_v8 = vld [vmem:[#allocation4 + $0x3d8] sm:$0xff] }
  0xe9   : > { %1704 = vmatpush.msrb.mxu2 %v1138_v17  ;;  %1616 = vmatpush.msrb.mxu0 %v1010_v22  ;;  %v1126_v45 = vld [vmem:[#allocation4 + $0x410] sm:$0xff]  ;;  %v1179_v11 = vld [vmem:[#allocation4 + $0x5b8] sm:$0xff] }
  0xea   : > { %1748 = vmatpush.msrb.mxu3 %v1202_v23  ;;  %1660 = vmatpush.msrb.mxu1 %v1074_v24  ;;  %v1190_v46 = vld [vmem:[#allocation4 + $0x610] sm:$0xff]  ;;  %v1051_v22 = vld [vmem:[#allocation4 + $0x1b8] sm:$0xff] }
  0xeb   : > { %1617 = vmatpush.msrb.mxu0 %v1006_v25  ;;  %1705 = vmatpush.msrb.mxu2 %v1134_v27  ;;  %v1243_v23 = vld [vmem:[#allocation4 + $0x7b8] sm:$0xff] }
  0xec   : > { %1661 = vmatpush.msrb.mxu1 %v1070_v26  ;;  %1749 = vmatpush.msrb.mxu3 %v1198_v32  ;;  %v1115_v24 = vld [vmem:[#allocation4 + $0x3b8] sm:$0xff] }
  0xed   : > { %1618 = vmatpush.msrb.mxu0 %v1002_v33  ;;  %1706 = vmatpush.msrb.mxu2 %v1130_v41  ;;  %v1175_v25 = vld [vmem:[#allocation4 + $0x598] sm:$0xff] }
  0xee   : > { %1662 = vmatpush.msrb.mxu1 %v1066_v40  ;;  %1750 = vmatpush.msrb.mxu3 %v1194_v42  ;;  %v1047_v26 = vld [vmem:[#allocation4 + $0x198] sm:$0xff] }
  0xef   : > { %1532 = vmatmul.f32.vlgmr.msra.gmra.mxu2 %v3997_v48  ;;  %1576 = vmatmul.f32.vlgmr.msra.gmra.mxu3 %v3999_v49  ;;  %v1239_v27 = vld [vmem:[#allocation4 + $0x798] sm:$0xff] }
  0xf0   : > { %1447 = vmatmul.f32.gmra.mxu0 %v4001_v52  ;;  %1491 = vmatmul.f32.gmra.mxu1 %v4003_v53  ;;  %v1111_v32 = vld [vmem:[#allocation4 + $0x398] sm:$0xff] }
  0xf1   : > { %1619 = vmatpush.msrb.mxu0 %v998_v43  ;;  %1663 = vmatpush.msrb.mxu1 %v1062_v44  ;;  %v1171_v33 = vld [vmem:[#allocation4 + $0x578] sm:$0xff] }
  0xf2   : > { %1707 = vmatpush.msrb.mxu2 %v1126_v45  ;;  %1751 = vmatpush.msrb.mxu3 %v1190_v46 }
  0xf3   : > { %1780 = vmatpush.msra.mxu0 %v1059_v56  ;;  %1824 = vmatpush.msra.mxu1 %v1123_v2  ;;  %v1235_v56 = vld [vmem:[#allocation4 + $0x778] sm:$0xff] }
  0xf4   : > { %1868 = vmatpush.msra.mxu2 %v1187_v47  ;;  %1912 = vmatpush.msra.mxu3 %v1251_v59  ;;  %v1043_v47 = vld [vmem:[#allocation4 + $0x178] sm:$0xff] }
  0xf5   : > { %1781 = vmatpush.msra.mxu0 %v1055_v6  ;;  %1825 = vmatpush.msra.mxu1 %v1119_v8  ;;  %v1107_v59 = vld [vmem:[#allocation4 + $0x378] sm:$0xff] }
  0xf6   : > { %1869 = vmatpush.msra.mxu2 %v1183_v3  ;;  %1913 = vmatpush.msra.mxu3 %v1247_v7  ;;  %v1167_v2 = vld [vmem:[#allocation4 + $0x558] sm:$0xff] }
  0xf7   : > { %1535 = vmatmul.f32.gmra.mxu2 %v4017_v0  ;;  %1579 = vmatmul.f32.gmra.mxu3 %v4019_v1 }
  0xf8   : > { %1450 = vmatmul.f32.gmra.mxu0 %v4021_v4  ;;  %1494 = vmatmul.f32.gmra.mxu1 %v4023_v5 }
  0xf9   : > { %1870 = vmatpush.msra.mxu2 %v1179_v11  ;;  %1782 = vmatpush.msra.mxu0 %v1051_v22 }
  0xfa   : > { %1914 = vmatpush.msra.mxu3 %v1243_v23  ;;  %1826 = vmatpush.msra.mxu1 %v1115_v24  ;;  %v1103_v24 = vld [vmem:[#allocation4 + $0x358] sm:$0xff] }
  0xfb   : > { %1871 = vmatpush.msra.mxu2 %v1175_v25  ;;  %1783 = vmatpush.msra.mxu0 %v1047_v26  ;;  %v1163_v25 = vld [vmem:[#allocation4 + $0x538] sm:$0xff] }
  0xfc   : > { %1915 = vmatpush.msra.mxu3 %v1239_v27  ;;  %1827 = vmatpush.msra.mxu1 %v1111_v32  ;;  %v1035_v26 = vld [vmem:[#allocation4 + $0x138] sm:$0xff] }
  0xfd   : > { %1872 = vmatpush.msra.mxu2 %v1171_v33  ;;  %1784 = vmatpush.msra.mxu0 %v1043_v47  ;;  %v1223_v27 = vld [vmem:[#allocation4 + $0x718] sm:$0xff] }
  0xfe   : > { %1916 = vmatpush.msra.mxu3 %v1235_v56  ;;  %1828 = vmatpush.msra.mxu1 %v1107_v59  ;;  %v1219_v47 = vld [vmem:[#allocation4 + $0x6f8] sm:$0xff] }
  0xff   : > { %1538 = vmatmul.f32.gmra.mxu2 %v4037_v14  ;;  %1582 = vmatmul.f32.gmra.mxu3 %v4039_v15 }
 0x100   : > { %1453 = vmatmul.f32.gmra.mxu0 %v4041_v18  ;;  %1497 = vmatmul.f32.gmra.mxu1 %v4043_v19 }
 0x101   : > { %1873 = vmatpush.msra.mxu2 %v1167_v2  ;;  %1829 = vmatpush.msra.mxu1 %v1103_v24 }
 0x103   : > { %1874 = vmatpush.msra.mxu2 %v1163_v25 }
 0x107   : > { %1541 = vmatmul.f32.gmra.mxu2 %v4057_v30  ;;  %1585 = vmatmul.f32.gmra.mxu3 %v4059_v31 }
 0x108   : > { %1456 = vmatmul.f32.gmra.mxu0 %v4061_v34  ;;  %1500 = vmatmul.f32.gmra.mxu1 %v4063_v35 }
 0x10f   : > { %1544 = vmatmul.f32.gmra.mxu2 %v4077_v50  ;;  %1588 = vmatmul.f32.gmra.mxu3 %v4079_v51 }
 0x110   : > { %1459 = vmatmul.f32.gmra.mxu0 %v4081_v57  ;;  %1503 = vmatmul.f32.gmra.mxu1 %v4083_v58 }
 0x117   : > { %1547 = vmatmul.f32.gmra.mxu2 %v4097_v9  ;;  %1591 = vmatmul.f32.gmra.mxu3 %v4099_v10 }
 0x118   : > { %1462 = vmatmul.f32.gmra.mxu0 %v4101_v13  ;;  %1506 = vmatmul.f32.gmra.mxu1 %v4103_v16 }
 0x11d   : > { %v1269_v62 = vpop.f32.mrf.mxu0  ;;  %v1313_v63 = vpop.f32.mrf.mxu1 }
 0x11e   : > { %v1314_v40 = vadd.f32 %v1313_v63, %v1269_v62  ;;  %v1039_v62 = vld [vmem:[#allocation4 + $0x158] sm:$0xff] }
 0x11f   : > { %1550 = vmatmul.f32.gmra.mxu2 %v4117_v28  ;;  %1594 = vmatmul.f32.gmra.mxu3 %v4119_v29  ;;  %v1231_v63 = vld [vmem:[#allocation4 + $0x758] sm:$0xff] }
 0x120   : > { %1465 = vmatmul.f32.gmra.mxu0 %v4121_v36  ;;  %1509 = vmatmul.f32.gmra.mxu1 %v4123_v37 }
 0x121   : > { %1785 = vmatpush.msra.mxu0 %v1039_v62  ;;  %1917 = vmatpush.msra.mxu3 %v1231_v63 }
 0x123   : > { %1786 = vmatpush.msra.mxu0 %v1035_v26 }
 0x125   : > { %v1272_v12 = vpop.f32.mrf.mxu0  ;;  %v1316_v17 = vpop.f32.mrf.mxu1 }
 0x126   : > { %v1317_v3 = vadd.f32 %v1316_v17, %v1272_v12  ;;  %v1159_v12 = vld [vmem:[#allocation4 + $0x518] sm:$0xff] }
 0x127   : > { %1553 = vmatmul.f32.gmra.mxu2 %v4137_v54  ;;  %1597 = vmatmul.f32.gmra.mxu3 %v4139_v55  ;;  %v1031_v17 = vld [vmem:[#allocation4 + $0x118] sm:$0xff] }
 0x128   : > { %1468 = vmatmul.f32.gmra.mxu0 %v4141_v60  ;;  %1512 = vmatmul.f32.gmra.mxu1 %v4143_v61 }
 0x129   : > { %1875 = vmatpush.msra.mxu2 %v1159_v12  ;;  %1787 = vmatpush.msra.mxu0 %v1031_v17  ;;  %v1015_v12 = vld [vmem:[#allocation4 + $0x98] sm:$0xff] }
 0x12a   : > { %v1357_v41 = vpop.f32.mrf.mxu2  ;;  %v1401_v42 = vpop.f32.mrf.mxu3  ;;  %v1139_v17 = vld [vmem:[#allocation4 + $0x478] sm:$0xff] }
 0x12b   : > { %v1358_v43 = vadd.f32 %v1357_v41, %v1314_v40 }
 0x12d   : > { %v4201_v44 = vadd.f32 %v1401_v42, %v1358_v43  ;;  %v1275_v45 = vpop.f32.mrf.mxu0  ;;  %v1319_v46 = vpop.f32.mrf.mxu1  ;;  %v1095_v43 = vld [vmem:[#allocation4 + $0x318] sm:$0xff] }
 0x12e   : > { %v1320_v32 = vadd.f32 %v1319_v46, %v1275_v45  ;;  %v1091_v45 = vld [vmem:[#allocation4 + $0x2f8] sm:$0xff] }
 0x12f   : > { %1556 = vmatmul.f32.gmra.mxu2 %v4157_v20  ;;  %1600 = vmatmul.f32.gmra.mxu3 %v4159_v21  ;;  %v1151_v46 = vld [vmem:[#allocation4 + $0x4d8] sm:$0xff] }
 0x130   : > { %1620 = vmatmul.f32.vlgmr.msrb.gmra.mxu0 %v3984_v38  ;;  %1664 = vmatmul.f32.vlgmr.msrb.gmra.mxu1 %v3986_v39  ;;  %v1227_v38 = vld [vmem:[#allocation4 + $0x738] sm:$0xff] }
 0x131   : > { %v1099_v39 = vld [vmem:[#allocation4 + $0x338] sm:$0xff]  ;;  %1918 = vmatpush.msra.mxu3 %v1227_v38 }
 0x132   : > { %v1360_v6 = vpop.f32.mrf.mxu2  ;;  %v1404_v7 = vpop.f32.mrf.mxu3  ;;  %1830 = vmatpush.msra.mxu1 %v1099_v39 }
 0x133   : > { %v1361_v8 = vadd.f32 %v1360_v6, %v1317_v3  ;;  %1919 = vmatpush.msra.mxu3 %v1223_v27  ;;  %v1023_v6 = vld [vmem:[#allocation4 + $0xd8] sm:$0xff] }
 0x134   : > { %1831 = vmatpush.msra.mxu1 %v1095_v43  ;;  %v1011_v27 = vld [vmem:[#allocation4 + $0x78] sm:$0xff] }
 0x135   : > { %v4207_v11 = vadd.f32 %v1404_v7, %v1361_v8  ;;  %v1278_v22 = vpop.f32.mrf.mxu0  ;;  %v1322_v23 = vpop.f32.mrf.mxu1  ;;  %1920 = vmatpush.msra.mxu3 %v1219_v47  ;;  %v1087_v7 = vld [vmem:[#allocation4 + $0x2d8] sm:$0xff] }
 0x136   : > { %v1323_v56 = vadd.f32 %v1322_v23, %v1278_v22  ;;  %1832 = vmatpush.msra.mxu1 %v1091_v45  ;;  %v1211_v8 = vld [vmem:[#allocation4 + $0x6b8] sm:$0xff] }
 0x137   : > { %1708 = vmatmul.f32.vlgmr.msrb.gmra.mxu2 %v3997_v48  ;;  %1752 = vmatmul.f32.vlgmr.msrb.gmra.mxu3 %v3999_v49  ;;  %v1083_v22 = vld [vmem:[#allocation4 + $0x2b8] sm:$0xff] }
 0x138   : > { %1623 = vmatmul.f32.gmra.mxu0 %v4001_v52  ;;  %1667 = vmatmul.f32.gmra.mxu1 %v4003_v53  ;;  %v1155_v52 = vld [vmem:[#allocation4 + $0x4f8] sm:$0xff] }
 0x139   : > { %1876 = vmatpush.msra.mxu2 %v1155_v52  ;;  %v1027_v53 = vld [vmem:[#allocation4 + $0xf8] sm:$0xff]  ;;  %1833 = vmatpush.msra.mxu1 %v1087_v7 }
 0x13a   : > { %v1363_v33 = vpop.f32.mrf.mxu2  ;;  %v1407_v40 = vpop.f32.mrf.mxu3  ;;  %1788 = vmatpush.msra.mxu0 %v1027_v53  ;;  %v1143_v23 = vld [vmem:[#allocation4 + $0x498] sm:$0xff] }
 0x13b   : > { %v1364_v41 = vadd.f32 %v1363_v33, %v1320_v32  ;;  %1877 = vmatpush.msra.mxu2 %v1151_v46  ;;  %1834 = vmatpush.msra.mxu1 %v1083_v22  ;;  %v1203_v32 = vld [vmem:[#allocation4 + $0x678] sm:$0xff] }
 0x13c   : > { %1789 = vmatpush.msra.mxu0 %v1023_v6  ;;  %v1075_v33 = vld [vmem:[#allocation4 + $0x278] sm:$0xff] }
 0x13d   : > { %v4213_v48 = vadd.f32 %v1407_v40, %v1364_v41  ;;  %v1281_v49 = vpop.f32.mrf.mxu0  ;;  %v1325_v42 = vpop.f32.mrf.mxu1  ;;  %v1007_v43 = vld [vmem:[#allocation4 + $0x58] sm:$0xff] }
 0x13e   : > { %v1326_v24 = vadd.f32 %v1325_v42, %v1281_v49  ;;  %v1003_v47 = vld [vmem:[#allocation4 + $0x38] sm:$0xff] }
 0x13f   : > { %1711 = vmatmul.f32.gmra.mxu2 %v4017_v0  ;;  %1755 = vmatmul.f32.gmra.mxu3 %v4019_v1  ;;  %v1215_v1 = vld [vmem:[#allocation4 + $0x6d8] sm:$0xff] }
 0x140   : > { %1626 = vmatmul.f32.gmra.mxu0 %v4021_v4  ;;  %1670 = vmatmul.f32.gmra.mxu1 %v4023_v5  ;;  %v1147_v4 = vld [vmem:[#allocation4 + $0x4b8] sm:$0xff] }
 0x141   : > { %1921 = vmatpush.msra.mxu3 %v1215_v1  ;;  %v1019_v5 = vld [vmem:[#allocation4 + $0xb8] sm:$0xff]  ;;  %1878 = vmatpush.msra.mxu2 %v1147_v4  ;;  %v800_v4 = vld [vmem:[#allocation2 + $0x1e0] sm:$0xff] }
 0x142   : > { %v1366_v59 = vpop.f32.mrf.mxu2  ;;  %v1410_v2 = vpop.f32.mrf.mxu3  ;;  %1790 = vmatpush.msra.mxu0 %v1019_v5  ;;  %v1067_v45 = vld [vmem:[#allocation4 + $0x238] sm:$0xff]  ;;  %v992_v5 = vld [vmem:[#allocation2 + $0x7e0] sm:$0xff] }
 0x143   : > { %v1367_v62 = vadd.f32 %v1366_v59, %v1323_v56  ;;  %1922 = vmatpush.msra.mxu3 %v1211_v8  ;;  %1879 = vmatpush.msra.mxu2 %v1143_v23  ;;  %v1131_v46 = vld [vmem:[#allocation4 + $0x438] sm:$0xff] }
 0x144   : > { %1791 = vmatpush.msra.mxu0 %v1015_v12  ;;  %v1195_v56 = vld [vmem:[#allocation4 + $0x638] sm:$0xff] }
 0x145   : > { %v4219_v63 = vadd.f32 %v1410_v2, %v1367_v62  ;;  %v1284_v3 = vpop.f32.mrf.mxu0  ;;  %v1328_v0 = vpop.f32.mrf.mxu1  ;;  %1880 = vmatpush.msra.mxu2 %v1139_v17  ;;  %v999_v59 = vld [vmem:[#allocation4 + $0x18] sm:$0xff] }
 0x146   : > { %v1329_v40 = vadd.f32 %v1328_v0, %v1284_v3  ;;  %1792 = vmatpush.msra.mxu0 %v1011_v27  ;;  %v1063_v2 = vld [vmem:[#allocation4 + $0x218] sm:$0xff] }
 0x147   : > { %1714 = vmatmul.f32.gmra.mxu2 %v4037_v14  ;;  %1758 = vmatmul.f32.gmra.mxu3 %v4039_v15  ;;  %v1127_v7 = vld [vmem:[#allocation4 + $0x418] sm:$0xff] }
 0x148   : > { %1629 = vmatmul.f32.gmra.mxu0 %v4041_v18  ;;  %1673 = vmatmul.f32.gmra.mxu1 %v4043_v19  ;;  %v1207_v18 = vld [vmem:[#allocation4 + $0x698] sm:$0xff] }
 0x149   : > { %1923 = vmatpush.msra.mxu3 %v1207_v18  ;;  %v1079_v19 = vld [vmem:[#allocation4 + $0x298] sm:$0xff]  ;;  %1793 = vmatpush.msra.mxu0 %v1007_v43 }
 0x14a   : > { %v1369_v25 = vpop.f32.mrf.mxu2  ;;  %v1413_v26 = vpop.f32.mrf.mxu3  ;;  %1835 = vmatpush.msra.mxu1 %v1079_v19 }
 0x14b   : > { %v1370_v38 = vadd.f32 %v1369_v25, %v1326_v24  ;;  %1924 = vmatpush.msra.mxu3 %v1203_v32  ;;  %1794 = vmatpush.msra.mxu0 %v1003_v47  ;;  %v908_v47 = vld [vmem:[#allocation2 + $0x540] sm:$0xff] }
 0x14c   : > { %1836 = vmatpush.msra.mxu1 %v1075_v33  ;;  %v792_v33 = vld [vmem:[#allocation2 + $0x1a0] sm:$0xff] }
 0x14d   : > { %v4225_v14 = vadd.f32 %v1413_v26, %v1370_v38  ;;  %v1287_v15 = vpop.f32.mrf.mxu0  ;;  %v1331_v39 = vpop.f32.mrf.mxu1  ;;  %1795 = vmatpush.msra.mxu0 %v999_v59  ;;  %v864_v38 = vld [vmem:[#allocation2 + $0x3e0] sm:$0xff]  ;;  %v3510_v59 = vld [vmem:[%s3989_s24 + $0x8] sm:$0xff] }
 0x14e   : > { %v1332_v62 = vadd.f32 %v1331_v39, %v1287_v15  ;;  %v988_v15 = vld [vmem:[#allocation2 + $0x7c0] sm:$0xff] }
 0x14f   : > { %1717 = vmatmul.f32.gmra.mxu2 %v4057_v30  ;;  %1761 = vmatmul.f32.gmra.mxu3 %v4059_v31  ;;  %v1071_v30 = vld [vmem:[#allocation4 + $0x258] sm:$0xff]  ;;  %v920_v39 = vld [vmem:[#allocation2 + $0x5a0] sm:$0xff] }
 0x150   : > { %1632 = vmatmul.f32.gmra.mxu0 %v4061_v34  ;;  %1676 = vmatmul.f32.gmra.mxu1 %v4063_v35  ;;  %v1135_v34 = vld [vmem:[#allocation4 + $0x458] sm:$0xff] }
 0x151   : > { %1837 = vmatpush.msra.mxu1 %v1071_v30  ;;  %v1199_v35 = vld [vmem:[#allocation4 + $0x658] sm:$0xff]  ;;  %1881 = vmatpush.msra.mxu2 %v1135_v34  ;;  %v784_v34 = vld [vmem:[#allocation2 + $0x160] sm:$0xff] }
 0x152   : > { %v1372_v41 = vpop.f32.mrf.mxu2  ;;  %v1416_v49 = vpop.f32.mrf.mxu3  ;;  %1925 = vmatpush.msra.mxu3 %v1199_v35  ;;  %1956 = vmatpush.msrb.mxu0 %v800_v4  ;;  %v848_v35 = vld [vmem:[#allocation2 + $0x360] sm:$0xff]  ;;  %v3512_v4 = vld [vmem:[%s3989_s24 + $0x18] sm:$0xff] }
 0x153   : > { %v1373_v42 = vadd.f32 %v1372_v41, %v1329_v40  ;;  %1838 = vmatpush.msra.mxu1 %v1067_v45  ;;  %1882 = vmatpush.msra.mxu2 %v1131_v46  ;;  %v856_v40 = vld [vmem:[#allocation2 + $0x3a0] sm:$0xff] }
 0x154   : > { %1926 = vmatpush.msra.mxu3 %v1195_v56  ;;  %v980_v41 = vld [vmem:[#allocation2 + $0x780] sm:$0xff] }
 0x155   : > { %v4231_v31 = vadd.f32 %v1416_v49, %v1373_v42  ;;  %v1290_v52 = vpop.f32.mrf.mxu0  ;;  %v1334_v53 = vpop.f32.mrf.mxu1  ;;  %1839 = vmatpush.msra.mxu1 %v1063_v2  ;;  %1883 = vmatpush.msra.mxu2 %v1127_v7  ;;  %v852_v49 = vld [vmem:[#allocation2 + $0x380] sm:$0xff] }
 0x156   : > { %v1335_v8 = vadd.f32 %v1334_v53, %v1290_v52  ;;  %v912_v42 = vld [vmem:[#allocation2 + $0x560] sm:$0xff] }
 0x157   : > { %1720 = vmatmul.f32.gmra.mxu2 %v4077_v50  ;;  %1764 = vmatmul.f32.gmra.mxu3 %v4079_v51  ;;  %v780_v45 = vld [vmem:[#allocation2 + $0x140] sm:$0xff] }
 0x158   : > { %1635 = vmatmul.f32.gmra.mxu0 %v4081_v57  ;;  %1679 = vmatmul.f32.gmra.mxu1 %v4083_v58  ;;  %v1191_v57 = vld [vmem:[#allocation4 + $0x618] sm:$0xff]  ;;  %v928_v58 = vld [vmem:[#allocation2 + $0x5e0] sm:$0xff] }
 0x159   : > { %1927 = vmatpush.msra.mxu3 %v1191_v57  ;;  %2044 = vmatpush.msrb.mxu2 %v928_v58  ;;  %v972_v46 = vld [vmem:[#allocation2 + $0x740] sm:$0xff]  ;;  %v3511_v58 = vld [vmem:[%s3989_s24 + $0x10] sm:$0xff] }
 0x15a   : > { %v1375_v3 = vpop.f32.mrf.mxu2  ;;  %v1419_v0 = vpop.f32.mrf.mxu3  ;;  %2000 = vmatpush.msrb.mxu1 %v864_v38  ;;  %v3509_v56 = vld [vmem:[%s3989_s24] sm:$0xff] }
 0x15b   : > { %v1376_v6 = vadd.f32 %v1375_v3, %v1332_v62  ;;  %2088 = vmatpush.msrb.mxu3 %v992_v5  ;;  %v776_v7 = vld [vmem:[#allocation2 + $0x120] sm:$0xff] }
 0x15c   : > { %v968_v57 = vld [vmem:[#allocation2 + $0x720] sm:$0xff] }
 0x15d   : > { %v4237_v50 = vadd.f32 %v1419_v0, %v1376_v6  ;;  %v1293_v51 = vpop.f32.mrf.mxu0  ;;  %v1337_v1 = vpop.f32.mrf.mxu1  ;;  %2089 = vmatpush.msrb.mxu3 %v988_v15  ;;  %v840_v5 = vld [vmem:[#allocation2 + $0x320] sm:$0xff] }
 0x15e   : > { %v1338_v12 = vadd.f32 %v1337_v1, %v1293_v51  ;;  %v844_v51 = vld [vmem:[#allocation2 + $0x340] sm:$0xff] }
 0x15f   : > { %1723 = vmatmul.f32.gmra.mxu2 %v4097_v9  ;;  %1767 = vmatmul.f32.gmra.mxu3 %v4099_v10  ;;  %v924_v10 = vld [vmem:[#allocation2 + $0x5c0] sm:$0xff] }
 0x160   : > { %1638 = vmatmul.f32.gmra.mxu0 %v4101_v13  ;;  %1682 = vmatmul.f32.gmra.mxu1 %v4103_v16  ;;  %v796_v13 = vld [vmem:[#allocation2 + $0x1c0] sm:$0xff] }
 0x161   : > { %2045 = vmatpush.msrb.mxu2 %v924_v10  ;;  %v860_v16 = vld [vmem:[#allocation2 + $0x3c0] sm:$0xff]  ;;  %1957 = vmatpush.msrb.mxu0 %v796_v13 }
 0x162   : > { %v1378_v22 = vpop.f32.mrf.mxu2  ;;  %v1422_v23 = vpop.f32.mrf.mxu3  ;;  %2001 = vmatpush.msrb.mxu1 %v860_v16  ;;  %v904_v1 = vld [vmem:[#allocation2 + $0x520] sm:$0xff] }
 0x163   : > { %v1379_v24 = vadd.f32 %v1378_v22, %v1335_v8  ;;  %2046 = vmatpush.msrb.mxu2 %v920_v39  ;;  %1958 = vmatpush.msrb.mxu0 %v792_v33  ;;  %v900_v8 = vld [vmem:[#allocation2 + $0x500] sm:$0xff] }
 0x164   : > { %2002 = vmatpush.msrb.mxu1 %v856_v40  ;;  %v3513_v22 = vld [vmem:[%s3989_s24 + $0x20] sm:$0xff] }
 0x165   : > { %v4243_v25 = vadd.f32 %v1422_v23, %v1379_v24  ;;  %v1445_v26 = vpop.f32.mrf.mxu0  ;;  %v1489_v9 = vpop.f32.mrf.mxu1  ;;  %v3514_v23 = vld [vmem:[%s3989_s24 + $0x28] sm:$0xff]  ;;  %v772_v24 = vld [vmem:[#allocation2 + $0x100] sm:$0xff] }
 0x166   : > { %v1490_v43 = vadd.f32 %v1489_v9, %v1445_v26  ;;  %2003 = vmatpush.msrb.mxu1 %v852_v49  ;;  %v964_v26 = vld [vmem:[#allocation2 + $0x700] sm:$0xff] }
 0x167   : > { %5053 = vst [vmem:[#allocation10_spill] sm:$0xff] %v4243_v25  ;;  %1726 = vmatmul.f32.gmra.mxu2 %v4117_v28  ;;  %1770 = vmatmul.f32.gmra.mxu3 %v4119_v29  ;;  %v984_v29 = vld [vmem:[#allocation2 + $0x7a0] sm:$0xff]  ;;  %v962_v25 = vld [vmem:[#allocation2 + $0x6f0] sm:$0xff] }
 0x168   : > { %1641 = vmatmul.f32.gmra.mxu0 %v4121_v36  ;;  %1685 = vmatmul.f32.gmra.mxu1 %v4123_v37  ;;  %v916_v36 = vld [vmem:[#allocation2 + $0x580] sm:$0xff] }
 0x169   : > { %2090 = vmatpush.msrb.mxu3 %v984_v29  ;;  %v788_v37 = vld [vmem:[#allocation2 + $0x180] sm:$0xff]  ;;  %2047 = vmatpush.msrb.mxu2 %v916_v36  ;;  %v3518_v36 = vld [vmem:[%s3989_s24 + $0x48] sm:$0xff] }
 0x16a   : > { %v1381_v18 = vpop.f32.mrf.mxu2  ;;  %v1425_v19 = vpop.f32.mrf.mxu3  ;;  %1959 = vmatpush.msrb.mxu0 %v788_v37  ;;  %2004 = vmatpush.msrb.mxu1 %v848_v35  ;;  %v832_v33 = vld [vmem:[#allocation2 + $0x2e0] sm:$0xff]  ;;  %v3520_v35 = vld [vmem:[%s3989_s24 + $0x58] sm:$0xff] }
 0x16b   : > { %v1382_v17 = vadd.f32 %v1381_v18, %v1338_v12  ;;  %2091 = vmatpush.msrb.mxu3 %v980_v41  ;;  %2048 = vmatpush.msrb.mxu2 %v912_v42  ;;  %v836_v12 = vld [vmem:[#allocation2 + $0x300] sm:$0xff] }
 0x16c   : > { %1960 = vmatpush.msrb.mxu0 %v784_v34  ;;  %2005 = vmatpush.msrb.mxu1 %v844_v51  ;;  %v896_v18 = vld [vmem:[#allocation2 + $0x4e0] sm:$0xff] }
 0x16d   : > { %v4249_v27 = vadd.f32 %v1425_v19, %v1382_v17  ;;  %v1448_v32 = vpop.f32.mrf.mxu0  ;;  %v1492_v28 = vpop.f32.mrf.mxu1  ;;  %2049 = vmatpush.msrb.mxu2 %v908_v47  ;;  %v768_v19 = vld [vmem:[#allocation2 + $0xe0] sm:$0xff] }
 0x16e   : > { %v1493_v2 = vadd.f32 %v1492_v28, %v1448_v32  ;;  %1961 = vmatpush.msrb.mxu0 %v780_v45  ;;  %2006 = vmatpush.msrb.mxu1 %v840_v5  ;;  %v960_v17 = vld [vmem:[#allocation2 + $0x6e0] sm:$0xff]  ;;  %v3515_v32 = vld [vmem:[%s3989_s24 + $0x30] sm:$0xff]  ;;  %v3516_v28 = vld [vmem:[%s3989_s24 + $0x38] sm:$0xff] }
 0x16f   : > { %5054 = vst [vmem:[#allocation11_spill] sm:$0xff] %v4249_v27  ;;  %1729 = vmatmul.f32.gmra.mxu2 %v4137_v54  ;;  %1773 = vmatmul.f32.gmra.mxu3 %v4139_v55  ;;  %v892_v29 = vld [vmem:[#allocation2 + $0x4c0] sm:$0xff]  ;;  %v3523_v5 = vld [vmem:[%s3989_s24 + $0x70] sm:$0xff] }
 0x170   : > { %1644 = vmatmul.f32.gmra.mxu0 %v4141_v60  ;;  %1688 = vmatmul.f32.gmra.mxu1 %v4143_v61  ;;  %v976_v61 = vld [vmem:[#allocation2 + $0x760] sm:$0xff]  ;;  %v770_v27 = vld [vmem:[#allocation2 + $0xf0] sm:$0xff] }
 0x171   : > { %2092 = vmatpush.msrb.mxu3 %v976_v61  ;;  %2050 = vmatpush.msrb.mxu2 %v904_v1  ;;  %v3517_v40 = vld [vmem:[%s3989_s24 + $0x40] sm:$0xff]  ;;  %v3519_v61 = vld [vmem:[%s3989_s24 + $0x50] sm:$0xff] }
 0x172   : > { %v1533_v30 = vpop.f32.mrf.mxu2  ;;  %v1577_v52 = vpop.f32.mrf.mxu3  ;;  %1962 = vmatpush.msrb.mxu0 %v776_v7  ;;  %2007 = vmatpush.msrb.mxu1 %v836_v12  ;;  %v888_v34 = vld [vmem:[#allocation2 + $0x4a0] sm:$0xff] }
 0x173   : > { %v1534_v53 = vadd.f32 %v1533_v30, %v1490_v43  ;;  %2093 = vmatpush.msrb.mxu3 %v972_v46  ;;  %2051 = vmatpush.msrb.mxu2 %v900_v8  ;;  %v760_v47 = vld [vmem:[#allocation2 + $0xa0] sm:$0xff]  ;;  %v3524_v8 = vld [vmem:[%s3989_s24 + $0x78] sm:$0xff] }
 0x174   : > { %1963 = vmatpush.msrb.mxu0 %v772_v24  ;;  %2008 = vmatpush.msrb.mxu1 %v832_v33  ;;  %v952_v45 = vld [vmem:[#allocation2 + $0x6a0] sm:$0xff] }
 0x175   : > { %v4255_v54 = vadd.f32 %v1577_v52, %v1534_v53  ;;  %v1451_v55 = vpop.f32.mrf.mxu0  ;;  %v1495_v60 = vpop.f32.mrf.mxu1  ;;  %2094 = vmatpush.msrb.mxu3 %v968_v57  ;;  %2052 = vmatpush.msrb.mxu2 %v896_v18  ;;  %v764_v53 = vld [vmem:[#allocation2 + $0xc0] sm:$0xff] }
 0x176   : > { %v1496_v9 = vadd.f32 %v1495_v60, %v1451_v55  ;;  %1964 = vmatpush.msrb.mxu0 %v768_v19  ;;  %v956_v55 = vld [vmem:[#allocation2 + $0x6c0] sm:$0xff] }
 0x177   : > { %5055 = vst [vmem:[#allocation12_spill] sm:$0xff] %v4255_v54  ;;  %1732 = vmatmul.f32.gmra.mxu2 %v4157_v20  ;;  %1776 = vmatmul.f32.gmra.mxu3 %v4159_v21  ;;  %v828_v60 = vld [vmem:[#allocation2 + $0x2c0] sm:$0xff]  ;;  %v978_v54 = vld [vmem:[#allocation2 + $0x770] sm:$0xff] }
 0x178   : > { %1796 = vmatmul.f32.vlgmr.msra.gmra.mxu0 %v3509_v56  ;;  %1840 = vmatmul.f32.vlgmr.msra.gmra.mxu1 %v3510_v59  ;;  %v3521_v46 = vld [vmem:[%s3989_s24 + $0x60] sm:$0xff]  ;;  %v3522_v56 = vld [vmem:[%s3989_s24 + $0x68] sm:$0xff] }
 0x179   : > { %2095 = vmatpush.msrb.mxu3 %v964_v26  ;;  %2053 = vmatpush.msrb.mxu2 %v892_v29  ;;  %v824_v59 = vld [vmem:[#allocation2 + $0x2a0] sm:$0xff]  ;;  %v3526_v26 = vld [vmem:[%s3989_s24 + $0x88] sm:$0xff]  ;;  %v3527_v29 = vld [vmem:[%s3989_s24 + $0x90] sm:$0xff] }
 0x17a   : > { %v1536_v62 = vpop.f32.mrf.mxu2  ;;  %v1580_v3 = vpop.f32.mrf.mxu3  ;;  %1965 = vmatpush.msrb.mxu0 %v764_v53  ;;  %2009 = vmatpush.msrb.mxu1 %v828_v60  ;;  %v756_v7 = vld [vmem:[#allocation2 + $0x80] sm:$0xff] }
 0x17b   : > { %v1537_v0 = vadd.f32 %v1536_v62, %v1493_v2  ;;  %2096 = vmatpush.msrb.mxu3 %v960_v17  ;;  %v884_v2 = vld [vmem:[#allocation2 + $0x480] sm:$0xff]  ;;  %2054 = vmatpush.msrb.mxu2 %v888_v34 }
 0x17c   : > { %1966 = vmatpush.msrb.mxu0 %v760_v47  ;;  %2010 = vmatpush.msrb.mxu1 %v824_v59  ;;  %v948_v57 = vld [vmem:[#allocation2 + $0x680] sm:$0xff]  ;;  %v3532_v59 = vld [vmem:[%s3989_s24 + $0xb8] sm:$0xff] }
 0x17d   : > { %v4261_v20 = vadd.f32 %v1580_v3, %v1537_v0  ;;  %v1454_v21 = vpop.f32.mrf.mxu0  ;;  %v1498_v6 = vpop.f32.mrf.mxu1  ;;  %2097 = vmatpush.msrb.mxu3 %v956_v55  ;;  %2055 = vmatpush.msrb.mxu2 %v884_v2  ;;  %v3525_v24 = vld [vmem:[%s3989_s24 + $0x80] sm:$0xff]  ;;  %v929_v2 = vld [vmem:[#allocation2 + $0x5e8] sm:$0xff] }
 0x17e   : > { %v1499_v37 = vadd.f32 %v1498_v6, %v1454_v21  ;;  %1967 = vmatpush.msrb.mxu0 %v756_v7  ;;  %v876_v17 = vld [vmem:[#allocation2 + $0x440] sm:$0xff] }
 0x17f   : > { %5056 = vst [vmem:[#allocation13_spill] sm:$0xff] %v4261_v20  ;;  %1884 = vmatmul.f32.vlgmr.msra.gmra.mxu2 %v3511_v58  ;;  %1928 = vmatmul.f32.vlgmr.msra.gmra.mxu3 %v3512_v4  ;;  %v820_v58 = vld [vmem:[#allocation2 + $0x280] sm:$0xff]  ;;  %v786_v20 = vld [vmem:[#allocation2 + $0x170] sm:$0xff] }
 0x180   : > { %1799 = vmatmul.f32.gmra.mxu0 %v3513_v22  ;;  %1843 = vmatmul.f32.gmra.mxu1 %v3514_v23  ;;  %v880_v4 = vld [vmem:[#allocation2 + $0x460] sm:$0xff] }
 0x181   : > { %2098 = vmatpush.msrb.mxu3 %v952_v45  ;;  %v752_v22 = vld [vmem:[#allocation2 + $0x60] sm:$0xff]  ;;  %2011 = vmatpush.msrb.mxu1 %v820_v58 }
 0x182   : > { %v1539_v38 = vpop.f32.mrf.mxu2  ;;  %v1583_v10 = vpop.f32.mrf.mxu3  ;;  %v944_v23 = vld [vmem:[#allocation2 + $0x660] sm:$0xff]  ;;  %2056 = vmatpush.msrb.mxu2 %v880_v4  ;;  %1968 = vmatpush.msrb.mxu0 %v752_v22  ;;  %v925_v22 = vld [vmem:[#allocation2 + $0x5c8] sm:$0xff] }
 0x183   : > { %v1540_v13 = vadd.f32 %v1539_v38, %v1496_v9  ;;  %2099 = vmatpush.msrb.mxu3 %v948_v57  ;;  %v816_v9 = vld [vmem:[#allocation2 + $0x260] sm:$0xff] }
 0x184   : > { %2012 = vmatpush.msrb.mxu1 %v816_v9  ;;  %2057 = vmatpush.msrb.mxu2 %v876_v17  ;;  %v812_v33 = vld [vmem:[#allocation2 + $0x240] sm:$0xff]  ;;  %v3536_v9 = vld [vmem:[%s3989_s24 + $0xd8] sm:$0xff] }
 0x185   : > { %v4267_v15 = vadd.f32 %v1583_v10, %v1540_v13  ;;  %v1457_v16 = vpop.f32.mrf.mxu0  ;;  %v1501_v39 = vpop.f32.mrf.mxu1  ;;  %2100 = vmatpush.msrb.mxu3 %v944_v23  ;;  %v804_v60 = vld [vmem:[#allocation2 + $0x200] sm:$0xff]  ;;  %v797_v23 = vld [vmem:[#allocation2 + $0x1c8] sm:$0xff] }
 0x186   : > { %v1502_v62 = vadd.f32 %v1501_v39, %v1457_v16  ;;  %v748_v39 = vld [vmem:[#allocation2 + $0x40] sm:$0xff]  ;;  %2013 = vmatpush.msrb.mxu1 %v812_v33 }
 0x187   : > { %5057 = vst [vmem:[#allocation14_spill] sm:$0xff] %v4267_v15  ;;  %1887 = vmatmul.f32.gmra.mxu2 %v3515_v32  ;;  %1931 = vmatmul.f32.gmra.mxu3 %v3516_v28  ;;  %v940_v32 = vld [vmem:[#allocation2 + $0x640] sm:$0xff] }
 0x188   : > { %1802 = vmatmul.f32.gmra.mxu0 %v3517_v40  ;;  %1846 = vmatmul.f32.gmra.mxu1 %v3518_v36  ;;  %v744_v28 = vld [vmem:[#allocation2 + $0x20] sm:$0xff]  ;;  %v3528_v40 = vld [vmem:[%s3989_s24 + $0x98] sm:$0xff] }
 0x189   : > { %1969 = vmatpush.msrb.mxu0 %v748_v39  ;;  %2101 = vmatpush.msrb.mxu3 %v940_v32  ;;  %v872_v36 = vld [vmem:[#allocation2 + $0x420] sm:$0xff] }
 0x18a   : > { %v1542_v41 = vpop.f32.mrf.mxu2  ;;  %v1586_v49 = vpop.f32.mrf.mxu3  ;;  %2058 = vmatpush.msrb.mxu2 %v872_v36  ;;  %v868_v45 = vld [vmem:[#allocation2 + $0x400] sm:$0xff]  ;;  %v857_v36 = vld [vmem:[#allocation2 + $0x3a8] sm:$0xff] }
 0x18b   : > { %v1543_v42 = vadd.f32 %v1542_v41, %v1499_v37  ;;  %v936_v37 = vld [vmem:[#allocation2 + $0x620] sm:$0xff]  ;;  %1970 = vmatpush.msrb.mxu0 %v744_v28 }
 0x18c   : > { %v3529_v41 = vld [vmem:[%s3989_s24 + $0xa0] sm:$0xff]  ;;  %2102 = vmatpush.msrb.mxu3 %v936_v37  ;;  %2059 = vmatpush.msrb.mxu2 %v868_v45  ;;  %v917_v37 = vld [vmem:[#allocation2 + $0x588] sm:$0xff] }
 0x18d   : > { %v4273_v43 = vadd.f32 %v1586_v49, %v1543_v42  ;;  %v1460_v30 = vpop.f32.mrf.mxu0  ;;  %v1504_v52 = vpop.f32.mrf.mxu1  ;;  %v3530_v49 = vld [vmem:[%s3989_s24 + $0xa8] sm:$0xff]  ;;  %v740_v42 = vld [vmem:[#allocation2] sm:$0xff] }
 0x18e   : > { %v1505_v38 = vadd.f32 %v1504_v52, %v1460_v30  ;;  %v808_v30 = vld [vmem:[#allocation2 + $0x220] sm:$0xff]  ;;  %1971 = vmatpush.msrb.mxu0 %v740_v42  ;;  %2220 = vmatpush.msra.mxu2 %v929_v2  ;;  %v789_v42 = vld [vmem:[#allocation2 + $0x188] sm:$0xff] }
 0x18f   : > { %5058 = vst [vmem:[#allocation15_spill] sm:$0xff] %v4273_v43  ;;  %1890 = vmatmul.f32.gmra.mxu2 %v3519_v61  ;;  %1934 = vmatmul.f32.gmra.mxu3 %v3520_v35 }
 0x190   : > { %1805 = vmatmul.f32.gmra.mxu0 %v3521_v46  ;;  %1849 = vmatmul.f32.gmra.mxu1 %v3522_v56  ;;  %v932_v46 = vld [vmem:[#allocation2 + $0x600] sm:$0xff]  ;;  %v3531_v56 = vld [vmem:[%s3989_s24 + $0xb0] sm:$0xff] }
 0x191   : > { %2014 = vmatpush.msrb.mxu1 %v808_v30  ;;  %2103 = vmatpush.msrb.mxu3 %v932_v46  ;;  %v981_v30 = vld [vmem:[#allocation2 + $0x788] sm:$0xff]  ;;  %v4316_v46 = vld [vmem:[%s4313_s26] sm:$0xff] }
 0x192   : > { %v1545_v3 = vpop.f32.mrf.mxu2  ;;  %v1589_v0 = vpop.f32.mrf.mxu3  ;;  %2221 = vmatpush.msra.mxu2 %v925_v22 }
 0x193   : > { %v1546_v21 = vadd.f32 %v1545_v3, %v1502_v62  ;;  %2015 = vmatpush.msrb.mxu1 %v804_v60  ;;  %v3533_v62 = vld [vmem:[%s3989_s24 + $0xc0] sm:$0xff]  ;;  %v3534_v3 = vld [vmem:[%s3989_s24 + $0xc8] sm:$0xff] }
 0x194   : > { %v913_v60 = vld [vmem:[#allocation2 + $0x568] sm:$0xff] }
 0x195   : > { %v4279_v6 = vadd.f32 %v1589_v0, %v1546_v21  ;;  %v1463_v51 = vpop.f32.mrf.mxu0  ;;  %v1507_v1 = vpop.f32.mrf.mxu1  ;;  %v801_v0 = vld [vmem:[#allocation2 + $0x1e8] sm:$0xff] }
 0x196   : > { %v1508_v52 = vadd.f32 %v1507_v1, %v1463_v51  ;;  %v993_v21 = vld [vmem:[#allocation2 + $0x7e8] sm:$0xff]  ;;  %2132 = vmatpush.msra.mxu0 %v801_v0 }
 0x197   : > { %5059 = vst [vmem:[#allocation16_spill] sm:$0xff] %v4279_v6  ;;  %1893 = vmatmul.f32.gmra.mxu2 %v3523_v5  ;;  %1937 = vmatmul.f32.gmra.mxu3 %v3524_v8  ;;  %v865_v8 = vld [vmem:[#allocation2 + $0x3e8] sm:$0xff] }
 0x198   : > { %1808 = vmatmul.f32.gmra.mxu0 %v3525_v24  ;;  %1852 = vmatmul.f32.gmra.mxu1 %v3526_v26  ;;  %v989_v24 = vld [vmem:[#allocation2 + $0x7c8] sm:$0xff]  ;;  %v3535_v26 = vld [vmem:[%s3989_s24 + $0xd0] sm:$0xff] }
 0x199   : > { %2264 = vmatpush.msra.mxu3 %v993_v21  ;;  %2176 = vmatpush.msra.mxu1 %v865_v8  ;;  %v977_v0 = vld [vmem:[#allocation2 + $0x768] sm:$0xff] }
 0x19a   : > { %v1548_v10 = vpop.f32.mrf.mxu2  ;;  %v1592_v13 = vpop.f32.mrf.mxu3  ;;  %2133 = vmatpush.msra.mxu0 %v797_v23  ;;  %v849_v21 = vld [vmem:[#allocation2 + $0x368] sm:$0xff] }
 0x19b   : > { %v1549_v16 = vadd.f32 %v1548_v10, %v1505_v38  ;;  %v861_v38 = vld [vmem:[#allocation2 + $0x3c8] sm:$0xff]  ;;  %2265 = vmatpush.msra.mxu3 %v989_v24  ;;  %v4328_v24 = vld [vmem:[%s4313_s26 + $0x10] sm:$0xff] }
 0x19c   : > { %v921_v10 = vld [vmem:[#allocation2 + $0x5a8] sm:$0xff]  ;;  %2177 = vmatpush.msra.mxu1 %v861_v38 }
 0x19d   : > { %v4285_v12 = vadd.f32 %v1592_v13, %v1549_v16  ;;  %v1466_v18 = vpop.f32.mrf.mxu0  ;;  %v1510_v19 = vpop.f32.mrf.mxu1  ;;  %v3537_v13 = vld [vmem:[%s3989_s24 + $0xe0] sm:$0xff]  ;;  %v3538_v16 = vld [vmem:[%s3989_s24 + $0xe8] sm:$0xff]  ;;  %2222 = vmatpush.msra.mxu2 %v921_v10 }
 0x19e   : > { %v1511_v51 = vadd.f32 %v1510_v19, %v1466_v18  ;;  %2178 = vmatpush.msra.mxu1 %v857_v36 }
 0x19f   : > { %5060 = vst [vmem:[#allocation17_spill] sm:$0xff] %v4285_v12  ;;  %1896 = vmatmul.f32.gmra.mxu2 %v3527_v29  ;;  %1940 = vmatmul.f32.gmra.mxu3 %v3528_v40  ;;  %v793_v29 = vld [vmem:[#allocation2 + $0x1a8] sm:$0xff]  ;;  %v4475_v12 = vld [vmem:[%s4313_s26 + $0x118] sm:$0xff] }
 0x1a0   : > { %1811 = vmatmul.f32.gmra.mxu0 %v3529_v41  ;;  %1855 = vmatmul.f32.gmra.mxu1 %v3530_v49  ;;  %v985_v40 = vld [vmem:[#allocation2 + $0x7a8] sm:$0xff]  ;;  %v3539_v41 = vld [vmem:[%s3989_s24 + $0xf0] sm:$0xff]  ;;  %v3540_v49 = vld [vmem:[%s3989_s24 + $0xf8] sm:$0xff] }
 0x1a1   : > { %2134 = vmatpush.msra.mxu0 %v793_v29  ;;  %2266 = vmatpush.msra.mxu3 %v985_v40  ;;  %v773_v29 = vld [vmem:[#allocation2 + $0x108] sm:$0xff] }
 0x1a2   : > { %v1551_v53 = vpop.f32.mrf.mxu2  ;;  %v1595_v55 = vpop.f32.mrf.mxu3  ;;  %2223 = vmatpush.msra.mxu2 %v917_v37  ;;  %v965_v40 = vld [vmem:[#allocation2 + $0x708] sm:$0xff] }
 0x1a3   : > { %v1552_v34 = vadd.f32 %v1551_v53, %v1508_v52  ;;  %v3541_v52 = vld [vmem:[%s3989_s24 + $0x100] sm:$0xff]  ;;  %v3542_v53 = vld [vmem:[%s3989_s24 + $0x108] sm:$0xff]  ;;  %2135 = vmatpush.msra.mxu0 %v789_v42  ;;  %2267 = vmatpush.msra.mxu3 %v981_v30  ;;  %v4346_v42 = vld [vmem:[%s4313_s26 + $0x30] sm:$0xff] }
 0x1a4   : > { %2224 = vmatpush.msra.mxu2 %v913_v60  ;;  %v4349_v30 = vld [vmem:[%s4313_s26 + $0x40] sm:$0xff] }
 0x1a5   : > { %v4291_v61 = vadd.f32 %v1595_v55, %v1552_v34  ;;  %v1469_v35 = vpop.f32.mrf.mxu0  ;;  %v1513_v47 = vpop.f32.mrf.mxu1  ;;  %v853_v55 = vld [vmem:[#allocation2 + $0x388] sm:$0xff]  ;;  %2268 = vmatpush.msra.mxu3 %v977_v0 }
 0x1a6   : > { %v1514_v39 = vadd.f32 %v1513_v47, %v1469_v35  ;;  %2179 = vmatpush.msra.mxu1 %v853_v55 }
 0x1a7   : > { %5061 = vst [vmem:[#allocation18_spill] sm:$0xff] %v4291_v61  ;;  %1899 = vmatmul.f32.gmra.mxu2 %v3531_v56  ;;  %1943 = vmatmul.f32.gmra.mxu3 %v3532_v59  ;;  %v4465_v61 = vld [vmem:[%s4313_s26 + $0x108] sm:$0xff] }
 0x1a8   : > { %1814 = vmatmul.f32.gmra.mxu0 %v3533_v62  ;;  %1858 = vmatmul.f32.gmra.mxu1 %v3534_v3  ;;  %v4321_v62 = vld [vmem:[%s4313_s26 + $0x8] sm:$0xff] }
 0x1a9   : > { %v785_v3 = vld [vmem:[#allocation2 + $0x168] sm:$0xff]  ;;  %2180 = vmatpush.msra.mxu1 %v849_v21 }
 0x1aa   : > { %v1554_v1 = vpop.f32.mrf.mxu2  ;;  %v1598_v7 = vpop.f32.mrf.mxu3  ;;  %2136 = vmatpush.msra.mxu0 %v785_v3  ;;  %v893_v3 = vld [vmem:[#allocation2 + $0x4c8] sm:$0xff] }
 0x1ab   : > { %v1555_v57 = vadd.f32 %v1554_v1, %v1511_v51  ;;  %v909_v51 = vld [vmem:[#allocation2 + $0x548] sm:$0xff]  ;;  %v3543_v1 = vld [vmem:[%s3989_s24 + $0x110] sm:$0xff] }
 0x1ac   : > { %2225 = vmatpush.msra.mxu2 %v909_v51 }
 0x1ad   : > { %v4297_v58 = vadd.f32 %v1598_v7, %v1555_v57  ;;  %v1621_v4 = vpop.f32.mrf.mxu0  ;;  %v1665_v5 = vpop.f32.mrf.mxu1  ;;  %v3544_v7 = vld [vmem:[%s3989_s24 + $0x118] sm:$0xff]  ;;  %v781_v57 = vld [vmem:[#allocation2 + $0x148] sm:$0xff] }
 0x1ae   : > { %v1666_v34 = vadd.f32 %v1665_v5, %v1621_v4  ;;  %v973_v4 = vld [vmem:[#allocation2 + $0x748] sm:$0xff]  ;;  %2137 = vmatpush.msra.mxu0 %v781_v57  ;;  %v4367_v57 = vld [vmem:[%s4313_s26 + $0x60] sm:$0xff] }
 0x1af   : > { %5062 = vst [vmem:[#allocation19_spill] sm:$0xff] %v4297_v58  ;;  %1902 = vmatmul.f32.gmra.mxu2 %v3535_v26  ;;  %1946 = vmatmul.f32.gmra.mxu3 %v3536_v9  ;;  %v4331_v26 = vld [vmem:[%s4313_s26 + $0x20] sm:$0xff]  ;;  %v4334_v9 = vld [vmem:[%s4313_s26 + $0x18] sm:$0xff] }
 0x1b0   : > { %1817 = vmatmul.f32.gmra.mxu0 %v3537_v13  ;;  %1861 = vmatmul.f32.gmra.mxu1 %v3538_v16  ;;  %v4339_v16 = vld [vmem:[%s4313_s26 + $0x28] sm:$0xff] }
 0x1b1   : > { %2269 = vmatpush.msra.mxu3 %v973_v4  ;;  %v4370_v4 = vld [vmem:[%s4313_s26 + $0x58] sm:$0xff] }
 0x1b2   : > { %v1557_v18 = vpop.f32.mrf.mxu2  ;;  %v1601_v19 = vpop.f32.mrf.mxu3 }
 0x1b3   : > { %v1558_v17 = vadd.f32 %v1557_v18, %v1514_v39  ;;  %v845_v39 = vld [vmem:[#allocation2 + $0x348] sm:$0xff] }
 0x1b4   : > { %v905_v18 = vld [vmem:[#allocation2 + $0x528] sm:$0xff]  ;;  %2181 = vmatpush.msra.mxu1 %v845_v39 }
 0x1b5   : > { %v4303_v32 = vadd.f32 %v1601_v19, %v1558_v17  ;;  %v1624_v28 = vpop.f32.mrf.mxu0  ;;  %v1668_v33 = vpop.f32.mrf.mxu1  ;;  %2226 = vmatpush.msra.mxu2 %v905_v18  ;;  %v777_v19 = vld [vmem:[#allocation2 + $0x128] sm:$0xff] }
 0x1b6   : > { %v1669_v5 = vadd.f32 %v1668_v33, %v1624_v28  ;;  %v969_v17 = vld [vmem:[#allocation2 + $0x728] sm:$0xff]  ;;  %2138 = vmatpush.msra.mxu0 %v777_v19 }
 0x1b7   : > { %5063 = vst [vmem:[#allocation20_spill] sm:$0xff] %v4303_v32  ;;  %1905 = vmatmul.f32.gmra.mxu2 %v3539_v41  ;;  %1949 = vmatmul.f32.gmra.mxu3 %v3540_v49  ;;  %v841_v28 = vld [vmem:[#allocation2 + $0x328] sm:$0xff] }
 0x1b8   : > { %1820 = vmatmul.f32.gmra.mxu0 %v3541_v52  ;;  %1864 = vmatmul.f32.gmra.mxu1 %v3542_v53  ;;  %v901_v33 = vld [vmem:[#allocation2 + $0x508] sm:$0xff]  ;;  %v4352_v52 = vld [vmem:[%s4313_s26 + $0x38] sm:$0xff] }
 0x1b9   : > { %2270 = vmatpush.msra.mxu3 %v969_v17  ;;  %2182 = vmatpush.msra.mxu1 %v841_v28  ;;  %v829_v39 = vld [vmem:[#allocation2 + $0x2c8] sm:$0xff] }
 0x1ba   : > { %v1709_v35 = vpop.f32.mrf.mxu2  ;;  %v1753_v47 = vpop.f32.mrf.mxu3  ;;  %2227 = vmatpush.msra.mxu2 %v901_v33  ;;  %2139 = vmatpush.msra.mxu0 %v773_v29  ;;  %v889_v18 = vld [vmem:[#allocation2 + $0x4a8] sm:$0xff] }
 0x1bb   : > { %v1710_v45 = vadd.f32 %v1709_v35, %v1666_v34  ;;  %2271 = vmatpush.msra.mxu3 %v965_v40  ;;  %v4357_v34 = vld [vmem:[%s4313_s26 + $0x48] sm:$0xff] }
 0x1bc   : > { %v837_v35 = vld [vmem:[#allocation2 + $0x308] sm:$0xff] }
 0x1bd   : > { %v4318_v56 = vadd.f32 %v1753_v47, %v1710_v45  ;;  %v1627_v59 = vpop.f32.mrf.mxu0  ;;  %v1671_v2 = vpop.f32.mrf.mxu1  ;;  %v897_v47 = vld [vmem:[#allocation2 + $0x4e8] sm:$0xff]  ;;  %2183 = vmatpush.msra.mxu1 %v837_v35  ;;  %v4388_v35 = vld [vmem:[%s4313_s26 + $0x78] sm:$0xff] }
 0x1be   : > { %v1672_v36 = vadd.f32 %v1671_v2, %v1627_v59  ;;  %2228 = vmatpush.msra.mxu2 %v897_v47  ;;  %v769_v45 = vld [vmem:[#allocation2 + $0xe8] sm:$0xff] }
 0x1bf   : > { %5064 = vst [vmem:[#allocation21_spill] sm:$0xff] %v4318_v56  ;;  %1908 = vmatmul.f32.gmra.mxu2 %v3543_v1  ;;  %1952 = vmatmul.f32.gmra.mxu3 %v3544_v7  ;;  %v961_v59 = vld [vmem:[#allocation2 + $0x6e8] sm:$0xff]  ;;  %v4364_v7 = vld [vmem:[%s4313_s26 + $0x50] sm:$0xff] }
 0x1c0   : > { %1972 = vmatmul.f32.vlgmr.msrb.gmra.mxu0 %v4316_v46  ;;  %2016 = vmatmul.f32.vlgmr.msrb.gmra.mxu1 %v4321_v62  ;;  %v833_v2 = vld [vmem:[#allocation2 + $0x2e8] sm:$0xff] }
 0x1c1   : > { %2140 = vmatpush.msra.mxu0 %v769_v45  ;;  %2272 = vmatpush.msra.mxu3 %v961_v59  ;;  %v761_v19 = vld [vmem:[#allocation2 + $0xa8] sm:$0xff] }
 0x1c2   : > { %v1712_v8 = vpop.f32.mrf.mxu2  ;;  %v1756_v22 = vpop.f32.mrf.mxu3  ;;  %2184 = vmatpush.msra.mxu1 %v833_v2  ;;  %2229 = vmatpush.msra.mxu2 %v893_v3  ;;  %v953_v17 = vld [vmem:[#allocation2 + $0x6a8] sm:$0xff] }
 0x1c3   : > { %v1713_v23 = vadd.f32 %v1712_v8, %v1669_v5  ;;  %v825_v28 = vld [vmem:[#allocation2 + $0x2a8] sm:$0xff] }
 0x1c4   : > { %v885_v33 = vld [vmem:[#allocation2 + $0x488] sm:$0xff]  ;;  %2185 = vmatpush.msra.mxu1 %v829_v39  ;;  %2230 = vmatpush.msra.mxu2 %v889_v18 }
 0x1c5   : > { %v4336_v38 = vadd.f32 %v1756_v22, %v1713_v23  ;;  %v1630_v10 = vpop.f32.mrf.mxu0  ;;  %v1674_v13 = vpop.f32.mrf.mxu1  ;;  %v4375_v23 = vld [vmem:[%s4313_s26 + $0x68] sm:$0xff] }
 0x1c6   : > { %v1675_v0 = vadd.f32 %v1674_v13, %v1630_v10  ;;  %v765_v10 = vld [vmem:[#allocation2 + $0xc8] sm:$0xff]  ;;  %2186 = vmatpush.msra.mxu1 %v825_v28  ;;  %2231 = vmatpush.msra.mxu2 %v885_v33  ;;  %v4403_v28 = vld [vmem:[%s4313_s26 + $0xa0] sm:$0xff]  ;;  %v4406_v33 = vld [vmem:[%s4313_s26 + $0x98] sm:$0xff] }
 0x1c7   : > { %5065 = vst [vmem:[#allocation22_spill] sm:$0xff] %v4336_v38  ;;  %2060 = vmatmul.f32.vlgmr.msrb.gmra.mxu2 %v4328_v24  ;;  %2104 = vmatmul.f32.vlgmr.msrb.gmra.mxu3 %v4334_v9  ;;  %v957_v13 = vld [vmem:[#allocation2 + $0x6c8] sm:$0xff]  ;;  %v866_v38 = vld [vmem:[#allocation2 + $0x3f0] sm:$0xff] }
 0x1c8   : > { %1975 = vmatmul.f32.gmra.mxu0 %v4331_v26  ;;  %2019 = vmatmul.f32.gmra.mxu1 %v4339_v16  ;;  %v757_v59 = vld [vmem:[#allocation2 + $0x88] sm:$0xff] }
 0x1c9   : > { %2141 = vmatpush.msra.mxu0 %v765_v10  ;;  %2273 = vmatpush.msra.mxu3 %v957_v13  ;;  %v949_v2 = vld [vmem:[#allocation2 + $0x688] sm:$0xff] }
 0x1ca   : > { %v1715_v37 = vpop.f32.mrf.mxu2  ;;  %v1759_v41 = vpop.f32.mrf.mxu3  ;;  %v821_v3 = vld [vmem:[#allocation2 + $0x288] sm:$0xff] }
 0x1cb   : > { %v1716_v49 = vadd.f32 %v1715_v37, %v1672_v36  ;;  %2142 = vmatpush.msra.mxu0 %v761_v19  ;;  %2274 = vmatpush.msra.mxu3 %v953_v17  ;;  %v749_v19 = vld [vmem:[#allocation2 + $0x48] sm:$0xff]  ;;  %v4400_v17 = vld [vmem:[%s4313_s26 + $0x90] sm:$0xff] }
 0x1cc   : > { %2187 = vmatpush.msra.mxu1 %v821_v3  ;;  %v873_v3 = vld [vmem:[#allocation2 + $0x428] sm:$0xff] }
 0x1cd   : > { %v4354_v53 = vadd.f32 %v1759_v41, %v1716_v49  ;;  %v1633_v55 = vpop.f32.mrf.mxu0  ;;  %v1677_v60 = vpop.f32.mrf.mxu1  ;;  %v4382_v41 = vld [vmem:[%s4313_s26 + $0x70] sm:$0xff]  ;;  %v4385_v49 = vld [vmem:[%s4313_s26 + $0x80] sm:$0xff]  ;;  %2143 = vmatpush.msra.mxu0 %v757_v59  ;;  %2275 = vmatpush.msra.mxu3 %v949_v2  ;;  %v745_v59 = vld [vmem:[#allocation2 + $0x28] sm:$0xff] }
 0x1ce   : > { %v1678_v29 = vadd.f32 %v1677_v60, %v1633_v55  ;;  %v4393_v60 = vld [vmem:[%s4313_s26 + $0x88] sm:$0xff] }
 0x1cf   : > { %5066 = vst [vmem:[#allocation23_spill] sm:$0xff] %v4354_v53  ;;  %2063 = vmatmul.f32.gmra.mxu2 %v4346_v42  ;;  %2107 = vmatmul.f32.gmra.mxu3 %v4352_v52  ;;  %v813_v2 = vld [vmem:[#allocation2 + $0x248] sm:$0xff] }
 0x1d0   : > { %1978 = vmatmul.f32.gmra.mxu0 %v4349_v30  ;;  %2022 = vmatmul.f32.gmra.mxu1 %v4357_v34  ;;  %v4447_v53 = vld [vmem:[%s4313_s26 + $0xe8] sm:$0xff] }
 0x1d2   : > { %v1718_v21 = vpop.f32.mrf.mxu2  ;;  %v1762_v51 = vpop.f32.mrf.mxu3 }
 0x1d3   : > { %v1719_v1 = vadd.f32 %v1718_v21, %v1675_v0  ;;  %v881_v0 = vld [vmem:[#allocation2 + $0x468] sm:$0xff] }
 0x1d4   : > { %v753_v21 = vld [vmem:[#allocation2 + $0x68] sm:$0xff]  ;;  %2232 = vmatpush.msra.mxu2 %v881_v0 }
 0x1d5   : > { %v4372_v5 = vadd.f32 %v1762_v51, %v1719_v1  ;;  %v1636_v8 = vpop.f32.mrf.mxu0  ;;  %v1680_v22 = vpop.f32.mrf.mxu1  ;;  %v945_v51 = vld [vmem:[#allocation2 + $0x668] sm:$0xff]  ;;  %2144 = vmatpush.msra.mxu0 %v753_v21 }
 0x1d6   : > { %v817_v1 = vld [vmem:[#allocation2 + $0x268] sm:$0xff]  ;;  %v1681_v10 = vadd.f32 %v1680_v22, %v1636_v8  ;;  %2276 = vmatpush.msra.mxu3 %v945_v51 }
 0x1d7   : > { %5067 = vst [vmem:[#allocation24_spill] sm:$0xff] %v4372_v5  ;;  %2066 = vmatmul.f32.gmra.mxu2 %v4364_v7  ;;  %2110 = vmatmul.f32.gmra.mxu3 %v4370_v4  ;;  %v937_v0 = vld [vmem:[#allocation2 + $0x628] sm:$0xff] }
 0x1d8   : > { %1981 = vmatmul.f32.gmra.mxu0 %v4367_v57  ;;  %2025 = vmatmul.f32.gmra.mxu1 %v4375_v23  ;;  %v741_v21 = vld [vmem:[#allocation2 + $0x8] sm:$0xff] }
 0x1d9   : > { %2188 = vmatpush.msra.mxu1 %v817_v1  ;;  %2145 = vmatpush.msra.mxu0 %v749_v19  ;;  %v809_v51 = vld [vmem:[#allocation2 + $0x228] sm:$0xff]  ;;  %v4418_v19 = vld [vmem:[%s4313_s26 + $0xb0] sm:$0xff] }
 0x1da   : > { %v1721_v40 = vpop.f32.mrf.mxu2  ;;  %v1765_v36 = vpop.f32.mrf.mxu3 }
 0x1db   : > { %v1722_v37 = vadd.f32 %v1721_v40, %v1678_v29  ;;  %v4411_v40 = vld [vmem:[%s4313_s26 + $0xa8] sm:$0xff]  ;;  %2146 = vmatpush.msra.mxu0 %v745_v59  ;;  %2189 = vmatpush.msra.mxu1 %v813_v2 }
 0x1dc   : > { %v4429_v59 = vld [vmem:[%s4313_s26 + $0xc8] sm:$0xff] }
 0x1dd   : > { %v4390_v47 = vadd.f32 %v1765_v36, %v1722_v37  ;;  %v1639_v45 = vpop.f32.mrf.mxu0  ;;  %v1683_v55 = vpop.f32.mrf.mxu1  ;;  %v877_v36 = vld [vmem:[#allocation2 + $0x448] sm:$0xff]  ;;  %2147 = vmatpush.msra.mxu0 %v741_v21  ;;  %2190 = vmatpush.msra.mxu1 %v809_v51  ;;  %v802_v21 = vld [vmem:[#allocation2 + $0x1f0] sm:$0xff] }
 0x1de   : > { %v941_v37 = vld [vmem:[#allocation2 + $0x648] sm:$0xff]  ;;  %2233 = vmatpush.msra.mxu2 %v877_v36  ;;  %v1684_v1 = vadd.f32 %v1683_v55, %v1639_v45  ;;  %v4421_v36 = vld [vmem:[%s4313_s26 + $0xc0] sm:$0xff]  ;;  %v994_v51 = vld [vmem:[#allocation2 + $0x7f0] sm:$0xff] }
 0x1df   : > { %5068 = vst [vmem:[#allocation25_spill] sm:$0xff] %v4390_v47  ;;  %2069 = vmatmul.f32.gmra.mxu2 %v4382_v41  ;;  %2113 = vmatmul.f32.gmra.mxu3 %v4388_v35  ;;  %v869_v2 = vld [vmem:[#allocation2 + $0x408] sm:$0xff] }
 0x1e0   : > { %1984 = vmatmul.f32.gmra.mxu0 %v4385_v49  ;;  %2028 = vmatmul.f32.gmra.mxu1 %v4393_v60 }
 0x1e1   : > { %2277 = vmatpush.msra.mxu3 %v941_v37  ;;  %2234 = vmatpush.msra.mxu2 %v873_v3  ;;  %v4424_v37 = vld [vmem:[%s4313_s26 + $0xb8] sm:$0xff]  ;;  %v933_v3 = vld [vmem:[#allocation2 + $0x608] sm:$0xff] }
 0x1e2   : > { %v1724_v13 = vpop.f32.mrf.mxu2  ;;  %v1768_v39 = vpop.f32.mrf.mxu3  ;;  %2308 = vmatpush.msrb.mxu0 %v802_v21  ;;  %v862_v21 = vld [vmem:[#allocation2 + $0x3d0] sm:$0xff] }
 0x1e3   : > { %v1725_v18 = vadd.f32 %v1724_v13, %v1681_v10  ;;  %2278 = vmatpush.msra.mxu3 %v937_v0  ;;  %2235 = vmatpush.msra.mxu2 %v869_v2  ;;  %v930_v0 = vld [vmem:[#allocation2 + $0x5f0] sm:$0xff]  ;;  %v4439_v2 = vld [vmem:[%s4313_s26 + $0xe0] sm:$0xff] }
 0x1e5   : > { %v4408_v29 = vadd.f32 %v1768_v39, %v1725_v18  ;;  %v1642_v8 = vpop.f32.mrf.mxu0  ;;  %v1686_v22 = vpop.f32.mrf.mxu1  ;;  %v805_v39 = vld [vmem:[#allocation2 + $0x208] sm:$0xff]  ;;  %2279 = vmatpush.msra.mxu3 %v933_v3  ;;  %2396 = vmatpush.msrb.mxu2 %v930_v0  ;;  %v4442_v3 = vld [vmem:[%s4313_s26 + $0xd8] sm:$0xff]  ;;  %v990_v0 = vld [vmem:[#allocation2 + $0x7d0] sm:$0xff] }
 0x1e6   : > { %2191 = vmatpush.msra.mxu1 %v805_v39 }
 0x1e7   : > { %5069 = vst [vmem:[#allocation26_spill] sm:$0xff] %v4408_v29  ;;  %2072 = vmatmul.f32.gmra.mxu2 %v4400_v17  ;;  %2116 = vmatmul.f32.gmra.mxu3 %v4406_v33 }
 0x1e8   : > { %1987 = vmatmul.f32.gmra.mxu0 %v4403_v28  ;;  %2031 = vmatmul.f32.gmra.mxu1 %v4411_v40 }
 0x1e9   : > { %2440 = vmatpush.msrb.mxu3 %v994_v51  ;;  %2352 = vmatpush.msrb.mxu1 %v866_v38  ;;  %v922_v51 = vld [vmem:[#allocation2 + $0x5b0] sm:$0xff] }
 0x1ea   : > { %v1727_v10 = vpop.f32.mrf.mxu2  ;;  %v1771_v13 = vpop.f32.mrf.mxu3 }
 0x1eb   : > { %v1728_v18 = vadd.f32 %v1727_v10, %v1684_v1  ;;  %v1687_v1 = vadd.f32 %v1686_v22, %v1642_v8  ;;  %v926_v8 = vld [vmem:[#allocation2 + $0x5d0] sm:$0xff]  ;;  %2441 = vmatpush.msrb.mxu3 %v990_v0  ;;  %2353 = vmatpush.msrb.mxu1 %v862_v21 }
 0x1ec   : > { %2397 = vmatpush.msrb.mxu2 %v926_v8  ;;  %v798_v22 = vld [vmem:[#allocation2 + $0x1d0] sm:$0xff]  ;;  %v4457_v8 = vld [vmem:[%s4313_s26 + $0x100] sm:$0xff] }
 0x1ed   : > { %v4426_v29 = vadd.f32 %v1771_v13, %v1728_v18  ;;  %v1645_v45 = vpop.f32.mrf.mxu0  ;;  %v1689_v55 = vpop.f32.mrf.mxu1  ;;  %v4436_v18 = vld [vmem:[%s4313_s26 + $0xd0] sm:$0xff]  ;;  %2309 = vmatpush.msrb.mxu0 %v798_v22 }
 0x1ee   : > { %2398 = vmatpush.msrb.mxu2 %v922_v51  ;;  %v858_v22 = vld [vmem:[#allocation2 + $0x3b0] sm:$0xff] }
 0x1ef   : > { %5070 = vst [vmem:[#allocation27_spill] sm:$0xff] %v4426_v29  ;;  %2075 = vmatmul.f32.gmra.mxu2 %v4418_v19  ;;  %2119 = vmatmul.f32.gmra.mxu3 %v4424_v37  ;;  %v918_v0 = vld [vmem:[#allocation2 + $0x590] sm:$0xff] }
 0x1f0   : > { %1990 = vmatmul.f32.gmra.mxu0 %v4421_v36  ;;  %2034 = vmatmul.f32.gmra.mxu1 %v4429_v59  ;;  %v790_v21 = vld [vmem:[#allocation2 + $0x190] sm:$0xff] }
 0x1f1   : > { %v982_v51 = vld [vmem:[#allocation2 + $0x790] sm:$0xff]  ;;  %2354 = vmatpush.msrb.mxu1 %v858_v22  ;;  %2399 = vmatpush.msrb.mxu2 %v918_v0 }
 0x1f2   : > { %v1730_v10 = vpop.f32.mrf.mxu2  ;;  %v1774_v13 = vpop.f32.mrf.mxu3  ;;  %v782_v22 = vld [vmem:[#allocation2 + $0x150] sm:$0xff] }
 0x1f3   : > { %v1731_v39 = vadd.f32 %v1730_v10, %v1687_v1  ;;  %v1690_v1 = vadd.f32 %v1689_v55, %v1645_v45  ;;  %v794_v45 = vld [vmem:[#allocation2 + $0x1b0] sm:$0xff] }
 0x1f4   : > { %v986_v55 = vld [vmem:[#allocation2 + $0x7b0] sm:$0xff]  ;;  %2310 = vmatpush.msrb.mxu0 %v794_v45 }
 0x1f5   : > { %v4444_v29 = vadd.f32 %v1774_v13, %v1731_v39  ;;  %v1797_v47 = vpop.f32.mrf.mxu0  ;;  %v1841_v5 = vpop.f32.mrf.mxu1  ;;  %v4454_v39 = vld [vmem:[%s4313_s26 + $0xf0] sm:$0xff]  ;;  %2442 = vmatpush.msrb.mxu3 %v986_v55 }
 0x1f6   : > { %2311 = vmatpush.msrb.mxu0 %v790_v21  ;;  %v974_v0 = vld [vmem:[#allocation2 + $0x750] sm:$0xff] }
 0x1f7   : > { %5071 = vst [vmem:[#allocation28_spill] sm:$0xff] %v4444_v29  ;;  %2078 = vmatmul.f32.gmra.mxu2 %v4436_v18  ;;  %2122 = vmatmul.f32.gmra.mxu3 %v4442_v3  ;;  %v4460_v29 = vld [vmem:[%s4313_s26 + $0xf8] sm:$0xff] }
 0x1f8   : > { %1993 = vmatmul.f32.gmra.mxu0 %v4439_v2  ;;  %2037 = vmatmul.f32.gmra.mxu1 %v4447_v53 }
 0x1f9   : > { %2443 = vmatpush.msrb.mxu3 %v982_v51  ;;  %2312 = vmatpush.msrb.mxu0 %v786_v20 }
 0x1fa   : > { %v1733_v38 = vpop.f32.mrf.mxu2  ;;  %v1777_v10 = vpop.f32.mrf.mxu3 }
 0x1fb   : > { %v1734_v13 = vadd.f32 %v1733_v38, %v1690_v1  ;;  %v854_v1 = vld [vmem:[#allocation2 + $0x390] sm:$0xff]  ;;  %2444 = vmatpush.msrb.mxu3 %v978_v54  ;;  %2313 = vmatpush.msrb.mxu0 %v782_v22 }
 0x1fc   : > { %v914_v38 = vld [vmem:[#allocation2 + $0x570] sm:$0xff]  ;;  %2355 = vmatpush.msrb.mxu1 %v854_v1 }
 0x1fd   : > { %v4462_v56 = vadd.f32 %v1777_v10, %v1734_v13  ;;  %v1800_v32 = vpop.f32.mrf.mxu0  ;;  %v1844_v58 = vpop.f32.mrf.mxu1  ;;  %v1842_v10 = vadd.f32 %v1841_v5, %v1797_v47  ;;  %2400 = vmatpush.msrb.mxu2 %v914_v38  ;;  %v850_v5 = vld [vmem:[#allocation2 + $0x370] sm:$0xff]  ;;  %2445 = vmatpush.msrb.mxu3 %v974_v0 }
 0x1fe   : > { %v910_v47 = vld [vmem:[#allocation2 + $0x550] sm:$0xff]  ;;  %v1845_v21 = vadd.f32 %v1844_v58, %v1800_v32  ;;  %2356 = vmatpush.msrb.mxu1 %v850_v5 }
 0x1ff   : > { %5072 = vst [vmem:[#allocation29_spill] sm:$0xff] %v4462_v56  ;;  %2081 = vmatmul.f32.gmra.mxu2 %v4454_v39  ;;  %2125 = vmatmul.f32.gmra.mxu3 %v4460_v29  ;;  %v4472_v56 = vld [vmem:[%s4313_s26 + $0x110] sm:$0xff] }
 0x200   : > { %1996 = vmatmul.f32.gmra.mxu0 %v4457_v8  ;;  %2040 = vmatmul.f32.gmra.mxu1 %v4465_v61  ;;  %v842_v58 = vld [vmem:[#allocation2 + $0x330] sm:$0xff] }
 0x201   : > { %2401 = vmatpush.msrb.mxu2 %v910_v47  ;;  %v902_v32 = vld [vmem:[#allocation2 + $0x510] sm:$0xff] }
 0x202   : > { %v1885_v13 = vpop.f32.mrf.mxu2  ;;  %v1929_v45 = vpop.f32.mrf.mxu3  ;;  %v774_v5 = vld [vmem:[#allocation2 + $0x110] sm:$0xff] }
 0x203   : > { %v1886_v55 = vadd.f32 %v1885_v13, %v1842_v10  ;;  %v846_v13 = vld [vmem:[#allocation2 + $0x350] sm:$0xff] }
 0x204   : > { %2357 = vmatpush.msrb.mxu1 %v846_v13  ;;  %v966_v47 = vld [vmem:[#allocation2 + $0x710] sm:$0xff] }
 0x205   : > { %v4477_v6 = vadd.f32 %v1929_v45, %v1886_v55  ;;  %v1803_v43 = vpop.f32.mrf.mxu0  ;;  %v1847_v15 = vpop.f32.mrf.mxu1  ;;  %v906_v45 = vld [vmem:[#allocation2 + $0x530] sm:$0xff] }
 0x206   : > { %2402 = vmatpush.msrb.mxu2 %v906_v45  ;;  %v778_v55 = vld [vmem:[#allocation2 + $0x130] sm:$0xff]  ;;  %v1848_v22 = vadd.f32 %v1847_v15, %v1803_v43  ;;  %2358 = vmatpush.msrb.mxu1 %v842_v58 }
 0x207   : > { %5073 = vst [vmem:[#allocation30_spill] sm:$0xff] %v4477_v6  ;;  %2084 = vmatmul.f32.gmra.mxu2 %v4472_v56  ;;  %2128 = vmatmul.f32.gmra.mxu3 %v4475_v12  ;;  %v970_v6 = vld [vmem:[#allocation2 + $0x730] sm:$0xff] }
 0x208   : > { %2148 = vmatmul.f32.vlgmr.msra.gmra.mxu0 %v4316_v46  ;;  %2192 = vmatmul.f32.vlgmr.msra.gmra.mxu1 %v4321_v62  ;;  %v838_v45 = vld [vmem:[#allocation2 + $0x310] sm:$0xff] }
 0x209   : > { %2314 = vmatpush.msrb.mxu0 %v778_v55  ;;  %2446 = vmatpush.msrb.mxu3 %v970_v6  ;;  %v834_v15 = vld [vmem:[#allocation2 + $0x2f0] sm:$0xff] }
 0x20a   : > { %v1888_v51 = vpop.f32.mrf.mxu2  ;;  %v1932_v1 = vpop.f32.mrf.mxu3  ;;  %2403 = vmatpush.msrb.mxu2 %v902_v32  ;;  %2359 = vmatpush.msrb.mxu1 %v838_v45  ;;  %v894_v43 = vld [vmem:[#allocation2 + $0x4d0] sm:$0xff] }
 0x20b   : > { %v1889_v54 = vadd.f32 %v1888_v51, %v1845_v21  ;;  %2315 = vmatpush.msrb.mxu0 %v774_v5  ;;  %2447 = vmatpush.msrb.mxu3 %v966_v47 }
 0x20c   : > { %2360 = vmatpush.msrb.mxu1 %v834_v15 }
 0x20d   : > { %v4483_v20 = vadd.f32 %v1932_v1, %v1889_v54  ;;  %v1806_v38 = vpop.f32.mrf.mxu0  ;;  %v1850_v10 = vpop.f32.mrf.mxu1  ;;  %2316 = vmatpush.msrb.mxu0 %v770_v27  ;;  %2448 = vmatpush.msrb.mxu3 %v962_v25  ;;  %v762_v25 = vld [vmem:[#allocation2 + $0xb0] sm:$0xff] }
 0x20e   : > { %v1851_v6 = vadd.f32 %v1850_v10, %v1806_v38  ;;  %v954_v27 = vld [vmem:[#allocation2 + $0x6b0] sm:$0xff] }
 0x20f   : > { %5074 = vst [vmem:[#allocation31_spill] sm:$0xff] %v4483_v20  ;;  %2236 = vmatmul.f32.vlgmr.msra.gmra.mxu2 %v4328_v24  ;;  %2280 = vmatmul.f32.vlgmr.msra.gmra.mxu3 %v4334_v9  ;;  %v898_v20 = vld [vmem:[#allocation2 + $0x4f0] sm:$0xff] }
 0x210   : > { %2151 = vmatmul.f32.gmra.mxu0 %v4331_v26  ;;  %2195 = vmatmul.f32.gmra.mxu1 %v4339_v16  ;;  %v826_v38 = vld [vmem:[#allocation2 + $0x2b0] sm:$0xff] }
 0x211   : > { %2404 = vmatpush.msrb.mxu2 %v898_v20  ;;  %v886_v10 = vld [vmem:[#allocation2 + $0x490] sm:$0xff] }
 0x212   : > { %v1891_v0 = vpop.f32.mrf.mxu2  ;;  %v1935_v21 = vpop.f32.mrf.mxu3 }
 0x213   : > { %v1892_v51 = vadd.f32 %v1891_v0, %v1848_v22  ;;  %2405 = vmatpush.msrb.mxu2 %v894_v43  ;;  %v766_v22 = vld [vmem:[#allocation2 + $0xd0] sm:$0xff] }
 0x214   : > { %v958_v0 = vld [vmem:[#allocation2 + $0x6d0] sm:$0xff]  ;;  %2317 = vmatpush.msrb.mxu0 %v766_v22 }
 0x215   : > { %v4489_v1 = vadd.f32 %v1935_v21, %v1892_v51  ;;  %v1809_v54 = vpop.f32.mrf.mxu0  ;;  %v1853_v13 = vpop.f32.mrf.mxu1  ;;  %2449 = vmatpush.msrb.mxu3 %v958_v0  ;;  %v830_v21 = vld [vmem:[#allocation2 + $0x2d0] sm:$0xff] }
 0x216   : > { %v890_v51 = vld [vmem:[#allocation2 + $0x4b0] sm:$0xff]  ;;  %v1854_v45 = vadd.f32 %v1853_v13, %v1809_v54  ;;  %2361 = vmatpush.msrb.mxu1 %v830_v21  ;;  %2318 = vmatpush.msrb.mxu0 %v762_v25 }
 0x217   : > { %5075 = vst [vmem:[#allocation32_spill] sm:$0xff] %v4489_v1  ;;  %2239 = vmatmul.f32.gmra.mxu2 %v4346_v42  ;;  %2283 = vmatmul.f32.gmra.mxu3 %v4352_v52  ;;  %v758_v22 = vld [vmem:[#allocation2 + $0x90] sm:$0xff] }
 0x218   : > { %2154 = vmatmul.f32.gmra.mxu0 %v4349_v30  ;;  %2198 = vmatmul.f32.gmra.mxu1 %v4357_v34  ;;  %v950_v0 = vld [vmem:[#allocation2 + $0x690] sm:$0xff] }
 0x219   : > { %2406 = vmatpush.msrb.mxu2 %v890_v51  ;;  %2450 = vmatpush.msrb.mxu3 %v954_v27  ;;  %v882_v1 = vld [vmem:[#allocation2 + $0x470] sm:$0xff] }
 0x21a   : > { %v1894_v55 = vpop.f32.mrf.mxu2  ;;  %v1938_v58 = vpop.f32.mrf.mxu3  ;;  %2362 = vmatpush.msrb.mxu1 %v826_v38  ;;  %2319 = vmatpush.msrb.mxu0 %v758_v22  ;;  %v754_v54 = vld [vmem:[#allocation2 + $0x70] sm:$0xff] }
 0x21b   : > { %v1895_v20 = vadd.f32 %v1894_v55, %v1851_v6  ;;  %2407 = vmatpush.msrb.mxu2 %v886_v10  ;;  %2451 = vmatpush.msrb.mxu3 %v950_v0  ;;  %v946_v13 = vld [vmem:[#allocation2 + $0x670] sm:$0xff] }
 0x21c   : > { %v818_v21 = vld [vmem:[#allocation2 + $0x270] sm:$0xff]  ;;  %2320 = vmatpush.msrb.mxu0 %v754_v54 }
 0x21d   : > { %v4495_v32 = vadd.f32 %v1938_v58, %v1895_v20  ;;  %v1812_v5 = vpop.f32.mrf.mxu0  ;;  %v1856_v47 = vpop.f32.mrf.mxu1  ;;  %2408 = vmatpush.msrb.mxu2 %v882_v1  ;;  %2452 = vmatpush.msrb.mxu3 %v946_v13  ;;  %v878_v10 = vld [vmem:[#allocation2 + $0x450] sm:$0xff] }
 0x21e   : > { %v1857_v51 = vadd.f32 %v1856_v47, %v1812_v5  ;;  %v746_v22 = vld [vmem:[#allocation2 + $0x30] sm:$0xff] }
 0x21f   : > { %5076 = vst [vmem:[#allocation33_spill] sm:$0xff] %v4495_v32  ;;  %2242 = vmatmul.f32.gmra.mxu2 %v4364_v7  ;;  %2286 = vmatmul.f32.gmra.mxu3 %v4370_v4  ;;  %v822_v32 = vld [vmem:[#allocation2 + $0x290] sm:$0xff] }
 0x220   : > { %2157 = vmatmul.f32.gmra.mxu0 %v4367_v57  ;;  %2201 = vmatmul.f32.gmra.mxu1 %v4375_v23  ;;  %v814_v0 = vld [vmem:[#allocation2 + $0x250] sm:$0xff] }
 0x221   : > { %2363 = vmatpush.msrb.mxu1 %v822_v32  ;;  %2409 = vmatpush.msrb.mxu2 %v878_v10  ;;  %v742_v1 = vld [vmem:[#allocation2 + $0x10] sm:$0xff] }
 0x222   : > { %v1897_v15 = vpop.f32.mrf.mxu2  ;;  %v1941_v43 = vpop.f32.mrf.mxu3  ;;  %v810_v32 = vld [vmem:[#allocation2 + $0x230] sm:$0xff] }
 0x223   : > { %v1898_v6 = vadd.f32 %v1897_v15, %v1854_v45  ;;  %2364 = vmatpush.msrb.mxu1 %v818_v21  ;;  %v750_v45 = vld [vmem:[#allocation2 + $0x50] sm:$0xff] }
 0x224   : > { %2321 = vmatpush.msrb.mxu0 %v750_v45  ;;  %v806_v47 = vld [vmem:[#allocation2 + $0x210] sm:$0xff] }
 0x225   : > { %v4501_v55 = vadd.f32 %v1941_v43, %v1898_v6  ;;  %v1815_v58 = vpop.f32.mrf.mxu0  ;;  %v1859_v20 = vpop.f32.mrf.mxu1  ;;  %2365 = vmatpush.msrb.mxu1 %v814_v0 }
 0x226   : > { %2322 = vmatpush.msrb.mxu0 %v746_v22  ;;  %v1860_v5 = vadd.f32 %v1859_v20, %v1815_v58  ;;  %v934_v58 = vld [vmem:[#allocation2 + $0x610] sm:$0xff] }
 0x227   : > { %2245 = vmatmul.f32.gmra.mxu2 %v4382_v41  ;;  %2289 = vmatmul.f32.gmra.mxu3 %v4388_v35 }
 0x228   : > { %2160 = vmatmul.f32.gmra.mxu0 %v4385_v49  ;;  %2204 = vmatmul.f32.gmra.mxu1 %v4393_v60 }
 0x229   : > { %2323 = vmatpush.msrb.mxu0 %v742_v1  ;;  %2366 = vmatpush.msrb.mxu1 %v810_v32 }
 0x22a   : > { %v1900_v25 = vpop.f32.mrf.mxu2  ;;  %v1944_v27 = vpop.f32.mrf.mxu3 }
 0x22b   : > { %v1901_v38 = vadd.f32 %v1900_v25, %v1857_v51  ;;  %v942_v51 = vld [vmem:[#allocation2 + $0x650] sm:$0xff]  ;;  %2367 = vmatpush.msrb.mxu1 %v806_v47  ;;  %v803_v47 = vld [vmem:[#allocation2 + $0x1f8] sm:$0xff] }
 0x22c   : > { %v874_v25 = vld [vmem:[#allocation2 + $0x430] sm:$0xff]  ;;  %2453 = vmatpush.msrb.mxu3 %v942_v51  ;;  %2484 = vmatpush.msra.mxu0 %v803_v47 }
 0x22d   : > { %v4507_v15 = vadd.f32 %v1944_v27, %v1901_v38  ;;  %v1818_v43 = vpop.f32.mrf.mxu0  ;;  %v1862_v6 = vpop.f32.mrf.mxu1  ;;  %v938_v27 = vld [vmem:[#allocation2 + $0x630] sm:$0xff]  ;;  %2410 = vmatpush.msrb.mxu2 %v874_v25 }
 0x22e   : > { %v870_v38 = vld [vmem:[#allocation2 + $0x410] sm:$0xff]  ;;  %2454 = vmatpush.msrb.mxu3 %v938_v27  ;;  %v1863_v20 = vadd.f32 %v1862_v6, %v1818_v43 }
 0x22f   : > { %2248 = vmatmul.f32.gmra.mxu2 %v4400_v17  ;;  %2292 = vmatmul.f32.gmra.mxu3 %v4406_v33 }
 0x230   : > { %2163 = vmatmul.f32.gmra.mxu0 %v4403_v28  ;;  %2207 = vmatmul.f32.gmra.mxu1 %v4411_v40 }
 0x231   : > { %2411 = vmatpush.msrb.mxu2 %v870_v38  ;;  %2455 = vmatpush.msrb.mxu3 %v934_v58  ;;  %v927_v58 = vld [vmem:[#allocation2 + $0x5d8] sm:$0xff] }
 0x232   : > { %v1903_v54 = vpop.f32.mrf.mxu2  ;;  %v1947_v13 = vpop.f32.mrf.mxu3 }
 0x233   : > { %v1904_v21 = vadd.f32 %v1903_v54, %v1860_v5  ;;  %v931_v5 = vld [vmem:[#allocation2 + $0x5f8] sm:$0xff] }
 0x234   : > { %v995_v54 = vld [vmem:[#allocation2 + $0x7f8] sm:$0xff]  ;;  %2572 = vmatpush.msra.mxu2 %v931_v5 }
 0x235   : > { %v4513_v10 = vadd.f32 %v1947_v13, %v1904_v21  ;;  %v1821_v45 = vpop.f32.mrf.mxu0  ;;  %v1865_v22 = vpop.f32.mrf.mxu1  ;;  %v867_v13 = vld [vmem:[#allocation2 + $0x3f8] sm:$0xff]  ;;  %2616 = vmatpush.msra.mxu3 %v995_v54 }
 0x236   : > { %2528 = vmatpush.msra.mxu1 %v867_v13  ;;  %v1866_v43 = vadd.f32 %v1865_v22, %v1821_v45  ;;  %2573 = vmatpush.msra.mxu2 %v927_v58  ;;  %v795_v5 = vld [vmem:[#allocation2 + $0x1b8] sm:$0xff] }
 0x237   : > { %5077 = vst [vmem:[#allocation34_spill] sm:$0xff] %v4513_v10  ;;  %2251 = vmatmul.f32.gmra.mxu2 %v4418_v19  ;;  %2295 = vmatmul.f32.gmra.mxu3 %v4424_v37  ;;  %v987_v45 = vld [vmem:[#allocation2 + $0x7b8] sm:$0xff] }
 0x238   : > { %2166 = vmatmul.f32.gmra.mxu0 %v4421_v36  ;;  %2210 = vmatmul.f32.gmra.mxu1 %v4429_v59  ;;  %v919_v58 = vld [vmem:[#allocation2 + $0x598] sm:$0xff] }
 0x23a   : > { %v1906_v0 = vpop.f32.mrf.mxu2  ;;  %v1950_v1 = vpop.f32.mrf.mxu3 }
 0x23b   : > { %v1907_v32 = vadd.f32 %v1906_v0, %v1863_v20  ;;  %v799_v20 = vld [vmem:[#allocation2 + $0x1d8] sm:$0xff] }
 0x23c   : > { %v991_v0 = vld [vmem:[#allocation2 + $0x7d8] sm:$0xff]  ;;  %2485 = vmatpush.msra.mxu0 %v799_v20 }
 0x23d   : > { %v4519_v21 = vadd.f32 %v1950_v1, %v1907_v32  ;;  %v1973_v51 = vpop.f32.mrf.mxu0  ;;  %v2017_v25 = vpop.f32.mrf.mxu1  ;;  %v863_v1 = vld [vmem:[#allocation2 + $0x3d8] sm:$0xff]  ;;  %2617 = vmatpush.msra.mxu3 %v991_v0 }
 0x23e   : > { %v923_v32 = vld [vmem:[#allocation2 + $0x5b8] sm:$0xff]  ;;  %v1974_v47 = vadd.f32 %v1973_v51, %v4201_v44  ;;  %2529 = vmatpush.msra.mxu1 %v863_v1  ;;  %2486 = vmatpush.msra.mxu0 %v795_v5  ;;  %v4535_v44 = vld [vmem:[%s5048_s5] sm:$0xf] }
 0x23f   : > { %5078 = vst [vmem:[#allocation35_spill] sm:$0xff] %v4519_v21  ;;  %2254 = vmatmul.f32.gmra.mxu2 %v4436_v18  ;;  %2298 = vmatmul.f32.gmra.mxu3 %v4442_v3  ;;  %v791_v20 = vld [vmem:[#allocation2 + $0x198] sm:$0xff] }
 0x240   : > { %2169 = vmatmul.f32.gmra.mxu0 %v4439_v2  ;;  %2213 = vmatmul.f32.gmra.mxu1 %v4447_v53  ;;  %v2018_v22 = vadd.f32 %v2017_v25, %v1974_v47  ;;  %v983_v0 = vld [vmem:[#allocation2 + $0x798] sm:$0xff] }
 0x241   : > { %2574 = vmatpush.msra.mxu2 %v923_v32  ;;  %2618 = vmatpush.msra.mxu3 %v987_v45  ;;  %v855_v1 = vld [vmem:[#allocation2 + $0x398] sm:$0xff] }
 0x242   : > { %v1909_v6 = vpop.f32.mrf.mxu2  ;;  %v1953_v27 = vpop.f32.mrf.mxu3  ;;  %v915_v32 = vld [vmem:[#allocation2 + $0x578] sm:$0xff]  ;;  %2487 = vmatpush.msra.mxu0 %v791_v20 }
 0x243   : > { %v1910_v38 = vadd.f32 %v1909_v6, %v1866_v43  ;;  %2575 = vmatpush.msra.mxu2 %v919_v58  ;;  %2619 = vmatpush.msra.mxu3 %v983_v0  ;;  %v787_v47 = vld [vmem:[#allocation2 + $0x178] sm:$0xff] }
 0x244   : > { %v979_v45 = vld [vmem:[#allocation2 + $0x778] sm:$0xff]  ;;  %2488 = vmatpush.msra.mxu0 %v787_v47 }
 0x245   : > { %v4526_v54 = vadd.f32 %v1953_v27, %v1910_v38  ;;  %v1976_v13 = vpop.f32.mrf.mxu0  ;;  %v2020_v21 = vpop.f32.mrf.mxu1  ;;  %v4538_v27 = vperm.slane %v4535_v44, 0  ;;  %v859_v38 = vld [vmem:[#allocation2 + $0x3b8] sm:$0xff]  ;;  %2576 = vmatpush.msra.mxu2 %v915_v32  ;;  %2620 = vmatpush.msra.mxu3 %v979_v45 }
 0x246   : > { %2530 = vmatpush.msra.mxu1 %v859_v38  ;;  %v1977_v5 = vadd.f32 %v1976_v13, %v4207_v11  ;;  %v911_v38 = vld [vmem:[#allocation2 + $0x558] sm:$0xff] }
 0x247   : > { %5079 = vst [vmem:[#allocation36_spill] sm:$0xff] %v4526_v54  ;;  %2257 = vmatmul.f32.gmra.mxu2 %v4454_v39  ;;  %2301 = vmatmul.f32.gmra.mxu3 %v4460_v29  ;;  %v783_v58 = vld [vmem:[#allocation2 + $0x158] sm:$0xff] }
 0x248   : > { %2172 = vmatmul.f32.gmra.mxu0 %v4457_v8  ;;  %2216 = vmatmul.f32.gmra.mxu1 %v4465_v61  ;;  %v2021_v11 = vadd.f32 %v2020_v21, %v1977_v5  ;;  %v975_v20 = vld [vmem:[#allocation2 + $0x758] sm:$0xff] }
 0x249   : > { %2531 = vmatpush.msra.mxu1 %v855_v1  ;;  %2577 = vmatpush.msra.mxu2 %v911_v38  ;;  %v907_v0 = vld [vmem:[#allocation2 + $0x538] sm:$0xff] }
 0x24a   : > { %v2061_v51 = vpop.f32.mrf.mxu2  ;;  %v2105_v43 = vpop.f32.mrf.mxu3  ;;  %2489 = vmatpush.msra.mxu0 %v783_v58  ;;  %2621 = vmatpush.msra.mxu3 %v975_v20 }
 0x24b   : > { %v2062_v6 = vadd.f32 %v2061_v51, %v2018_v22  ;;  %2578 = vmatpush.msra.mxu2 %v907_v0 }
 0x24d   : > { %v2106_v54 = vadd.f32 %v2105_v43, %v2062_v6  ;;  %v1979_v10 = vpop.f32.mrf.mxu0  ;;  %v2023_v25 = vpop.f32.mrf.mxu1 }
 0x24f   : > { %v2670_v22 = vadd.f32 %v4538_v27, %v2106_v54  ;;  %2260 = vmatmul.f32.gmra.mxu2 %v4472_v56  ;;  %2304 = vmatmul.f32.gmra.mxu3 %v4475_v12  ;;  %v851_v54 = vld [vmem:[#allocation2 + $0x378] sm:$0xff] }
 0x250   : > { %2324 = vmatmul.f32.vlgmr.msrb.gmra.mxu0 %v4316_v46  ;;  %2368 = vmatmul.f32.vlgmr.msrb.gmra.mxu1 %v4321_v62  ;;  %v847_v46 = vld [vmem:[#allocation2 + $0x358] sm:$0xff]  ;;  %v1980_v62 = vadd.f32 %v1979_v10, %v4213_v48 }
 0x251   : > { %v2706_v13 = vmax.f32 %v2670_v22, 0.0  ;;  %2532 = vmatpush.msra.mxu1 %v851_v54 }
 0x252   : > { %v2064_v51 = vpop.f32.mrf.mxu2  ;;  %v2108_v43 = vpop.f32.mrf.mxu3  ;;  %v2024_v47 = vadd.f32 %v2023_v25, %v1980_v62  ;;  %v899_v25 = vld [vmem:[#allocation2 + $0x4f8] sm:$0xff] }
 0x253   : > { %2742 = vst [vmem:[%s4547_s20] sm:$0xff] %v2706_v13  ;;  %v2065_v6 = vadd.f32 %v2064_v51, %v2021_v11  ;;  %2533 = vmatpush.msra.mxu1 %v847_v46  ;;  %v779_v11 = vld [vmem:[#allocation2 + $0x138] sm:$0xff] }
 0x254   : > { %v971_v13 = vld [vmem:[#allocation2 + $0x738] sm:$0xff]  ;;  %2490 = vmatpush.msra.mxu0 %v779_v11 }
 0x255   : > { %v2109_v21 = vadd.f32 %v2108_v43, %v2065_v6  ;;  %v1982_v1 = vpop.f32.mrf.mxu0  ;;  %v2026_v32 = vpop.f32.mrf.mxu1  ;;  %v843_v51 = vld [vmem:[#allocation2 + $0x338] sm:$0xff]  ;;  %2622 = vmatpush.msra.mxu3 %v971_v13 }
 0x256   : > { %v903_v43 = vld [vmem:[#allocation2 + $0x518] sm:$0xff]  ;;  %2534 = vmatpush.msra.mxu1 %v843_v51 }
 0x257   : > { %v2674_v5 = vadd.f32 %v4538_v27, %v2109_v21  ;;  %2412 = vmatmul.f32.vlgmr.msrb.gmra.mxu2 %v4328_v24  ;;  %2456 = vmatmul.f32.vlgmr.msrb.gmra.mxu3 %v4334_v9  ;;  %v775_v6 = vld [vmem:[#allocation2 + $0x118] sm:$0xff]  ;;  %v1983_v9 = vadd.f32 %v1982_v1, %v4219_v63 }
 0x258   : > { %2327 = vmatmul.f32.gmra.mxu0 %v4331_v26  ;;  %2371 = vmatmul.f32.gmra.mxu1 %v4339_v16  ;;  %v967_v24 = vld [vmem:[#allocation2 + $0x718] sm:$0xff] }
 0x259   : > { %v2710_v48 = vmax.f32 %v2674_v5, 0.0  ;;  %2579 = vmatpush.msra.mxu2 %v903_v43  ;;  %2491 = vmatpush.msra.mxu0 %v775_v6  ;;  %v839_v16 = vld [vmem:[#allocation2 + $0x318] sm:$0xff]  ;;  %v2027_v63 = vadd.f32 %v2026_v32, %v1983_v9 }
 0x25a   : > { %v2067_v10 = vpop.f32.mrf.mxu2  ;;  %v2111_v45 = vpop.f32.mrf.mxu3  ;;  %2623 = vmatpush.msra.mxu3 %v967_v24  ;;  %2535 = vmatpush.msra.mxu1 %v839_v16  ;;  %v771_v21 = vld [vmem:[#allocation2 + $0xf8] sm:$0xff] }
 0x25b   : > { %2746 = vst [vmem:[%s4547_s20 + $0x20] sm:$0xff] %v2710_v48  ;;  %v2068_v22 = vadd.f32 %v2067_v10, %v2024_v47  ;;  %2580 = vmatpush.msra.mxu2 %v899_v25  ;;  %v963_v1 = vld [vmem:[#allocation2 + $0x6f8] sm:$0xff]  ;;  %2492 = vmatpush.msra.mxu0 %v771_v21 }
 0x25c   : > { %v835_v5 = vld [vmem:[#allocation2 + $0x2f8] sm:$0xff]  ;;  %2624 = vmatpush.msra.mxu3 %v963_v1 }
 0x25d   : > { %v2112_v54 = vadd.f32 %v2111_v45, %v2068_v22  ;;  %v1985_v26 = vpop.f32.mrf.mxu0  ;;  %v2029_v38 = vpop.f32.mrf.mxu1  ;;  %v767_v47 = vld [vmem:[#allocation2 + $0xd8] sm:$0xff]  ;;  %2536 = vmatpush.msra.mxu1 %v835_v5 }
 0x25e   : > { %2493 = vmatpush.msra.mxu0 %v767_v47  ;;  %v831_v51 = vld [vmem:[#allocation2 + $0x2d8] sm:$0xff] }
 0x25f   : > { %v2678_v58 = vadd.f32 %v4538_v27, %v2112_v54  ;;  %2415 = vmatmul.f32.gmra.mxu2 %v4346_v42  ;;  %2459 = vmatmul.f32.gmra.mxu3 %v4352_v52  ;;  %v895_v42 = vld [vmem:[#allocation2 + $0x4d8] sm:$0xff] }
 0x260   : > { %2330 = vmatmul.f32.gmra.mxu0 %v4349_v30  ;;  %2374 = vmatmul.f32.gmra.mxu1 %v4357_v34  ;;  %v959_v52 = vld [vmem:[#allocation2 + $0x6d8] sm:$0xff]  ;;  %v1986_v30 = vadd.f32 %v1985_v26, %v4225_v14 }
 0x261   : > { %v2714_v20 = vmax.f32 %v2678_v58, 0.0  ;;  %2581 = vmatpush.msra.mxu2 %v895_v42  ;;  %2625 = vmatpush.msra.mxu3 %v959_v52  ;;  %v891_v43 = vld [vmem:[#allocation2 + $0x4b8] sm:$0xff] }
 0x262   : > { %v2070_v46 = vpop.f32.mrf.mxu2  ;;  %v2114_v0 = vpop.f32.mrf.mxu3  ;;  %v2030_v45 = vadd.f32 %v2029_v38, %v1986_v30  ;;  %v763_v6 = vld [vmem:[#allocation2 + $0xb8] sm:$0xff]  ;;  %2537 = vmatpush.msra.mxu1 %v831_v51 }
 0x263   : > { %2750 = vst [vmem:[%s4547_s20 + $0x40] sm:$0xff] %v2714_v20  ;;  %v2071_v62 = vadd.f32 %v2070_v46, %v2027_v63  ;;  %2582 = vmatpush.msra.mxu2 %v891_v43  ;;  %v955_v24 = vld [vmem:[#allocation2 + $0x6b8] sm:$0xff]  ;;  %2494 = vmatpush.msra.mxu0 %v763_v6 }
 0x264   : > { %v827_v9 = vld [vmem:[#allocation2 + $0x2b8] sm:$0xff]  ;;  %2626 = vmatpush.msra.mxu3 %v955_v24 }
 0x265   : > { %v2115_v48 = vadd.f32 %v2114_v0, %v2071_v62  ;;  %v1988_v34 = vpop.f32.mrf.mxu0  ;;  %v2032_v32 = vpop.f32.mrf.mxu1  ;;  %2538 = vmatpush.msra.mxu1 %v827_v9  ;;  %v951_v38 = vld [vmem:[#allocation2 + $0x698] sm:$0xff] }
 0x266   : > { %2627 = vmatpush.msra.mxu3 %v951_v38  ;;  %v823_v58 = vld [vmem:[#allocation2 + $0x298] sm:$0xff] }
 0x267   : > { %v2682_v10 = vadd.f32 %v4538_v27, %v2115_v48  ;;  %2418 = vmatmul.f32.gmra.mxu2 %v4364_v7  ;;  %2462 = vmatmul.f32.gmra.mxu3 %v4370_v4  ;;  %v887_v7 = vld [vmem:[#allocation2 + $0x498] sm:$0xff]  ;;  %v1989_v4 = vadd.f32 %v1988_v34, %v4231_v31 }
 0x268   : > { %2333 = vmatmul.f32.gmra.mxu0 %v4367_v57  ;;  %2377 = vmatmul.f32.gmra.mxu1 %v4375_v23  ;;  %v759_v23 = vld [vmem:[#allocation2 + $0x98] sm:$0xff] }
 0x269   : > { %v2718_v14 = vmax.f32 %v2682_v10, 0.0  ;;  %2583 = vmatpush.msra.mxu2 %v887_v7  ;;  %v2033_v31 = vadd.f32 %v2032_v32, %v1989_v4  ;;  %2495 = vmatpush.msra.mxu0 %v759_v23  ;;  %v755_v63 = vld [vmem:[#allocation2 + $0x78] sm:$0xff]  ;;  %v5081_v23 = vld [vmem:[#allocation11_spill] sm:$0xff] }
 0x26a   : > { %v2073_v22 = vpop.f32.mrf.mxu2  ;;  %v2117_v11 = vpop.f32.mrf.mxu3  ;;  %2539 = vmatpush.msra.mxu1 %v823_v58  ;;  %v883_v62 = vld [vmem:[#allocation2 + $0x478] sm:$0xff] }
 0x26b   : > { %2754 = vst [vmem:[%s4547_s20 + $0x60] sm:$0xff] %v2718_v14  ;;  %v2074_v13 = vadd.f32 %v2073_v22, %v2030_v45  ;;  %2496 = vmatpush.msra.mxu0 %v755_v63  ;;  %v819_v21 = vld [vmem:[#allocation2 + $0x278] sm:$0xff]  ;;  %2584 = vmatpush.msra.mxu2 %v883_v62 }
 0x26c   : > { %2540 = vmatpush.msra.mxu1 %v819_v21  ;;  %v747_v47 = vld [vmem:[#allocation2 + $0x38] sm:$0xff] }
 0x26d   : > { %v2118_v54 = vadd.f32 %v2117_v11, %v2074_v13  ;;  %v1991_v57 = vpop.f32.mrf.mxu0  ;;  %v2035_v26 = vpop.f32.mrf.mxu1  ;;  %v815_v52 = vld [vmem:[#allocation2 + $0x258] sm:$0xff] }
 0x26e   : > { %v811_v48 = vld [vmem:[#allocation2 + $0x238] sm:$0xff]  ;;  %2541 = vmatpush.msra.mxu1 %v815_v52 }
 0x26f   : > { %v2686_v16 = vadd.f32 %v4538_v27, %v2118_v54  ;;  %2421 = vmatmul.f32.gmra.mxu2 %v4382_v41  ;;  %2465 = vmatmul.f32.gmra.mxu3 %v4388_v35  ;;  %v947_v41 = vld [vmem:[#allocation2 + $0x678] sm:$0xff] }
 0x270   : > { %2336 = vmatmul.f32.gmra.mxu0 %v4385_v49  ;;  %2380 = vmatmul.f32.gmra.mxu1 %v4393_v60  ;;  %v879_v49 = vld [vmem:[#allocation2 + $0x458] sm:$0xff]  ;;  %v1992_v60 = vadd.f32 %v1991_v57, %v4237_v50 }
 0x271   : > { %v2722_v25 = vmax.f32 %v2686_v16, 0.0  ;;  %2628 = vmatpush.msra.mxu3 %v947_v41  ;;  %v751_v35 = vld [vmem:[#allocation2 + $0x58] sm:$0xff]  ;;  %2585 = vmatpush.msra.mxu2 %v879_v49 }
 0x272   : > { %v2076_v20 = vpop.f32.mrf.mxu2  ;;  %v2120_v46 = vpop.f32.mrf.mxu3  ;;  %2497 = vmatpush.msra.mxu0 %v751_v35  ;;  %v743_v50 = vld [vmem:[#allocation2 + $0x18] sm:$0xff]  ;;  %v2036_v34 = vadd.f32 %v2035_v26, %v1992_v60  ;;  %2542 = vmatpush.msra.mxu1 %v811_v48  ;;  %v4607_v35 = vperm.slane %v4535_v44, 1  ;;  %v5084_v48 = vld [vmem:[#allocation14_spill] sm:$0xff] }
 0x273   : > { %2758 = vst [vmem:[%s4547_s20 + $0x80] sm:$0xff] %v2722_v25  ;;  %v2077_v0 = vadd.f32 %v2076_v20, %v2033_v31  ;;  %v807_v14 = vld [vmem:[#allocation2 + $0x218] sm:$0xff]  ;;  %v5082_v20 = vld [vmem:[#allocation12_spill] sm:$0xff] }
 0x274   : > { %2498 = vmatpush.msra.mxu0 %v747_v47  ;;  %v943_v11 = vld [vmem:[#allocation2 + $0x658] sm:$0xff]  ;;  %2543 = vmatpush.msra.mxu1 %v807_v14 }
 0x275   : > { %v2121_v1 = vadd.f32 %v2120_v46, %v2077_v0  ;;  %v1994_v5 = vpop.f32.mrf.mxu0  ;;  %v2038_v42 = vpop.f32.mrf.mxu1  ;;  %v875_v13 = vld [vmem:[#allocation2 + $0x438] sm:$0xff]  ;;  %2629 = vmatpush.msra.mxu3 %v943_v11  ;;  %v3550_v11 = vld [vmem:[%s4313_s26 + $0x28] sm:$0xff] }
 0x276   : > { %2499 = vmatpush.msra.mxu0 %v743_v50  ;;  %2586 = vmatpush.msra.mxu2 %v875_v13  ;;  %v935_v9 = vld [vmem:[#allocation2 + $0x618] sm:$0xff] }
 0x277   : > { %v2690_v30 = vadd.f32 %v4538_v27, %v2121_v1  ;;  %2424 = vmatmul.f32.gmra.mxu2 %v4400_v17  ;;  %2468 = vmatmul.f32.gmra.mxu3 %v4406_v33  ;;  %v939_v17 = vld [vmem:[#allocation2 + $0x638] sm:$0xff]  ;;  %v5080_v33 = vld [vmem:[#allocation10_spill] sm:$0xff] }
 0x278   : > { %2339 = vmatmul.f32.gmra.mxu0 %v4403_v28  ;;  %2383 = vmatmul.f32.gmra.mxu1 %v4411_v40  ;;  %v871_v28 = vld [vmem:[#allocation2 + $0x418] sm:$0xff]  ;;  %v1995_v40 = vadd.f32 %v1994_v5, %v5080_v33  ;;  %v3546_v5 = vld [vmem:[%s4313_s26 + $0x8] sm:$0xff] }
 0x279   : > { %v2726_v32 = vmax.f32 %v2690_v30, 0.0  ;;  %2630 = vmatpush.msra.mxu3 %v939_v17  ;;  %2587 = vmatpush.msra.mxu2 %v871_v28  ;;  %v3548_v14 = vld [vmem:[%s4313_s26 + $0x18] sm:$0xff] }
 0x27a   : > { %v2079_v10 = vpop.f32.mrf.mxu2  ;;  %v2123_v45 = vpop.f32.mrf.mxu3  ;;  %v2039_v7 = vadd.f32 %v2038_v42, %v1995_v40 }
 0x27b   : > { %2762 = vst [vmem:[%s4547_s20 + $0xa0] sm:$0xff] %v2726_v32  ;;  %v2080_v22 = vadd.f32 %v2079_v10, %v2036_v34  ;;  %2631 = vmatpush.msra.mxu3 %v935_v9 }
 0x27d   : > { %v2124_v51 = vadd.f32 %v2123_v45, %v2080_v22  ;;  %v1997_v43 = vpop.f32.mrf.mxu0  ;;  %v2041_v6 = vpop.f32.mrf.mxu1  ;;  %v3547_v45 = vld [vmem:[%s4313_s26 + $0x10] sm:$0xff]  ;;  %v3549_v22 = vld [vmem:[%s4313_s26 + $0x20] sm:$0xff] }
 0x27e   : > { %v1998_v38 = vadd.f32 %v1997_v43, %v5081_v23 }
 0x27f   : > { %v2694_v24 = vadd.f32 %v4538_v27, %v2124_v51  ;;  %2427 = vmatmul.f32.gmra.mxu2 %v4418_v19  ;;  %2471 = vmatmul.f32.gmra.mxu3 %v4424_v37  ;;  %v5085_v51 = vld [vmem:[#allocation15_spill] sm:$0xff] }
 0x280   : > { %2342 = vmatmul.f32.gmra.mxu0 %v4421_v36  ;;  %2386 = vmatmul.f32.gmra.mxu1 %v4429_v59  ;;  %v2042_v36 = vadd.f32 %v2041_v6, %v1998_v38 }
 0x281   : > { %v2730_v4 = vmax.f32 %v2694_v24, 0.0 }
 0x282   : > { %v2082_v54 = vpop.f32.mrf.mxu2  ;;  %v2126_v57 = vpop.f32.mrf.mxu3 }
 0x283   : > { %2766 = vst [vmem:[%s4547_s20 + $0xc0] sm:$0xff] %v2730_v4  ;;  %v2083_v26 = vadd.f32 %v2082_v54, %v2039_v7  ;;  %v3551_v4 = vld [vmem:[%s4313_s26 + $0x30] sm:$0xff]  ;;  %v3552_v54 = vld [vmem:[%s4313_s26 + $0x38] sm:$0xff] }
 0x285   : > { %v2127_v16 = vadd.f32 %v2126_v57, %v2083_v26  ;;  %v2149_v31 = vpop.f32.mrf.mxu0  ;;  %v2193_v19 = vpop.f32.mrf.mxu1  ;;  %v3553_v57 = vld [vmem:[%s4313_s26 + $0x40] sm:$0xff]  ;;  %v3554_v26 = vld [vmem:[%s4313_s26 + $0x48] sm:$0xff] }
 0x286   : > { %v2150_v46 = vadd.f32 %v2149_v31, %v5082_v20  ;;  %v3555_v20 = vld [vmem:[%s4313_s26 + $0x50] sm:$0xff] }
 0x287   : > { %v2698_v37 = vadd.f32 %v4538_v27, %v2127_v16  ;;  %2430 = vmatmul.f32.gmra.mxu2 %v4436_v18  ;;  %2474 = vmatmul.f32.gmra.mxu3 %v4442_v3 }
 0x288   : > { %2345 = vmatmul.f32.gmra.mxu0 %v4439_v2  ;;  %2389 = vmatmul.f32.gmra.mxu1 %v4447_v53  ;;  %v2194_v53 = vadd.f32 %v2193_v19, %v2150_v46  ;;  %v3556_v46 = vld [vmem:[%s4313_s26 + $0x58] sm:$0xff] }
 0x289   : > { %v2734_v59 = vmax.f32 %v2698_v37, 0.0  ;;  %v5086_v37 = vld [vmem:[#allocation16_spill] sm:$0xff] }
 0x28a   : > { %v2085_v25 = vpop.f32.mrf.mxu2  ;;  %v2129_v58 = vpop.f32.mrf.mxu3 }
 0x28b   : > { %2770 = vst [vmem:[%s4547_s20 + $0xe0] sm:$0xff] %v2734_v59  ;;  %v2086_v63 = vadd.f32 %v2085_v25, %v2042_v36 }
 0x28d   : > { %v2130_v0 = vadd.f32 %v2129_v58, %v2086_v63  ;;  %v2152_v62 = vpop.f32.mrf.mxu0  ;;  %v2196_v41 = vpop.f32.mrf.mxu1 }
 0x28f   : > { %v2702_v18 = vadd.f32 %v4538_v27, %v2130_v0  ;;  %2433 = vmatmul.f32.gmra.mxu2 %v4454_v39  ;;  %2477 = vmatmul.f32.gmra.mxu3 %v4460_v29  ;;  %v5083_v27 = vld [vmem:[#allocation13_spill] sm:$0xff]  ;;  %v3557_v0 = vld [vmem:[%s4313_s26 + $0x60] sm:$0xff] }
 0x290   : > { %2348 = vmatmul.f32.gmra.mxu0 %v4457_v8  ;;  %2392 = vmatmul.f32.gmra.mxu1 %v4465_v61  ;;  %v2153_v39 = vadd.f32 %v2152_v62, %v5083_v27  ;;  %v3545_v61 = vld [vmem:[%s4313_s26] sm:$0xff]  ;;  %v3558_v62 = vld [vmem:[%s4313_s26 + $0x68] sm:$0xff] }
 0x291   : > { %v2738_v2 = vmax.f32 %v2702_v18, 0.0 }
 0x292   : > { %v2237_v3 = vpop.f32.mrf.mxu2  ;;  %v2281_v21 = vpop.f32.mrf.mxu3  ;;  %v2197_v42 = vadd.f32 %v2196_v41, %v2153_v39 }
 0x293   : > { %2774 = vst [vmem:[%s4547_s20 + $0x100] sm:$0xff] %v2738_v2  ;;  %v2238_v49 = vadd.f32 %v2237_v3, %v2194_v53 }
 0x295   : > { %v2282_v60 = vadd.f32 %v2281_v21, %v2238_v49  ;;  %v2155_v29 = vpop.f32.mrf.mxu0  ;;  %v2199_v1 = vpop.f32.mrf.mxu1  ;;  %v5087_v21 = vld [vmem:[#allocation17_spill] sm:$0xff] }
 0x296   : > { %v2156_v34 = vadd.f32 %v2155_v29, %v5084_v48  ;;  %v5088_v48 = vld [vmem:[#allocation18_spill] sm:$0xff] }
 0x297   : > { %v2671_v8 = vadd.f32 %v4607_v35, %v2282_v60  ;;  %2436 = vmatmul.f32.gmra.mxu2 %v4472_v56  ;;  %2480 = vmatmul.f32.gmra.mxu3 %v4475_v12 }
 0x298   : > { %2500 = vmatmul.f32.vlgmr.msra.gmra.mxu0 %v3545_v61  ;;  %2544 = vmatmul.f32.vlgmr.msra.gmra.mxu1 %v3546_v5  ;;  %v2200_v13 = vadd.f32 %v2199_v1, %v2156_v34  ;;  %v3559_v1 = vld [vmem:[%s4313_s26 + $0x70] sm:$0xff]  ;;  %v3561_v61 = vld [vmem:[%s4313_s26 + $0x80] sm:$0xff]  ;;  %v3562_v5 = vld [vmem:[%s4313_s26 + $0x88] sm:$0xff] }
 0x299   : > { %v2707_v47 = vmax.f32 %v2671_v8, 0.0  ;;  %v3560_v8 = vld [vmem:[%s4313_s26 + $0x78] sm:$0xff] }
 0x29a   : > { %v2240_v52 = vpop.f32.mrf.mxu2  ;;  %v2284_v30 = vpop.f32.mrf.mxu3 }
 0x29b   : > { %2743 = vst [vmem:[%s4547_s20 + $0x8] sm:$0xff] %v2707_v47  ;;  %v2241_v50 = vadd.f32 %v2240_v52, %v2197_v42 }
 0x29d   : > { %v2285_v32 = vadd.f32 %v2284_v30, %v2241_v50  ;;  %v2158_v56 = vpop.f32.mrf.mxu0  ;;  %v2202_v12 = vpop.f32.mrf.mxu1 }
 0x29e   : > { %v2159_v43 = vadd.f32 %v2158_v56, %v5085_v51  ;;  %v5089_v51 = vld [vmem:[#allocation19_spill] sm:$0xff] }
 0x29f   : > { %v2675_v10 = vadd.f32 %v4607_v35, %v2285_v32  ;;  %2588 = vmatmul.f32.vlgmr.msra.gmra.mxu2 %v3547_v45  ;;  %2632 = vmatmul.f32.vlgmr.msra.gmra.mxu3 %v3548_v14  ;;  %v3563_v45 = vld [vmem:[%s4313_s26 + $0x90] sm:$0xff]  ;;  %v3564_v14 = vld [vmem:[%s4313_s26 + $0x98] sm:$0xff] }
 0x2a0   : > { %2503 = vmatmul.f32.gmra.mxu0 %v3549_v22  ;;  %2547 = vmatmul.f32.gmra.mxu1 %v3550_v11  ;;  %v2203_v23 = vadd.f32 %v2202_v12, %v2159_v43  ;;  %v3565_v22 = vld [vmem:[%s4313_s26 + $0xa0] sm:$0xff]  ;;  %v3566_v11 = vld [vmem:[%s4313_s26 + $0xa8] sm:$0xff] }
 0x2a1   : > { %v2711_v17 = vmax.f32 %v2675_v10, 0.0 }
 0x2a2   : > { %v2243_v28 = vpop.f32.mrf.mxu2  ;;  %v2287_v33 = vpop.f32.mrf.mxu3 }
 0x2a3   : > { %2747 = vst [vmem:[%s4547_s20 + $0x28] sm:$0xff] %v2711_v17  ;;  %v2244_v40 = vadd.f32 %v2243_v28, %v2200_v13 }
 0x2a5   : > { %v2288_v6 = vadd.f32 %v2287_v33, %v2244_v40  ;;  %v2161_v24 = vpop.f32.mrf.mxu0  ;;  %v2205_v9 = vpop.f32.mrf.mxu1 }
 0x2a6   : > { %v2162_v36 = vadd.f32 %v2161_v24, %v5086_v37  ;;  %v5090_v37 = vld [vmem:[#allocation20_spill] sm:$0xff] }
 0x2a7   : > { %v2679_v7 = vadd.f32 %v4607_v35, %v2288_v6  ;;  %2591 = vmatmul.f32.gmra.mxu2 %v3551_v4  ;;  %2635 = vmatmul.f32.gmra.mxu3 %v3552_v54  ;;  %v3567_v4 = vld [vmem:[%s4313_s26 + $0xb0] sm:$0xff]  ;;  %v3568_v54 = vld [vmem:[%s4313_s26 + $0xb8] sm:$0xff] }
 0x2a8   : > { %2506 = vmatmul.f32.gmra.mxu0 %v3553_v57  ;;  %2550 = vmatmul.f32.gmra.mxu1 %v3554_v26  ;;  %v2206_v41 = vadd.f32 %v2205_v9, %v2162_v36  ;;  %v3569_v57 = vld [vmem:[%s4313_s26 + $0xc0] sm:$0xff]  ;;  %v3570_v26 = vld [vmem:[%s4313_s26 + $0xc8] sm:$0xff] }
 0x2a9   : > { %v2715_v38 = vmax.f32 %v2679_v7, 0.0 }
 0x2aa   : > { %v2246_v16 = vpop.f32.mrf.mxu2  ;;  %v2290_v31 = vpop.f32.mrf.mxu3 }
 0x2ab   : > { %2751 = vst [vmem:[%s4547_s20 + $0x48] sm:$0xff] %v2715_v38  ;;  %v2247_v19 = vadd.f32 %v2246_v16, %v2203_v23 }
 0x2ad   : > { %v2291_v59 = vadd.f32 %v2290_v31, %v2247_v19  ;;  %v2164_v25 = vpop.f32.mrf.mxu0  ;;  %v2208_v58 = vpop.f32.mrf.mxu1 }
 0x2ae   : > { %v2165_v49 = vadd.f32 %v2164_v25, %v5087_v21  ;;  %v5091_v21 = vld [vmem:[#allocation21_spill] sm:$0xff] }
 0x2af   : > { %v2683_v63 = vadd.f32 %v4607_v35, %v2291_v59  ;;  %2594 = vmatmul.f32.gmra.mxu2 %v3555_v20  ;;  %2638 = vmatmul.f32.gmra.mxu3 %v3556_v46  ;;  %v3571_v20 = vld [vmem:[%s4313_s26 + $0xd0] sm:$0xff]  ;;  %v3572_v46 = vld [vmem:[%s4313_s26 + $0xd8] sm:$0xff] }
 0x2b0   : > { %2509 = vmatmul.f32.gmra.mxu0 %v3557_v0  ;;  %2553 = vmatmul.f32.gmra.mxu1 %v3558_v62  ;;  %v2209_v42 = vadd.f32 %v2208_v58, %v2165_v49  ;;  %v3573_v0 = vld [vmem:[%s4313_s26 + $0xe0] sm:$0xff]  ;;  %v3574_v62 = vld [vmem:[%s4313_s26 + $0xe8] sm:$0xff] }
 0x2b1   : > { %v2719_v18 = vmax.f32 %v2683_v63, 0.0 }
 0x2b2   : > { %v2249_v53 = vpop.f32.mrf.mxu2  ;;  %v2293_v2 = vpop.f32.mrf.mxu3 }
 0x2b3   : > { %2755 = vst [vmem:[%s4547_s20 + $0x68] sm:$0xff] %v2719_v18  ;;  %v2250_v3 = vadd.f32 %v2249_v53, %v2206_v41 }
 0x2b5   : > { %v2294_v27 = vadd.f32 %v2293_v2, %v2250_v3  ;;  %v2167_v39 = vpop.f32.mrf.mxu0  ;;  %v2211_v60 = vpop.f32.mrf.mxu1 }
 0x2b6   : > { %v2168_v34 = vadd.f32 %v2167_v39, %v5088_v48  ;;  %v4673_v48 = vperm.slane %v4535_v44, 2 }
 0x2b7   : > { %v2687_v29 = vadd.f32 %v4607_v35, %v2294_v27  ;;  %2597 = vmatmul.f32.gmra.mxu2 %v3559_v1  ;;  %2641 = vmatmul.f32.gmra.mxu3 %v3560_v8  ;;  %v3575_v1 = vld [vmem:[%s4313_s26 + $0xf0] sm:$0xff]  ;;  %v3576_v8 = vld [vmem:[%s4313_s26 + $0xf8] sm:$0xff] }
 0x2b8   : > { %2512 = vmatmul.f32.gmra.mxu0 %v3561_v61  ;;  %2556 = vmatmul.f32.gmra.mxu1 %v3562_v5  ;;  %v2212_v13 = vadd.f32 %v2211_v60, %v2168_v34  ;;  %v3577_v61 = vld [vmem:[%s4313_s26 + $0x100] sm:$0xff]  ;;  %v3578_v5 = vld [vmem:[%s4313_s26 + $0x108] sm:$0xff] }
 0x2b9   : > { %v2723_v47 = vmax.f32 %v2687_v29, 0.0 }
 0x2ba   : > { %v2252_v52 = vpop.f32.mrf.mxu2  ;;  %v2296_v30 = vpop.f32.mrf.mxu3 }
 0x2bb   : > { %2759 = vst [vmem:[%s4547_s20 + $0x88] sm:$0xff] %v2723_v47  ;;  %v2253_v50 = vadd.f32 %v2252_v52, %v2209_v42 }
 0x2bd   : > { %v2297_v32 = vadd.f32 %v2296_v30, %v2253_v50  ;;  %v2170_v56 = vpop.f32.mrf.mxu0  ;;  %v2214_v12 = vpop.f32.mrf.mxu1 }
 0x2be   : > { %v2171_v43 = vadd.f32 %v2170_v56, %v5089_v51 }
 0x2bf   : > { %v2691_v10 = vadd.f32 %v4607_v35, %v2297_v32  ;;  %2600 = vmatmul.f32.gmra.mxu2 %v3563_v45  ;;  %2644 = vmatmul.f32.gmra.mxu3 %v3564_v14  ;;  %v3579_v45 = vld [vmem:[%s4313_s26 + $0x110] sm:$0xff]  ;;  %v3580_v14 = vld [vmem:[%s4313_s26 + $0x118] sm:$0xff] }
 0x2c0   : > { %2515 = vmatmul.f32.gmra.mxu0 %v3565_v22  ;;  %2559 = vmatmul.f32.gmra.mxu1 %v3566_v11  ;;  %v2215_v23 = vadd.f32 %v2214_v12, %v2171_v43 }
 0x2c1   : > { %v2727_v17 = vmax.f32 %v2691_v10, 0.0 }
 0x2c2   : > { %v2255_v28 = vpop.f32.mrf.mxu2  ;;  %v2299_v33 = vpop.f32.mrf.mxu3 }
 0x2c3   : > { %2763 = vst [vmem:[%s4547_s20 + $0xa8] sm:$0xff] %v2727_v17  ;;  %v2256_v40 = vadd.f32 %v2255_v28, %v2212_v13 }
 0x2c5   : > { %v2300_v6 = vadd.f32 %v2299_v33, %v2256_v40  ;;  %v2173_v24 = vpop.f32.mrf.mxu0  ;;  %v2217_v9 = vpop.f32.mrf.mxu1  ;;  %v5093_v33 = vld [vmem:[#allocation23_spill] sm:$0xff] }
 0x2c6   : > { %v2174_v36 = vadd.f32 %v2173_v24, %v5090_v37 }
 0x2c7   : > { %v2695_v7 = vadd.f32 %v4607_v35, %v2300_v6  ;;  %2603 = vmatmul.f32.gmra.mxu2 %v3567_v4  ;;  %2647 = vmatmul.f32.gmra.mxu3 %v3568_v54 }
 0x2c8   : > { %2518 = vmatmul.f32.gmra.mxu0 %v3569_v57  ;;  %2562 = vmatmul.f32.gmra.mxu1 %v3570_v26  ;;  %v2218_v41 = vadd.f32 %v2217_v9, %v2174_v36  ;;  %v5094_v26 = vld [vmem:[#allocation24_spill] sm:$0xff] }
 0x2c9   : > { %v2731_v38 = vmax.f32 %v2695_v7, 0.0 }
 0x2ca   : > { %v2258_v16 = vpop.f32.mrf.mxu2  ;;  %v2302_v31 = vpop.f32.mrf.mxu3 }
 0x2cb   : > { %2767 = vst [vmem:[%s4547_s20 + $0xc8] sm:$0xff] %v2731_v38  ;;  %v2259_v19 = vadd.f32 %v2258_v16, %v2215_v23 }
 0x2cd   : > { %v2303_v59 = vadd.f32 %v2302_v31, %v2259_v19  ;;  %v2325_v25 = vpop.f32.mrf.mxu0  ;;  %v2369_v58 = vpop.f32.mrf.mxu1 }
 0x2ce   : > { %v2326_v49 = vadd.f32 %v2325_v25, %v5091_v21 }
 0x2cf   : > { %v2699_v63 = vadd.f32 %v4607_v35, %v2303_v59  ;;  %2606 = vmatmul.f32.gmra.mxu2 %v3571_v20  ;;  %2650 = vmatmul.f32.gmra.mxu3 %v3572_v46 }
 0x2d0   : > { %2521 = vmatmul.f32.gmra.mxu0 %v3573_v0  ;;  %2565 = vmatmul.f32.gmra.mxu1 %v3574_v62  ;;  %v2370_v42 = vadd.f32 %v2369_v58, %v2326_v49  ;;  %v5096_v49 = vld [vmem:[#allocation26_spill] sm:$0xff] }
 0x2d1   : > { %v2735_v18 = vmax.f32 %v2699_v63, 0.0  ;;  %v5095_v63 = vld [vmem:[#allocation25_spill] sm:$0xff] }
 0x2d2   : > { %v2261_v53 = vpop.f32.mrf.mxu2  ;;  %v2305_v2 = vpop.f32.mrf.mxu3 }
 0x2d3   : > { %2771 = vst [vmem:[%s4547_s20 + $0xe8] sm:$0xff] %v2735_v18  ;;  %v2262_v3 = vadd.f32 %v2261_v53, %v2218_v41 }
 0x2d5   : > { %v2306_v27 = vadd.f32 %v2305_v2, %v2262_v3  ;;  %v2328_v39 = vpop.f32.mrf.mxu0  ;;  %v2372_v60 = vpop.f32.mrf.mxu1 }
 0x2d7   : > { %v2703_v29 = vadd.f32 %v4607_v35, %v2306_v27  ;;  %2609 = vmatmul.f32.gmra.mxu2 %v3575_v1  ;;  %2653 = vmatmul.f32.gmra.mxu3 %v3576_v8  ;;  %v5092_v35 = vld [vmem:[#allocation22_spill] sm:$0xff] }
 0x2d8   : > { %2524 = vmatmul.f32.gmra.mxu0 %v3577_v61  ;;  %2568 = vmatmul.f32.gmra.mxu1 %v3578_v5  ;;  %v2329_v34 = vadd.f32 %v2328_v39, %v5092_v35 }
 0x2d9   : > { %v2739_v47 = vmax.f32 %v2703_v29, 0.0 }
 0x2da   : > { %v2413_v52 = vpop.f32.mrf.mxu2  ;;  %v2457_v30 = vpop.f32.mrf.mxu3  ;;  %v2373_v22 = vadd.f32 %v2372_v60, %v2329_v34 }
 0x2db   : > { %2775 = vst [vmem:[%s4547_s20 + $0x108] sm:$0xff] %v2739_v47  ;;  %v2414_v50 = vadd.f32 %v2413_v52, %v2370_v42  ;;  %v5097_v52 = vld [vmem:[#allocation27_spill] sm:$0xff] }
 0x2dd   : > { %v2458_v32 = vadd.f32 %v2457_v30, %v2414_v50  ;;  %v2331_v56 = vpop.f32.mrf.mxu0  ;;  %v2375_v12 = vpop.f32.mrf.mxu1 }
 0x2de   : > { %v2332_v40 = vadd.f32 %v2331_v56, %v5093_v33 }
 0x2df   : > { %v2672_v10 = vadd.f32 %v4673_v48, %v2458_v32  ;;  %2612 = vmatmul.f32.gmra.mxu2 %v3579_v45  ;;  %2656 = vmatmul.f32.gmra.mxu3 %v3580_v14 }
 0x2e0   : > { %v2376_v9 = vadd.f32 %v2375_v12, %v2332_v40 }
 0x2e1   : > { %v2708_v11 = vmax.f32 %v2672_v10, 0.0 }
 0x2e2   : > { %v2416_v13 = vpop.f32.mrf.mxu2  ;;  %v2460_v17 = vpop.f32.mrf.mxu3 }
 0x2e3   : > { %2744 = vst [vmem:[%s4547_s20 + $0x10] sm:$0xff] %v2708_v11  ;;  %v2417_v28 = vadd.f32 %v2416_v13, %v2373_v22  ;;  %v5098_v22 = vld [vmem:[#allocation28_spill] sm:$0xff] }
 0x2e5   : > { %v2461_v51 = vadd.f32 %v2460_v17, %v2417_v28  ;;  %v2334_v43 = vpop.f32.mrf.mxu0  ;;  %v2378_v6 = vpop.f32.mrf.mxu1 }
 0x2e6   : > { %v2335_v23 = vadd.f32 %v2334_v43, %v5094_v26 }
 0x2e7   : > { %v2676_v24 = vadd.f32 %v4673_v48, %v2461_v51 }
 0x2e8   : > { %v2379_v37 = vadd.f32 %v2378_v6, %v2335_v23 }
 0x2e9   : > { %v2712_v7 = vmax.f32 %v2676_v24, 0.0 }
 0x2ea   : > { %v2419_v4 = vpop.f32.mrf.mxu2  ;;  %v2463_v54 = vpop.f32.mrf.mxu3 }
 0x2eb   : > { %2748 = vst [vmem:[%s4547_s20 + $0x30] sm:$0xff] %v2712_v7  ;;  %v2420_v57 = vadd.f32 %v2419_v4, %v2376_v9  ;;  %v5099_v9 = vld [vmem:[#allocation29_spill] sm:$0xff] }
 0x2ed   : > { %v2464_v38 = vadd.f32 %v2463_v54, %v2420_v57  ;;  %v2337_v16 = vpop.f32.mrf.mxu0  ;;  %v2381_v31 = vpop.f32.mrf.mxu1 }
 0x2ee   : > { %v2338_v20 = vadd.f32 %v2337_v16, %v5095_v63 }
 0x2ef   : > { %v2680_v19 = vadd.f32 %v4673_v48, %v2464_v38 }
 0x2f0   : > { %v2382_v18 = vadd.f32 %v2381_v31, %v2338_v20 }
 0x2f1   : > { %v2716_v36 = vmax.f32 %v2680_v19, 0.0 }
 0x2f2   : > { %v2422_v59 = vpop.f32.mrf.mxu2  ;;  %v2466_v25 = vpop.f32.mrf.mxu3 }
 0x2f3   : > { %2752 = vst [vmem:[%s4547_s20 + $0x50] sm:$0xff] %v2716_v36  ;;  %v2423_v58 = vadd.f32 %v2422_v59, %v2379_v37  ;;  %v5100_v37 = vld [vmem:[#allocation30_spill] sm:$0xff] }
 0x2f5   : > { %v2467_v46 = vadd.f32 %v2466_v25, %v2423_v58  ;;  %v2340_v0 = vpop.f32.mrf.mxu0  ;;  %v2384_v62 = vpop.f32.mrf.mxu1 }
 0x2f6   : > { %v2341_v27 = vadd.f32 %v2340_v0, %v5096_v49 }
 0x2f7   : > { %v2684_v41 = vadd.f32 %v4673_v48, %v2467_v46 }
 0x2f8   : > { %v2385_v8 = vadd.f32 %v2384_v62, %v2341_v27 }
 0x2f9   : > { %v2720_v53 = vmax.f32 %v2684_v41, 0.0 }
 0x2fa   : > { %v2425_v2 = vpop.f32.mrf.mxu2  ;;  %v2469_v3 = vpop.f32.mrf.mxu3 }
 0x2fb   : > { %2756 = vst [vmem:[%s4547_s20 + $0x70] sm:$0xff] %v2720_v53  ;;  %v2426_v21 = vadd.f32 %v2425_v2, %v2382_v18  ;;  %v4705_v18 = vperm.slane %v4535_v44, 3  ;;  %v5101_v53 = vld [vmem:[#allocation31_spill] sm:$0xff] }
 0x2fd   : > { %v2470_v39 = vadd.f32 %v2469_v3, %v2426_v21  ;;  %v2343_v60 = vpop.f32.mrf.mxu0  ;;  %v2387_v29 = vpop.f32.mrf.mxu1 }
 0x2fe   : > { %v2344_v30 = vadd.f32 %v2343_v60, %v5097_v52 }
 0x2ff   : > { %v2688_v1 = vadd.f32 %v4673_v48, %v2470_v39 }
 0x300   : > { %v2388_v56 = vadd.f32 %v2387_v29, %v2344_v30 }
 0x301   : > { %v2724_v61 = vmax.f32 %v2688_v1, 0.0 }
 0x302   : > { %v2428_v5 = vpop.f32.mrf.mxu2  ;;  %v2472_v42 = vpop.f32.mrf.mxu3 }
 0x303   : > { %2760 = vst [vmem:[%s4547_s20 + $0x90] sm:$0xff] %v2724_v61  ;;  %v2429_v47 = vadd.f32 %v2428_v5, %v2385_v8  ;;  %v5102_v8 = vld [vmem:[#allocation32_spill] sm:$0xff] }
 0x305   : > { %v2473_v50 = vadd.f32 %v2472_v42, %v2429_v47  ;;  %v2346_v35 = vpop.f32.mrf.mxu0  ;;  %v2390_v34 = vpop.f32.mrf.mxu1 }
 0x306   : > { %v2347_v11 = vadd.f32 %v2346_v35, %v5098_v22 }
 0x307   : > { %v2692_v32 = vadd.f32 %v4673_v48, %v2473_v50 }
 0x308   : > { %v2391_v40 = vadd.f32 %v2390_v34, %v2347_v11 }
 0x309   : > { %v2728_v12 = vmax.f32 %v2692_v32, 0.0  ;;  %v5103_v32 = vld [vmem:[#allocation33_spill] sm:$0xff] }
 0x30a   : > { %v2431_v10 = vpop.f32.mrf.mxu2  ;;  %v2475_v45 = vpop.f32.mrf.mxu3 }
 0x30b   : > { %2764 = vst [vmem:[%s4547_s20 + $0xb0] sm:$0xff] %v2728_v12  ;;  %v2432_v14 = vadd.f32 %v2431_v10, %v2388_v56 }
 0x30d   : > { %v2476_v13 = vadd.f32 %v2475_v45, %v2432_v14  ;;  %v2349_v17 = vpop.f32.mrf.mxu0  ;;  %v2393_v28 = vpop.f32.mrf.mxu1 }
 0x30e   : > { %v2350_v7 = vadd.f32 %v2349_v17, %v5099_v9 }
 0x30f   : > { %v2696_v33 = vadd.f32 %v4673_v48, %v2476_v13 }
 0x310   : > { %v2394_v23 = vadd.f32 %v2393_v28, %v2350_v7 }
 0x311   : > { %v2732_v51 = vmax.f32 %v2696_v33, 0.0 }
 0x312   : > { %v2434_v43 = vpop.f32.mrf.mxu2  ;;  %v2478_v6 = vpop.f32.mrf.mxu3 }
 0x313   : > { %2768 = vst [vmem:[%s4547_s20 + $0xd0] sm:$0xff] %v2732_v51  ;;  %v2435_v24 = vadd.f32 %v2434_v43, %v2391_v40 }
 0x315   : > { %v2479_v4 = vadd.f32 %v2478_v6, %v2435_v24  ;;  %v2501_v54 = vpop.f32.mrf.mxu0  ;;  %v2545_v57 = vpop.f32.mrf.mxu1 }
 0x316   : > { %v2502_v36 = vadd.f32 %v2501_v54, %v5100_v37 }
 0x317   : > { %v2700_v26 = vadd.f32 %v4673_v48, %v2479_v4 }
 0x318   : > { %v2546_v20 = vadd.f32 %v2545_v57, %v2502_v36 }
 0x319   : > { %v2736_v38 = vmax.f32 %v2700_v26, 0.0 }
 0x31a   : > { %v2437_v16 = vpop.f32.mrf.mxu2  ;;  %v2481_v31 = vpop.f32.mrf.mxu3 }
 0x31b   : > { %2772 = vst [vmem:[%s4547_s20 + $0xf0] sm:$0xff] %v2736_v38  ;;  %v2438_v19 = vadd.f32 %v2437_v16, %v2394_v23 }
 0x31d   : > { %v2482_v59 = vadd.f32 %v2481_v31, %v2438_v19  ;;  %v2504_v25 = vpop.f32.mrf.mxu0  ;;  %v2548_v58 = vpop.f32.mrf.mxu1 }
 0x31e   : > { %v2505_v2 = vadd.f32 %v2504_v25, %v5101_v53 }
 0x31f   : > { %v2704_v63 = vadd.f32 %v4673_v48, %v2482_v59  ;;  %v5104_v59 = vld [vmem:[#allocation34_spill] sm:$0xff] }
 0x320   : > { %v2549_v39 = vadd.f32 %v2548_v58, %v2505_v2  ;;  %v5105_v2 = vld [vmem:[#allocation35_spill] sm:$0xff] }
 0x321   : > { %v2740_v46 = vmax.f32 %v2704_v63, 0.0 }
 0x322   : > { %v2589_v0 = vpop.f32.mrf.mxu2  ;;  %v2633_v62 = vpop.f32.mrf.mxu3 }
 0x323   : > { %2776 = vst [vmem:[%s4547_s20 + $0x110] sm:$0xff] %v2740_v46  ;;  %v2590_v41 = vadd.f32 %v2589_v0, %v2546_v20 }
 0x325   : > { %v2634_v3 = vadd.f32 %v2633_v62, %v2590_v41  ;;  %v2507_v21 = vpop.f32.mrf.mxu0  ;;  %v2551_v49 = vpop.f32.mrf.mxu1 }
 0x326   : > { %v2508_v61 = vadd.f32 %v2507_v21, %v5102_v8  ;;  %v5106_v8 = vld [vmem:[#allocation36_spill] sm:$0xff] }
 0x327   : > { %v2673_v27 = vadd.f32 %v4705_v18, %v2634_v3 }
 0x328   : > { %v2552_v52 = vadd.f32 %v2551_v49, %v2508_v61 }
 0x329   : > { %v2709_v48 = vmax.f32 %v2673_v27, 0.0 }
 0x32a   : > { %v2592_v60 = vpop.f32.mrf.mxu2  ;;  %v2636_v29 = vpop.f32.mrf.mxu3 }
 0x32b   : > { %2745 = vst [vmem:[%s4547_s20 + $0x18] sm:$0xff] %v2709_v48  ;;  %v2593_v1 = vadd.f32 %v2592_v60, %v2549_v39 }
 0x32d   : > { %v2637_v5 = vadd.f32 %v2636_v29, %v2593_v1  ;;  %v2510_v42 = vpop.f32.mrf.mxu0  ;;  %v2554_v44 = vpop.f32.mrf.mxu1 }
 0x32e   : > { %v2511_v56 = vadd.f32 %v2510_v42, %v5103_v32 }
 0x32f   : > { %v2677_v47 = vadd.f32 %v4705_v18, %v2637_v5 }
 0x330   : > { %v2555_v22 = vadd.f32 %v2554_v44, %v2511_v56 }
 0x331   : > { %v2713_v30 = vmax.f32 %v2677_v47, 0.0 }
 0x332   : > { %v2595_v50 = vpop.f32.mrf.mxu2  ;;  %v2639_v35 = vpop.f32.mrf.mxu3 }
 0x333   : > { %2749 = vst [vmem:[%s4547_s20 + $0x38] sm:$0xff] %v2713_v30  ;;  %v2596_v34 = vadd.f32 %v2595_v50, %v2552_v52 }
 0x335   : > { %v2640_v12 = vadd.f32 %v2639_v35, %v2596_v34  ;;  %v2513_v10 = vpop.f32.mrf.mxu0  ;;  %v2557_v45 = vpop.f32.mrf.mxu1 }
 0x336   : > { %v2514_v33 = vadd.f32 %v2513_v10, %v4501_v55 }
 0x337   : > { %v2681_v14 = vadd.f32 %v4705_v18, %v2640_v12 }
 0x338   : > { %v2558_v24 = vadd.f32 %v2557_v45, %v2514_v33 }
 0x339   : > { %v2717_v11 = vmax.f32 %v2681_v14, 0.0 }
 0x33a   : > { %v2598_v13 = vpop.f32.mrf.mxu2  ;;  %v2642_v17 = vpop.f32.mrf.mxu3 }
 0x33b   : > { %2753 = vst [vmem:[%s4547_s20 + $0x58] sm:$0xff] %v2717_v11  ;;  %v2599_v28 = vadd.f32 %v2598_v13, %v2555_v22 }
 0x33d   : > { %v2643_v40 = vadd.f32 %v2642_v17, %v2599_v28  ;;  %v2516_v51 = vpop.f32.mrf.mxu0  ;;  %v2560_v6 = vpop.f32.mrf.mxu1 }
 0x33e   : > { %v2517_v57 = vadd.f32 %v2516_v51, %v4507_v15 }
 0x33f   : > { %v2685_v43 = vadd.f32 %v4705_v18, %v2643_v40 }
 0x340   : > { %v2561_v55 = vadd.f32 %v2560_v6, %v2517_v57 }
 0x341   : > { %v2721_v9 = vmax.f32 %v2685_v43, 0.0 }
 0x342   : > { %v2601_v7 = vpop.f32.mrf.mxu2  ;;  %v2645_v4 = vpop.f32.mrf.mxu3 }
 0x343   : > { %2757 = vst [vmem:[%s4547_s20 + $0x78] sm:$0xff] %v2721_v9  ;;  %v2602_v54 = vadd.f32 %v2601_v7, %v2558_v24 }
 0x345   : > { %v2646_v26 = vadd.f32 %v2645_v4, %v2602_v54  ;;  %v2519_v23 = vpop.f32.mrf.mxu0  ;;  %v2563_v31 = vpop.f32.mrf.mxu1 }
 0x346   : > { %v2520_v25 = vadd.f32 %v2519_v23, %v5104_v59 }
 0x347   : > { %v2689_v38 = vadd.f32 %v4705_v18, %v2646_v26 }
 0x348   : > { %v2564_v15 = vadd.f32 %v2563_v31, %v2520_v25 }
 0x349   : > { %v2725_v16 = vmax.f32 %v2689_v38, 0.0 }
 0x34a   : > { %v2604_v19 = vpop.f32.mrf.mxu2  ;;  %v2648_v37 = vpop.f32.mrf.mxu3 }
 0x34b   : > { %2761 = vst [vmem:[%s4547_s20 + $0x98] sm:$0xff] %v2725_v16  ;;  %v2605_v36 = vadd.f32 %v2604_v19, %v2561_v55 }
 0x34d   : > { %v2649_v58 = vadd.f32 %v2648_v37, %v2605_v36  ;;  %v2522_v20 = vpop.f32.mrf.mxu0  ;;  %v2566_v53 = vpop.f32.mrf.mxu1 }
 0x34e   : > { %v2523_v3 = vadd.f32 %v2522_v20, %v5105_v2 }
 0x34f   : > { %v2693_v63 = vadd.f32 %v4705_v18, %v2649_v58 }
 0x350   : > { %v2567_v27 = vadd.f32 %v2566_v53, %v2523_v3 }
 0x351   : > { %v2729_v46 = vmax.f32 %v2693_v63, 0.0 }
 0x352   : > { %v2607_v0 = vpop.f32.mrf.mxu2  ;;  %v2651_v62 = vpop.f32.mrf.mxu3 }
 0x353   : > { %2765 = vst [vmem:[%s4547_s20 + $0xb8] sm:$0xff] %v2729_v46  ;;  %v2608_v41 = vadd.f32 %v2607_v0, %v2564_v15 }
 0x355   : > { %v2652_v21 = vadd.f32 %v2651_v62, %v2608_v41  ;;  %v2525_v48 = vpop.f32.mrf.mxu0  ;;  %v2569_v42 = vpop.f32.mrf.mxu1 }
 0x356   : > { %v2526_v61 = vadd.f32 %v2525_v48, %v5106_v8 }
 0x357   : > { %v2697_v49 = vadd.f32 %v4705_v18, %v2652_v21 }
 0x358   : > { %v2570_v47 = vadd.f32 %v2569_v42, %v2526_v61 }
 0x359   : > { %v2733_v39 = vmax.f32 %v2697_v49, 0.0 }
 0x35a   : > { %v2610_v60 = vpop.f32.mrf.mxu2  ;;  %v2654_v29 = vpop.f32.mrf.mxu3 }
 0x35b   : > { %2769 = vst [vmem:[%s4547_s20 + $0xd8] sm:$0xff] %v2733_v39  ;;  %v2611_v1 = vadd.f32 %v2610_v60, %v2567_v27 }
 0x35d   : > { %v2655_v5 = vadd.f32 %v2654_v29, %v2611_v1 }
 0x35f   : > { %v2701_v44 = vadd.f32 %v4705_v18, %v2655_v5 }
 0x361   : > { %v2737_v52 = vmax.f32 %v2701_v44, 0.0 }
 0x362   : > { %v2613_v30 = vpop.f32.mrf.mxu2  ;;  %v2657_v50 = vpop.f32.mrf.mxu3 }
 0x363   : > { %2773 = vst [vmem:[%s4547_s20 + $0xf8] sm:$0xff] %v2737_v52  ;;  %v2614_v35 = vadd.f32 %v2613_v30, %v2570_v47 }
 0x365   : > { %v2658_v34 = vadd.f32 %v2657_v50, %v2614_v35 }
 0x367   : > { %v2705_v32 = vadd.f32 %v4705_v18, %v2658_v34  ;;  %2788 = sbr.rel (!%p3870_p4) target bundleno = 940 (0x3ac), region = 56 }
 0x369   : > { %v2741_v56 = vmax.f32 %v2705_v32, 0.0 }
 0x36b   : > { %2777 = vst [vmem:[%s4547_s20 + $0x118] sm:$0xff] %v2741_v56 }
 0x36c   : > { %s5125_s21 = smov (!%p2791_p11, %s2790_s21), 9 }
 0x36d   : > { %s3321_s11 = sshll.u32 %s5125_s21, 5 }
 0x36e   : > { %p3293_p12 = scmp.eq.s32.totalorder %s3321_s11, 0 }
 0x36f   : > { %s4746_s12 = sshrl.u32 (!%p3293_p12), %s5125_s21, 3 }
 0x370   : > { %2801 = sbr.rel (%p3293_p12) target bundleno = 940 (0x3ac), region = 60  ;;  %p3294_p13 = scmp.le.s32.totalorder (!%p3293_p12), %s4746_s12, 0 }
 0x375   : > { %3132 = sbr.rel (%p3294_p13) target bundleno = 923 (0x39b), region = 156  ;;  %s5107_s13 = smov (!%p3294_p13), %s4740_s10 }
 0x376   : > { %s5108_s14 = smov (!%p3294_p13), %s3989_s24  ;;  %s4755_s15 = smov (!%p3294_p13), 0  }
 0x377   : > { %s4757_s16 = smov (!%p3294_p13), 0  }
 0x37a LB: >> { %v2814_v18 = vld [vmem:[%s3743_s14] sm:$0xff]  ;;  %s2878_s17 = sadd.s32 1, %s3747_s15  ;;  %v2830_v17 = vld [vmem:[%s3743_s14 + $0x8] sm:$0xff]  ;;  %v2846_v9 = vld [vmem:[%s3743_s14 + $0x10] sm:$0xff]  ;;  %s2808_s16 = sadd.s32 1, %s3751_s16   ;;  %s3751_s16 = sphi %s4757_s16, %s2808_s16   ;;  %s3747_s15 = sphi %s4755_s15, %s5111_s15   ;;  %s3743_s14 = sphi %s5108_s14, %s5110_s14   ;;  %s3739_s13 = sphi %s5107_s13, %s5109_s13  }
 0x37b   : >> { %v2816_v12 = vld [vmem:[%s3743_s14 + $0x20] sm:$0xff]  ;;  %2815 = vst [vmem:[%s3739_s13] sm:$0xff] %v2814_v18  ;;  %p2879_p0 = scmp.ge.s32.totalorder %s2878_s17, %s4746_s12  ;;  %v2832_v28 = vld [vmem:[%s3743_s14 + $0x28] sm:$0xff]  ;;  %v2848_v7 = vld [vmem:[%s3743_s14 + $0x30] sm:$0xff]  ;;  %p2807_p1 = scmp.ge.s32.totalorder %s2808_s16, %s4746_s12 }
 0x37c   : >> { %v2818_v10 = vld [vmem:[%s3743_s14 + $0x40] sm:$0xff]  ;;  %2817 = vst [vmem:[%s3739_s13 + $0x20] sm:$0xff] %v2816_v12  ;;  %v2834_v33 = vld [vmem:[%s3743_s14 + $0x48] sm:$0xff]  ;;  %v2850_v4 = vld [vmem:[%s3743_s14 + $0x50] sm:$0xff] }
 0x37d   : >> { %v2820_v45 = vld [vmem:[%s3743_s14 + $0x60] sm:$0xff]  ;;  %2819 = vst [vmem:[%s3739_s13 + $0x40] sm:$0xff] %v2818_v10  ;;  %s5127_s17 = smov (%p2879_p0, %s2878_s17), 0  ;;  %v2836_v40 = vld [vmem:[%s3743_s14 + $0x68] sm:$0xff]  ;;  %v2852_v54 = vld [vmem:[%s3743_s14 + $0x70] sm:$0xff] }
 0x37e   : >> { %v2822_v14 = vld [vmem:[%s3743_s14 + $0x80] sm:$0xff]  ;;  %2821 = vst [vmem:[%s3739_s13 + $0x60] sm:$0xff] %v2820_v45  ;;  %s3295_s26 = sshll.u32 %s5127_s17, 8  ;;  %v2838_v51 = vld [vmem:[%s3743_s14 + $0x88] sm:$0xff]  ;;  %v2854_v57 = vld [vmem:[%s3743_s14 + $0x90] sm:$0xff]  ;;  %s5111_s15 = smov %s5127_s17 }
 0x37f   : >> { %v2824_v22 = vld [vmem:[%s3743_s14 + $0xa0] sm:$0xff]  ;;  %2823 = vst [vmem:[%s3739_s13 + $0x80] sm:$0xff] %v2822_v14  ;;  %s4789_s18 = scalar_lea.vmem %s3989_s24, %s3295_s26 [#allocation6]   ;;  %s4792_s19 = scalar_lea.vmem %s4740_s10, %s3295_s26   ;;  %v2840_v43 = vld [vmem:[%s3743_s14 + $0xa8] sm:$0xff]  ;;  %v2856_v26 = vld [vmem:[%s3743_s14 + $0xb0] sm:$0xff] }
 0x380   : >> { %v2826_v11 = vld [vmem:[%s3743_s14 + $0xc0] sm:$0xff]  ;;  %2825 = vst [vmem:[%s3739_s13 + $0xa0] sm:$0xff] %v2824_v22  ;;  %v2842_v6 = vld [vmem:[%s3743_s14 + $0xc8] sm:$0xff]  ;;  %v2858_v23 = vld [vmem:[%s3743_s14 + $0xd0] sm:$0xff] }
 0x381   : >> { %v2828_v13 = vld [vmem:[%s3743_s14 + $0xe0] sm:$0xff]  ;;  %2827 = vst [vmem:[%s3739_s13 + $0xc0] sm:$0xff] %v2826_v11  ;;  %v2844_v24 = vld [vmem:[%s3743_s14 + $0xe8] sm:$0xff]  ;;  %v2860_v38 = vld [vmem:[%s3743_s14 + $0xf0] sm:$0xff] }
 0x382   : >> { %2829 = vst [vmem:[%s3739_s13 + $0xe0] sm:$0xff] %v2828_v13  ;;  %v2862_v55 = vld [vmem:[%s3743_s14 + $0x18] sm:$0xff] }
 0x383   : >> { %2831 = vst [vmem:[%s3739_s13 + $0x8] sm:$0xff] %v2830_v17  ;;  %v2864_v16 = vld [vmem:[%s3743_s14 + $0x38] sm:$0xff] }
 0x384   : >> { %2833 = vst [vmem:[%s3739_s13 + $0x28] sm:$0xff] %v2832_v28  ;;  %v2866_v31 = vld [vmem:[%s3743_s14 + $0x58] sm:$0xff] }
 0x385   : >> { %2835 = vst [vmem:[%s3739_s13 + $0x48] sm:$0xff] %v2834_v33  ;;  %v2868_v19 = vld [vmem:[%s3743_s14 + $0x78] sm:$0xff] }
 0x386   : >> { %2837 = vst [vmem:[%s3739_s13 + $0x68] sm:$0xff] %v2836_v40  ;;  %v2870_v37 = vld [vmem:[%s3743_s14 + $0x98] sm:$0xff] }
 0x387   : >> { %2839 = vst [vmem:[%s3739_s13 + $0x88] sm:$0xff] %v2838_v51  ;;  %v2872_v36 = vld [vmem:[%s3743_s14 + $0xb8] sm:$0xff] }
 0x388   : >> { %2841 = vst [vmem:[%s3739_s13 + $0xa8] sm:$0xff] %v2840_v43  ;;  %v2874_v59 = vld [vmem:[%s3743_s14 + $0xd8] sm:$0xff] }
 0x389   : >> { %2843 = vst [vmem:[%s3739_s13 + $0xc8] sm:$0xff] %v2842_v6  ;;  %v2876_v25 = vld [vmem:[%s3743_s14 + $0xf8] sm:$0xff]  ;;  %s5110_s14 = smov %s4789_s18 }
 0x38a   : >> { %2845 = vst [vmem:[%s3739_s13 + $0xe8] sm:$0xff] %v2844_v24 }
 0x38b   : >> { %2847 = vst [vmem:[%s3739_s13 + $0x10] sm:$0xff] %v2846_v9 }
 0x38c   : >> { %2849 = vst [vmem:[%s3739_s13 + $0x30] sm:$0xff] %v2848_v7 }
 0x38d   : >> { %2851 = vst [vmem:[%s3739_s13 + $0x50] sm:$0xff] %v2850_v4 }
 0x38e   : >> { %2853 = vst [vmem:[%s3739_s13 + $0x70] sm:$0xff] %v2852_v54 }
 0x38f   : >> { %2855 = vst [vmem:[%s3739_s13 + $0x90] sm:$0xff] %v2854_v57 }
 0x390   : >> { %2857 = vst [vmem:[%s3739_s13 + $0xb0] sm:$0xff] %v2856_v26 }
 0x391   : >> { %2859 = vst [vmem:[%s3739_s13 + $0xd0] sm:$0xff] %v2858_v23 }
 0x392   : >> { %2861 = vst [vmem:[%s3739_s13 + $0xf0] sm:$0xff] %v2860_v38 }
 0x393   : >> { %2863 = vst [vmem:[%s3739_s13 + $0x18] sm:$0xff] %v2862_v55 }
 0x394   : >> { %2865 = vst [vmem:[%s3739_s13 + $0x38] sm:$0xff] %v2864_v16 }
 0x395   : >> { %2867 = vst [vmem:[%s3739_s13 + $0x58] sm:$0xff] %v2866_v31 }
 0x396   : >> { %2869 = vst [vmem:[%s3739_s13 + $0x78] sm:$0xff] %v2868_v19  ;;  %2810 = sbr.rel (!%p2807_p1) target bundleno = 890 (0x37a), region = 162 }
 0x397   : >> { %2871 = vst [vmem:[%s3739_s13 + $0x98] sm:$0xff] %v2870_v37 }
 0x398   : >> { %2873 = vst [vmem:[%s3739_s13 + $0xb8] sm:$0xff] %v2872_v36 }
 0x399   : >> { %2875 = vst [vmem:[%s3739_s13 + $0xd8] sm:$0xff] %v2874_v59 }
 0x39a   : >> { %2877 = vst [vmem:[%s3739_s13 + $0xf8] sm:$0xff] %v2876_v25  ;;  %s5109_s13 = smov %s4792_s19 }
 0x39b PF: > { %s4857_s22 = sand.u32 7, %s5125_s21   ;;  %s3324_s30 = sshll.u32 %s4746_s12, 8 }
 0x39c   : > { %s4861_s29 = scalar_lea.vmem %s3989_s24, %s3324_s30 [#allocation6]   ;;  %s4864_s11 = scalar_lea.vmem %s4740_s10, %s3324_s30  }
 0x39d   : > { %p3300_p2 = scmp.le.s32.totalorder %s4857_s22, 0 }
 0x39e   : > { %s5112_s16 = smov (!%p3300_p2), %s4864_s11  ;;  %s5113_s13 = smov (!%p3300_p2), %s4861_s29 }
 0x39f   : > { %3146 = sbr.rel (%p3300_p2) target bundleno = 940 (0x3ac), region = 167  ;;  %s3761_s14 = smov (!%p3300_p2), 0  }
 0x3a0   : > { %s3765_s15 = smov (!%p3300_p2), 0  }
 0x3a4 LB: >> { %v2901_v58 = vld [vmem:[%s3759_s13] sm:$0xff]  ;;  %v2903_v63 = vld [vmem:[%s3759_s13 + $0x8] sm:$0xff]  ;;  %v2905_v20 = vld [vmem:[%s3759_s13 + $0x10] sm:$0xff]  ;;  %s2909_s24 = sadd.s32 1, %s3763_s14  ;;  %s2895_s15 = sadd.s32 1, %s3767_s15   ;;  %s3767_s15 = sphi %s3765_s15, %s2895_s15   ;;  %s3763_s14 = sphi %s3761_s14, %s3762_s14   ;;  %s3759_s13 = sphi %s5113_s13, %s2914_s13   ;;  %s3755_s16 = sphi %s5112_s16, %s2915_s16  }
 0x3a5   : >> { %2902 = vst [vmem:[%s3755_s16] sm:$0xff] %v2901_v58  ;;  %v2907_v15 = vld [vmem:[%s3759_s13 + $0x18] sm:$0xff]  ;;  %p2910_p3 = scmp.ge.s32.totalorder %s2909_s24, %s4857_s22  ;;  %p2894_p5 = scmp.ge.s32.totalorder %s2895_s15, %s4857_s22 }
 0x3a6   : >> { %2904 = vst [vmem:[%s3755_s16 + $0x8] sm:$0xff] %v2903_v63 }
 0x3a7   : >> { %2906 = vst [vmem:[%s3755_s16 + $0x10] sm:$0xff] %v2905_v20  ;;  %s5129_s24 = smov (%p2910_p3, %s2909_s24), 0  ;;  %2897 = sbr.rel (!%p2894_p5) target bundleno = 932 (0x3a4), region = 173 }
 0x3a8   : >> { %2908 = vst [vmem:[%s3755_s16 + $0x18] sm:$0xff] %v2907_v15  ;;  %s3301_s21 = sshll.u32 %s5129_s24, 5  ;;  %s3762_s14 = smov %s5129_s24  }
 0x3a9   : >> { %s2914_s13 = scalar_lea.vmem %s4861_s29, %s3301_s21 [#allocation6]   ;;  %s2915_s16 = scalar_lea.vmem %s4864_s11, %s3301_s21  }
 0x3ac PF: > { %2921 = sbr.rel (!%p3870_p4) target bundleno = 1009 (0x3f1), region = 86  ;;  %s2923_s10 = ssub.s32 (%p3870_p4), 17, %s3900_s23 }
 0x3ad   : > { %s3332_s12 = smul.u32 (%p3870_p4), 288, %s3858_s27  ;;  %p2924_p6 = scmp.lt.s32.totalorder (%p3870_p4), %s2923_s10, 9 }
 0x3af   : > { %s4890_s18 = scalar_lea.vmem (%p3870_p4), %s5050_s7, %s3332_s12  }
 0x3b1   : > { %s5131_s10 = smov (!%p2924_p6, %s2923_s10), 9 }
 0x3b2   : > { %s3326_s19 = sshll.u32 %s5131_s10, 5 }
 0x3b3   : > { %p3308_p7 = scmp.eq.s32.totalorder %s3326_s19, 0 }
 0x3b4   : > { %s4896_s22 = sshrl.u32 (!%p3308_p7), %s5131_s10, 3 }
 0x3b5   : > { %2934 = sbr.rel (%p3308_p7) target bundleno = 1009 (0x3f1), region = 90  ;;  %p3309_p4 = scmp.le.s32.totalorder (!%p3308_p7), %s4896_s22, 0 }
 0x3ba   : > { %3160 = sbr.rel (%p3309_p4) target bundleno = 992 (0x3e0), region = 178  ;;  %s5114_s27 = smov (!%p3309_p4), %s4890_s18 }
 0x3bb   : > { %s5115_s9 = smov (!%p3309_p4), %s4547_s20  ;;  %s4905_s23 = smov (!%p3309_p4), 0  }
 0x3bc   : > { %s4907_s30 = smov (!%p3309_p4), 0  }
 0x3bf LB: >> { %v2947_v46 = vld [vmem:[%s3775_s9] sm:$0xff]  ;;  %s3011_s29 = sadd.s32 1, %s3779_s23  ;;  %v2963_v49 = vld [vmem:[%s3775_s9 + $0x8] sm:$0xff]  ;;  %v2979_v61 = vld [vmem:[%s3775_s9 + $0x10] sm:$0xff]  ;;  %s2941_s30 = sadd.s32 1, %s3783_s30   ;;  %s3783_s30 = sphi %s4907_s30, %s2941_s30   ;;  %s3779_s23 = sphi %s4905_s23, %s5118_s23   ;;  %s3775_s9 = sphi %s5115_s9, %s5117_s9   ;;  %s3771_s27 = sphi %s5114_s27, %s5116_s27  }
 0x3c0   : >> { %v2949_v0 = vld [vmem:[%s3775_s9 + $0x20] sm:$0xff]  ;;  %2948 = vst [vmem:[%s3771_s27] sm:$0xff] %v2947_v46  ;;  %p3012_p8 = scmp.ge.s32.totalorder %s3011_s29, %s4896_s22  ;;  %v2965_v27 = vld [vmem:[%s3775_s9 + $0x28] sm:$0xff]  ;;  %v2981_v5 = vld [vmem:[%s3775_s9 + $0x30] sm:$0xff]  ;;  %p2940_p9 = scmp.ge.s32.totalorder %s2941_s30, %s4896_s22 }
 0x3c1   : >> { %v2951_v62 = vld [vmem:[%s3775_s9 + $0x40] sm:$0xff]  ;;  %2950 = vst [vmem:[%s3771_s27 + $0x20] sm:$0xff] %v2949_v0  ;;  %v2967_v39 = vld [vmem:[%s3775_s9 + $0x48] sm:$0xff]  ;;  %v2983_v42 = vld [vmem:[%s3775_s9 + $0x50] sm:$0xff] }
 0x3c2   : >> { %v2953_v41 = vld [vmem:[%s3775_s9 + $0x60] sm:$0xff]  ;;  %2952 = vst [vmem:[%s3771_s27 + $0x40] sm:$0xff] %v2951_v62  ;;  %s5133_s29 = smov (%p3012_p8, %s3011_s29), 0  ;;  %v2969_v48 = vld [vmem:[%s3775_s9 + $0x68] sm:$0xff]  ;;  %v2985_v44 = vld [vmem:[%s3775_s9 + $0x70] sm:$0xff] }
 0x3c3   : >> { %v2955_v53 = vld [vmem:[%s3775_s9 + $0x80] sm:$0xff]  ;;  %2954 = vst [vmem:[%s3771_s27 + $0x60] sm:$0xff] %v2953_v41  ;;  %s3310_s11 = sshll.u32 %s5133_s29, 8  ;;  %v2971_v60 = vld [vmem:[%s3775_s9 + $0x88] sm:$0xff]  ;;  %v2987_v47 = vld [vmem:[%s3775_s9 + $0x90] sm:$0xff]  ;;  %s5118_s23 = smov %s5133_s29 }
 0x3c4   : >> { %v2957_v2 = vld [vmem:[%s3775_s9 + $0xa0] sm:$0xff]  ;;  %2956 = vst [vmem:[%s3771_s27 + $0x80] sm:$0xff] %v2955_v53  ;;  %s4939_s16 = scalar_lea.vmem %s4547_s20, %s3310_s11 [#allocation7]   ;;  %s4942_s13 = scalar_lea.vmem %s4890_s18, %s3310_s11   ;;  %v2973_v29 = vld [vmem:[%s3775_s9 + $0xa8] sm:$0xff]  ;;  %v2989_v52 = vld [vmem:[%s3775_s9 + $0xb0] sm:$0xff] }
 0x3c5   : >> { %v2959_v3 = vld [vmem:[%s3775_s9 + $0xc0] sm:$0xff]  ;;  %2958 = vst [vmem:[%s3771_s27 + $0xa0] sm:$0xff] %v2957_v2  ;;  %v2975_v1 = vld [vmem:[%s3775_s9 + $0xc8] sm:$0xff]  ;;  %v2991_v30 = vld [vmem:[%s3775_s9 + $0xd0] sm:$0xff] }
 0x3c6   : >> { %v2961_v21 = vld [vmem:[%s3775_s9 + $0xe0] sm:$0xff]  ;;  %2960 = vst [vmem:[%s3771_s27 + $0xc0] sm:$0xff] %v2959_v3  ;;  %v2977_v8 = vld [vmem:[%s3775_s9 + $0xe8] sm:$0xff]  ;;  %v2993_v50 = vld [vmem:[%s3775_s9 + $0xf0] sm:$0xff] }
 0x3c7   : >> { %2962 = vst [vmem:[%s3771_s27 + $0xe0] sm:$0xff] %v2961_v21  ;;  %v2995_v35 = vld [vmem:[%s3775_s9 + $0x18] sm:$0xff] }
 0x3c8   : >> { %2964 = vst [vmem:[%s3771_s27 + $0x8] sm:$0xff] %v2963_v49  ;;  %v2997_v34 = vld [vmem:[%s3775_s9 + $0x38] sm:$0xff] }
 0x3c9   : >> { %2966 = vst [vmem:[%s3771_s27 + $0x28] sm:$0xff] %v2965_v27  ;;  %v2999_v32 = vld [vmem:[%s3775_s9 + $0x58] sm:$0xff] }
 0x3ca   : >> { %2968 = vst [vmem:[%s3771_s27 + $0x48] sm:$0xff] %v2967_v39  ;;  %v3001_v56 = vld [vmem:[%s3775_s9 + $0x78] sm:$0xff] }
 0x3cb   : >> { %2970 = vst [vmem:[%s3771_s27 + $0x68] sm:$0xff] %v2969_v48  ;;  %v3003_v18 = vld [vmem:[%s3775_s9 + $0x98] sm:$0xff] }
 0x3cc   : >> { %2972 = vst [vmem:[%s3771_s27 + $0x88] sm:$0xff] %v2971_v60  ;;  %v3005_v12 = vld [vmem:[%s3775_s9 + $0xb8] sm:$0xff] }
 0x3cd   : >> { %2974 = vst [vmem:[%s3771_s27 + $0xa8] sm:$0xff] %v2973_v29  ;;  %v3007_v10 = vld [vmem:[%s3775_s9 + $0xd8] sm:$0xff] }
 0x3ce   : >> { %2976 = vst [vmem:[%s3771_s27 + $0xc8] sm:$0xff] %v2975_v1  ;;  %v3009_v45 = vld [vmem:[%s3775_s9 + $0xf8] sm:$0xff]  ;;  %s5117_s9 = smov %s4939_s16 }
 0x3cf   : >> { %2978 = vst [vmem:[%s3771_s27 + $0xe8] sm:$0xff] %v2977_v8 }
 0x3d0   : >> { %2980 = vst [vmem:[%s3771_s27 + $0x10] sm:$0xff] %v2979_v61 }
 0x3d1   : >> { %2982 = vst [vmem:[%s3771_s27 + $0x30] sm:$0xff] %v2981_v5 }
 0x3d2   : >> { %2984 = vst [vmem:[%s3771_s27 + $0x50] sm:$0xff] %v2983_v42 }
 0x3d3   : >> { %2986 = vst [vmem:[%s3771_s27 + $0x70] sm:$0xff] %v2985_v44 }
 0x3d4   : >> { %2988 = vst [vmem:[%s3771_s27 + $0x90] sm:$0xff] %v2987_v47 }
 0x3d5   : >> { %2990 = vst [vmem:[%s3771_s27 + $0xb0] sm:$0xff] %v2989_v52 }
 0x3d6   : >> { %2992 = vst [vmem:[%s3771_s27 + $0xd0] sm:$0xff] %v2991_v30 }
 0x3d7   : >> { %2994 = vst [vmem:[%s3771_s27 + $0xf0] sm:$0xff] %v2993_v50 }
 0x3d8   : >> { %2996 = vst [vmem:[%s3771_s27 + $0x18] sm:$0xff] %v2995_v35 }
 0x3d9   : >> { %2998 = vst [vmem:[%s3771_s27 + $0x38] sm:$0xff] %v2997_v34 }
 0x3da   : >> { %3000 = vst [vmem:[%s3771_s27 + $0x58] sm:$0xff] %v2999_v32 }
 0x3db   : >> { %3002 = vst [vmem:[%s3771_s27 + $0x78] sm:$0xff] %v3001_v56  ;;  %2943 = sbr.rel (!%p2940_p9) target bundleno = 959 (0x3bf), region = 184 }
 0x3dc   : >> { %3004 = vst [vmem:[%s3771_s27 + $0x98] sm:$0xff] %v3003_v18 }
 0x3dd   : >> { %3006 = vst [vmem:[%s3771_s27 + $0xb8] sm:$0xff] %v3005_v12 }
 0x3de   : >> { %3008 = vst [vmem:[%s3771_s27 + $0xd8] sm:$0xff] %v3007_v10 }
 0x3df   : >> { %3010 = vst [vmem:[%s3771_s27 + $0xf8] sm:$0xff] %v3009_v45  ;;  %s5116_s27 = smov %s4942_s13 }
 0x3e0 PF: > { %s5007_s14 = sand.u32 7, %s5131_s10   ;;  %s3329_s15 = sshll.u32 %s4896_s22, 8 }
 0x3e1   : > { %s5011_s24 = scalar_lea.vmem %s4547_s20, %s3329_s15 [#allocation7]   ;;  %s5014_s21 = scalar_lea.vmem %s4890_s18, %s3329_s15  }
 0x3e2   : > { %p3315_p10 = scmp.le.s32.totalorder %s5007_s14, 0 }
 0x3e3   : > { %s5119_s12 = smov (!%p3315_p10), %s5014_s21  ;;  %s5120_s17 = smov (!%p3315_p10), %s5011_s24 }
 0x3e4   : > { %3174 = sbr.rel (%p3315_p10) target bundleno = 1009 (0x3f1), region = 189  ;;  %s3793_s26 = smov (!%p3315_p10), 0  }
 0x3e5   : > { %s3797_s19 = smov (!%p3315_p10), 0  }
 0x3e9 LB: >> { %v3034_v14 = vld [vmem:[%s3791_s17] sm:$0xff]  ;;  %v3036_v22 = vld [vmem:[%s3791_s17 + $0x8] sm:$0xff]  ;;  %v3038_v11 = vld [vmem:[%s3791_s17 + $0x10] sm:$0xff]  ;;  %s3042_s20 = sadd.s32 1, %s3795_s26  ;;  %s3028_s19 = sadd.s32 1, %s3799_s19   ;;  %s3799_s19 = sphi %s3797_s19, %s3028_s19   ;;  %s3795_s26 = sphi %s3793_s26, %s3794_s26   ;;  %s3791_s17 = sphi %s5120_s17, %s3047_s17   ;;  %s3787_s12 = sphi %s5119_s12, %s3048_s12  }
 0x3ea   : >> { %3035 = vst [vmem:[%s3787_s12] sm:$0xff] %v3034_v14  ;;  %v3040_v13 = vld [vmem:[%s3791_s17 + $0x18] sm:$0xff]  ;;  %p3043_p11 = scmp.ge.s32.totalorder %s3042_s20, %s5007_s14  ;;  %p3027_p12 = scmp.ge.s32.totalorder %s3028_s19, %s5007_s14 }
 0x3eb   : >> { %3037 = vst [vmem:[%s3787_s12 + $0x8] sm:$0xff] %v3036_v22 }
 0x3ec   : >> { %3039 = vst [vmem:[%s3787_s12 + $0x10] sm:$0xff] %v3038_v11  ;;  %s5135_s20 = smov (%p3043_p11, %s3042_s20), 0  ;;  %3030 = sbr.rel (!%p3027_p12) target bundleno = 1001 (0x3e9), region = 195 }
 0x3ed   : >> { %3041 = vst [vmem:[%s3787_s12 + $0x18] sm:$0xff] %v3040_v13  ;;  %s3316_s10 = sshll.u32 %s5135_s20, 5  ;;  %s3794_s26 = smov %s5135_s20  }
 0x3ee   : >> { %s3047_s17 = scalar_lea.vmem %s5011_s24, %s3316_s10 [#allocation7]   ;;  %s3048_s12 = scalar_lea.vmem %s5014_s21, %s3316_s10  }
 0x3f1 PF: > { %p17_p13 = scmp.ge.s32.totalorder %s3860_s28, 4   ;;  %s5121_s24 = smov %s3731_s25 }
 0x3f2   : > { %s5122_s25 = smov %s3868_s8  ;;  %s5123_s26 = smov %s3860_s28 }
 0x3f3   :  { %19 = sbr.rel (!%p17_p13) target bundleno = 3 (0x3), region = 206 }
 0x3f8   :  { %3071 = vsyncpa [#allocation3], 1 }
 0x3f9   :  { %3073 = vsyncpa [#allocation3 + $0x1], 1 }
 0x3fa   :  { %3074 = vsyncpa [#allocation5], 1 }

</bundles_post_ra>
